<compile_context>
chip_gen: v7x
topology: tpu7x:2x2x1
jax: 0.10.0
libtpu: 0.0.40
codegen_flags: <defaults>
</compile_context>

<pallas_src>
import jax
import jax.numpy as jnp
from jax import lax
import numpy as np
from jax.experimental import pallas as pl
from jax.experimental.pallas import tpu as pltpu

LANE = 128  # TPU lane width; channel dims are padded to a multiple of this.


def basic_block_kernel(xpad_ref, w1_ref, b1_ref, w2_ref, b2_ref, o_ref, mid_ref):
    # xpad_ref: (1, H+2, W+2, Cp)  f32, spatially pre-padded, channel-padded
    # w1_ref  : (3, 3*Cp, Pp)      bf16, conv1 taps, BN1 scale folded in.
    #                              axis 0 = ky, contraction = (kx, cin)
    # b1_ref  : (1, Pp)            f32 folded BN1 shift
    # w2_ref  : (3, 3*Pp, Pp)      bf16, conv2 taps, BN2 scale folded in
    # b2_ref  : (1, Pp)            f32 folded BN2 shift
    # o_ref   : (1, H, W, Pp)      f32 output (lane-dense last dim)
    # mid_ref : (H+2, W+2, Pp)     f32 VMEM scratch (padded conv1 output)
    H = o_ref.shape[1]
    W = o_ref.shape[2]
    Cp = xpad_ref.shape[3]
    Pp = o_ref.shape[3]

    xpad = xpad_ref[0]  # (H+2, W+2, Cp) f32

    # ---- zero only the 1-pixel halo of the conv2 scratch -------------------
    # The interior is fully overwritten below.  Done every grid step (cheap:
    # ~4 thin strips) so it is safe under megacore "parallel" sharding where
    # each core has its own private scratch buffer.
    zrow = jnp.zeros((1, W + 2, Pp), mid_ref.dtype)
    zcol = jnp.zeros((H + 2, 1, Pp), mid_ref.dtype)
    mid_ref[0:1, :, :] = zrow
    mid_ref[H + 1:H + 2, :, :] = zrow
    mid_ref[:, 0:1, :] = zcol
    mid_ref[:, W + 1:W + 2, :] = zcol

    def dx_cat(a):
        # Concatenate the three kx taps along the (lane-aligned) channel dim:
        # (H+2, W+2, Q) -> (H+2, W, 3*Q).  Pieces are 128-lane aligned.
        return jnp.concatenate(
            [a[:, 0:W, :], a[:, 1:W + 1, :], a[:, 2:W + 2, :]], axis=-1)

    # ---- conv1 (+ folded BN1 scale) as 3 matmuls with K = 3*Cp -------------
    cat1 = dx_cat(xpad).astype(jnp.bfloat16)           # (H+2, W, 3*Cp)
    acc1 = jnp.zeros((H * W, Pp), jnp.float32)
    for dy in range(3):
        lhs = cat1[dy:dy + H].reshape(H * W, 3 * Cp)    # layout-trivial reshape
        acc1 = acc1 + jnp.dot(lhs, w1_ref[dy],
                              preferred_element_type=jnp.float32)

    # BN1 shift + ReLU (scale already folded into w1)
    out1 = jnp.maximum(acc1 + b1_ref[...], 0.0)
    mid_ref[1:H + 1, 1:W + 1, :] = out1.reshape(H, W, Pp)

    # ---- conv2 (+ folded BN2 scale) as 3 matmuls with K = 3*Pp -------------
    mid = mid_ref[...]                                  # (H+2, W+2, Pp) f32
    cat2 = dx_cat(mid).astype(jnp.bfloat16)             # (H+2, W, 3*Pp)
    acc2 = jnp.zeros((H * W, Pp), jnp.float32)
    for dy in range(3):
        lhs = cat2[dy:dy + H].reshape(H * W, 3 * Pp)
        acc2 = acc2 + jnp.dot(lhs, w2_ref[dy],
                              preferred_element_type=jnp.float32)

    # ---- BN2 shift + identity residual + ReLU (all f32) --------------------
    residual = xpad[1:H + 1, 1:W + 1, :].reshape(H * W, Cp)  # Cp == Pp
    y = jnp.maximum(acc2 + b2_ref[...] + residual, 0.0)
    o_ref[...] = y.reshape(1, H, W, Pp)


def basic_block_pallas(x_nhwc, w1_hwio, scale1, shift1, w2_hwio, scale2, shift2):
    """x_nhwc: (N,H,W,C) f32.  w*_hwio: (3,3,Cin,Cout).  scale/shift: folded BN."""
    N, H, W, C = x_nhwc.shape
    P = w1_hwio.shape[-1]
    assert C == P, "downsample=None requires in_planes == planes"

    # Pad channels to a lane-dense multiple of 128 (padding lanes stay exactly
    # zero through conv/BN-shift/residual/ReLU, so they never pollute results).
    Cp = ((max(C, LANE) + LANE - 1) // LANE) * LANE
    Pp = Cp

    # Spatial SAME-padding + channel padding, once, in the wrapper.
    xpad = jnp.pad(x_nhwc.astype(jnp.float32),
                   ((0, 0), (1, 1), (1, 1), (0, Cp - C)))

    def prep_w(w_hwio, scale, cin):
        # Fold BN scale (per output channel) into the conv weight, channel-pad,
        # flatten (kx, cin) into the contraction dim, cast to bf16 for the MXU.
        w = w_hwio.astype(jnp.float32) * scale.astype(jnp.float32)[None, None, None, :]
        w = jnp.pad(w, ((0, 0), (0, 0), (0, Cp - cin), (0, Pp - P)))
        return w.reshape(3, 3 * Cp, Pp).astype(jnp.bfloat16)

    w1 = prep_w(w1_hwio, scale1, C)
    w2 = prep_w(w2_hwio, scale2, P)
    b1 = jnp.pad(shift1.astype(jnp.float32), (0, Pp - P)).reshape(1, Pp)
    b2 = jnp.pad(shift2.astype(jnp.float32), (0, Pp - P)).reshape(1, Pp)

    out = pl.pallas_call(
        basic_block_kernel,
        out_shape=jax.ShapeDtypeStruct((N, H, W, Pp), jnp.float32),
        grid_spec=pltpu.PrefetchScalarGridSpec(
            num_scalar_prefetch=0,
            grid=(N,),
            in_specs=[
                pl.BlockSpec((1, H + 2, W + 2, Cp), lambda n: (n, 0, 0, 0)),
                pl.BlockSpec((3, 3 * Cp, Pp), lambda n: (0, 0, 0)),
                pl.BlockSpec((1, Pp), lambda n: (0, 0)),
                pl.BlockSpec((3, 3 * Pp, Pp), lambda n: (0, 0, 0)),
                pl.BlockSpec((1, Pp), lambda n: (0, 0)),
            ],
            out_specs=pl.BlockSpec((1, H, W, Pp), lambda n: (n, 0, 0, 0)),
            scratch_shapes=[pltpu.VMEM((H + 2, W + 2, Pp), jnp.float32)],
        ),
        compiler_params=pltpu.CompilerParams(
            # Batch elements are independent -> shard across TensorCores (v7x).
            dimension_semantics=("parallel",),
            # Explicit scoped-VMEM budget (safe on v5e's 16 MiB default too).
            vmem_limit_bytes=32 * 1024 * 1024,
        ),
    )(xpad, w1, b1, w2, b2)

    return out[..., :P]  # drop channel padding


def reference_nhwc(x, w1, g1, be1, m1, v1, w2, g2, be2, m2, v2, eps=1e-5):
    dn = ('NHWC', 'HWIO', 'NHWC')
    y = lax.conv_general_dilated(x, w1, (1, 1), 'SAME', dimension_numbers=dn)
    y = (y - m1) / jnp.sqrt(v1 + eps) * g1 + be1
    y = jnp.maximum(y, 0.0)
    y = lax.conv_general_dilated(y, w2, (1, 1), 'SAME', dimension_numbers=dn)
    y = (y - m2) / jnp.sqrt(v2 + eps) * g2 + be2
    return jnp.maximum(y + x, 0.0)


if __name__ == "__main__":
    # BasicBlock(in_planes=4, planes=4, stride=1, downsample=None)
    N, C, H, W = 2, 4, 16, 16
    P = 4
    eps = 1e-5

    key = jax.random.PRNGKey(0)
    kx, kw1, kw2 = jax.random.split(key, 3)

    # Input in PyTorch NCHW, then transposed once to kernel layout NHWC.
    x_nchw = jax.random.normal(kx, (N, C, H, W), dtype=jnp.float32)
    x_nhwc = jnp.transpose(x_nchw, (0, 2, 3, 1))

    # Conv weights (PyTorch (out, in, 3, 3)) -> HWIO (3, 3, in, out).
    w1_oihw = 0.1 * jax.random.normal(kw1, (P, C, 3, 3), dtype=jnp.float32)
    w2_oihw = 0.1 * jax.random.normal(kw2, (P, P, 3, 3), dtype=jnp.float32)
    w1_hwio = jnp.transpose(w1_oihw, (2, 3, 1, 0))
    w2_hwio = jnp.transpose(w2_oihw, (2, 3, 1, 0))

    # Deterministic (non-trivial) BatchNorm parameters / running stats.
    ar = jnp.arange(P, dtype=jnp.float32)
    g1, be1 = 1.0 + 0.10 * ar, 0.05 * ar
    m1, v1 = 0.02 * ar, 1.0 + 0.03 * ar
    g2, be2 = 1.0 - 0.05 * ar, -0.02 * ar
    m2, v2 = -0.01 * ar, 1.0 + 0.07 * ar

    # Fold BN (eval mode) into per-channel scale/shift.
    s1 = g1 / jnp.sqrt(v1 + eps)
    b1 = be1 - m1 * s1
    s2 = g2 / jnp.sqrt(v2 + eps)
    b2 = be2 - m2 * s2

    out = basic_block_pallas(x_nhwc, w1_hwio, s1, b1, w2_hwio, s2, b2)
    out = jax.block_until_ready(out)

    ref = reference_nhwc(x_nhwc, w1_hwio, g1, be1, m1, v1,
                         w2_hwio, g2, be2, m2, v2, eps)
    # Tolerance accounts for bf16 MXU inputs (f32 accumulation); residual,
    # BN shift and ReLU are exact f32.
    np.testing.assert_allclose(np.asarray(out), np.asarray(ref),
                               rtol=2e-2, atol=2e-2)
    print("KERNEL_OK")
</pallas_src>

<mosaic_0001>
module attributes {stable_mosaic.version = 11 : i64} {
  func.func @basic_block_kernel(%arg0: i32, %arg1: memref<1x18x18x128xf32, #tpu.memory_space<vmem>>, %arg2: memref<3x384x128xbf16, #tpu.memory_space<vmem>>, %arg3: memref<1x128xf32, #tpu.memory_space<vmem>>, %arg4: memref<3x384x128xbf16, #tpu.memory_space<vmem>>, %arg5: memref<1x128xf32, #tpu.memory_space<vmem>>, %arg6: memref<1x16x16x128xf32, #tpu.memory_space<vmem>>, %arg7: memref<18x18x128xf32, #tpu.memory_space<vmem>>) attributes {dimension_semantics = [#tpu.dimension_semantics<parallel>], iteration_bounds = array<i64: 2>, scalar_prefetch = 0 : i64, scratch_operands = 1 : i64, tpu.core_type = #tpu.core_type<tc>, window_params = [{transform_indices = @transform_0, window_bounds = array<i64: 1, 18, 18, 128>}, {pipeline_mode = #tpu.pipeline_mode<synchronous>, transform_indices = @transform_1, window_bounds = array<i64: 3, 384, 128>}, {pipeline_mode = #tpu.pipeline_mode<synchronous>, transform_indices = @transform_2, window_bounds = array<i64: 1, 128>}, {pipeline_mode = #tpu.pipeline_mode<synchronous>, transform_indices = @transform_3, window_bounds = array<i64: 3, 384, 128>}, {pipeline_mode = #tpu.pipeline_mode<synchronous>, transform_indices = @transform_4, window_bounds = array<i64: 1, 128>}, {transform_indices = @transform_5, window_bounds = array<i64: 1, 16, 16, 128>}]} {
    %c0 = arith.constant 0 : index
    %c0_0 = arith.constant 0 : index
    %c0_1 = arith.constant 0 : index
    %c0_2 = arith.constant 0 : index
    %0 = vector.load %arg1[%c0, %c0_0, %c0_1, %c0_2] : memref<1x18x18x128xf32, #tpu.memory_space<vmem>>, vector<1x18x18x128xf32>
    %1 = vector.shape_cast %0 : vector<1x18x18x128xf32> to vector<18x18x128xf32>
    %cst = arith.constant 0.000000e+00 : f32
    %2 = vector.broadcast %cst : f32 to vector<1x18x128xf32>
    %cst_3 = arith.constant 0.000000e+00 : f32
    %3 = vector.broadcast %cst_3 : f32 to vector<18x1x128xf32>
    %c0_4 = arith.constant 0 : index
    %c0_5 = arith.constant 0 : index
    %c0_6 = arith.constant 0 : index
    %4 = vector.load %arg7[%c0_4, %c0_5, %c0_6] : memref<18x18x128xf32, #tpu.memory_space<vmem>>, vector<1x18x128xf32>
    tpu.vector_store %arg7[%c0_4, %c0_5, %c0_6], %2 {strides = array<i32>} : memref<18x18x128xf32, #tpu.memory_space<vmem>>, vector<1x18x128xf32>,
    %c17 = arith.constant 17 : index
    %c0_7 = arith.constant 0 : index
    %c0_8 = arith.constant 0 : index
    %5 = vector.load %arg7[%c17, %c0_7, %c0_8] : memref<18x18x128xf32, #tpu.memory_space<vmem>>, vector<1x18x128xf32>
    tpu.vector_store %arg7[%c17, %c0_7, %c0_8], %2 {strides = array<i32>} : memref<18x18x128xf32, #tpu.memory_space<vmem>>, vector<1x18x128xf32>,
    %c0_9 = arith.constant 0 : index
    %c0_10 = arith.constant 0 : index
    %c0_11 = arith.constant 0 : index
    %6 = vector.load %arg7[%c0_9, %c0_10, %c0_11] : memref<18x18x128xf32, #tpu.memory_space<vmem>>, vector<18x1x128xf32>
    tpu.vector_store %arg7[%c0_9, %c0_10, %c0_11], %3 {strides = array<i32>} : memref<18x18x128xf32, #tpu.memory_space<vmem>>, vector<18x1x128xf32>,
    %c0_12 = arith.constant 0 : index
    %c17_13 = arith.constant 17 : index
    %c0_14 = arith.constant 0 : index
    %7 = vector.load %arg7[%c0_12, %c17_13, %c0_14] : memref<18x18x128xf32, #tpu.memory_space<vmem>>, vector<18x1x128xf32>
    tpu.vector_store %arg7[%c0_12, %c17_13, %c0_14], %3 {strides = array<i32>} : memref<18x18x128xf32, #tpu.memory_space<vmem>>, vector<18x1x128xf32>,
    %8 = vector.extract_strided_slice %1 {offsets = [0, 0, 0], sizes = [18, 16, 128], strides = [1, 1, 1]} : vector<18x18x128xf32> to vector<18x16x128xf32>
    %9 = vector.extract_strided_slice %1 {offsets = [0, 1, 0], sizes = [18, 16, 128], strides = [1, 1, 1]} : vector<18x18x128xf32> to vector<18x16x128xf32>
    %10 = vector.extract_strided_slice %1 {offsets = [0, 2, 0], sizes = [18, 16, 128], strides = [1, 1, 1]} : vector<18x18x128xf32> to vector<18x16x128xf32>
    %11 = tpu.concatenate %8, %9, %10 in 2 : vector<18x16x128xf32>, vector<18x16x128xf32>, vector<18x16x128xf32> -> vector<18x16x384xf32>
    %12 = arith.truncf %11 : vector<18x16x384xf32> to vector<18x16x384xbf16>
    %cst_15 = arith.constant 0.000000e+00 : f32
    %13 = vector.broadcast %cst_15 : f32 to vector<256x128xf32>
    %14 = vector.extract_strided_slice %12 {offsets = [0, 0, 0], sizes = [16, 16, 384], strides = [1, 1, 1]} : vector<18x16x384xbf16> to vector<16x16x384xbf16>
    %15 = vector.shape_cast %14 : vector<16x16x384xbf16> to vector<256x384xbf16>
    %c0_16 = arith.constant 0 : index
    %c0_17 = arith.constant 0 : index
    %c0_18 = arith.constant 0 : index
    %16 = vector.load %arg2[%c0_16, %c0_17, %c0_18] : memref<3x384x128xbf16, #tpu.memory_space<vmem>>, vector<1x384x128xbf16>
    %17 = vector.shape_cast %16 : vector<1x384x128xbf16> to vector<384x128xbf16>
    %cst_19 = arith.constant dense<0.000000e+00> : vector<256x128xf32>
    %18 = tpu.matmul %15, %17, %cst_19 {dimension_numbers = #tpu.dot_dimension_numbers<[1], [0], [0], [1], [0, 0, 1, 1], [], []>} : vector<256x384xbf16>, vector<384x128xbf16>, vector<256x128xf32> -> vector<256x128xf32>
    %19 = arith.addf %13, %18 : vector<256x128xf32>
    %20 = vector.extract_strided_slice %12 {offsets = [1, 0, 0], sizes = [16, 16, 384], strides = [1, 1, 1]} : vector<18x16x384xbf16> to vector<16x16x384xbf16>
    %21 = vector.shape_cast %20 : vector<16x16x384xbf16> to vector<256x384xbf16>
    %c1 = arith.constant 1 : index
    %c0_20 = arith.constant 0 : index
    %c0_21 = arith.constant 0 : index
    %22 = vector.load %arg2[%c1, %c0_20, %c0_21] : memref<3x384x128xbf16, #tpu.memory_space<vmem>>, vector<1x384x128xbf16>
    %23 = vector.shape_cast %22 : vector<1x384x128xbf16> to vector<384x128xbf16>
    %cst_22 = arith.constant dense<0.000000e+00> : vector<256x128xf32>
    %24 = tpu.matmul %21, %23, %cst_22 {dimension_numbers = #tpu.dot_dimension_numbers<[1], [0], [0], [1], [0, 0, 1, 1], [], []>} : vector<256x384xbf16>, vector<384x128xbf16>, vector<256x128xf32> -> vector<256x128xf32>
    %25 = arith.addf %19, %24 : vector<256x128xf32>
    %26 = vector.extract_strided_slice %12 {offsets = [2, 0, 0], sizes = [16, 16, 384], strides = [1, 1, 1]} : vector<18x16x384xbf16> to vector<16x16x384xbf16>
    %27 = vector.shape_cast %26 : vector<16x16x384xbf16> to vector<256x384xbf16>
    %c2 = arith.constant 2 : index
    %c0_23 = arith.constant 0 : index
    %c0_24 = arith.constant 0 : index
    %28 = vector.load %arg2[%c2, %c0_23, %c0_24] : memref<3x384x128xbf16, #tpu.memory_space<vmem>>, vector<1x384x128xbf16>
    %29 = vector.shape_cast %28 : vector<1x384x128xbf16> to vector<384x128xbf16>
    %cst_25 = arith.constant dense<0.000000e+00> : vector<256x128xf32>
    %30 = tpu.matmul %27, %29, %cst_25 {dimension_numbers = #tpu.dot_dimension_numbers<[1], [0], [0], [1], [0, 0, 1, 1], [], []>} : vector<256x384xbf16>, vector<384x128xbf16>, vector<256x128xf32> -> vector<256x128xf32>
    %31 = arith.addf %25, %30 : vector<256x128xf32>
    %c0_26 = arith.constant 0 : index
    %c0_27 = arith.constant 0 : index
    %32 = vector.load %arg3[%c0_26, %c0_27] : memref<1x128xf32, #tpu.memory_space<vmem>>, vector<1x128xf32>
    %33 = vector.broadcast %32 : vector<1x128xf32> to vector<256x128xf32>
    %34 = arith.addf %31, %33 : vector<256x128xf32>
    %cst_28 = arith.constant 0.000000e+00 : f32
    %35 = vector.broadcast %cst_28 : f32 to vector<256x128xf32>
    %36 = arith.maximumf %34, %35 : vector<256x128xf32>
    %37 = vector.shape_cast %36 : vector<256x128xf32> to vector<16x16x128xf32>
    %c1_29 = arith.constant 1 : index
    %c1_30 = arith.constant 1 : index
    %c0_31 = arith.constant 0 : index
    %38 = vector.load %arg7[%c1_29, %c1_30, %c0_31] : memref<18x18x128xf32, #tpu.memory_space<vmem>>, vector<16x16x128xf32>
    tpu.vector_store %arg7[%c1_29, %c1_30, %c0_31], %37 {strides = array<i32>} : memref<18x18x128xf32, #tpu.memory_space<vmem>>, vector<16x16x128xf32>,
    %c0_32 = arith.constant 0 : index
    %c0_33 = arith.constant 0 : index
    %c0_34 = arith.constant 0 : index
    %39 = vector.load %arg7[%c0_32, %c0_33, %c0_34] : memref<18x18x128xf32, #tpu.memory_space<vmem>>, vector<18x18x128xf32>
    %40 = vector.extract_strided_slice %39 {offsets = [0, 0, 0], sizes = [18, 16, 128], strides = [1, 1, 1]} : vector<18x18x128xf32> to vector<18x16x128xf32>
    %41 = vector.extract_strided_slice %39 {offsets = [0, 1, 0], sizes = [18, 16, 128], strides = [1, 1, 1]} : vector<18x18x128xf32> to vector<18x16x128xf32>
    %42 = vector.extract_strided_slice %39 {offsets = [0, 2, 0], sizes = [18, 16, 128], strides = [1, 1, 1]} : vector<18x18x128xf32> to vector<18x16x128xf32>
    %43 = tpu.concatenate %40, %41, %42 in 2 : vector<18x16x128xf32>, vector<18x16x128xf32>, vector<18x16x128xf32> -> vector<18x16x384xf32>
    %44 = arith.truncf %43 : vector<18x16x384xf32> to vector<18x16x384xbf16>
    %cst_35 = arith.constant 0.000000e+00 : f32
    %45 = vector.broadcast %cst_35 : f32 to vector<256x128xf32>
    %46 = vector.extract_strided_slice %44 {offsets = [0, 0, 0], sizes = [16, 16, 384], strides = [1, 1, 1]} : vector<18x16x384xbf16> to vector<16x16x384xbf16>
    %47 = vector.shape_cast %46 : vector<16x16x384xbf16> to vector<256x384xbf16>
    %c0_36 = arith.constant 0 : index
    %c0_37 = arith.constant 0 : index
    %c0_38 = arith.constant 0 : index
    %48 = vector.load %arg4[%c0_36, %c0_37, %c0_38] : memref<3x384x128xbf16, #tpu.memory_space<vmem>>, vector<1x384x128xbf16>
    %49 = vector.shape_cast %48 : vector<1x384x128xbf16> to vector<384x128xbf16>
    %cst_39 = arith.constant dense<0.000000e+00> : vector<256x128xf32>
    %50 = tpu.matmul %47, %49, %cst_39 {dimension_numbers = #tpu.dot_dimension_numbers<[1], [0], [0], [1], [0, 0, 1, 1], [], []>} : vector<256x384xbf16>, vector<384x128xbf16>, vector<256x128xf32> -> vector<256x128xf32>
    %51 = arith.addf %45, %50 : vector<256x128xf32>
    %52 = vector.extract_strided_slice %44 {offsets = [1, 0, 0], sizes = [16, 16, 384], strides = [1, 1, 1]} : vector<18x16x384xbf16> to vector<16x16x384xbf16>
    %53 = vector.shape_cast %52 : vector<16x16x384xbf16> to vector<256x384xbf16>
    %c1_40 = arith.constant 1 : index
    %c0_41 = arith.constant 0 : index
    %c0_42 = arith.constant 0 : index
    %54 = vector.load %arg4[%c1_40, %c0_41, %c0_42] : memref<3x384x128xbf16, #tpu.memory_space<vmem>>, vector<1x384x128xbf16>
    %55 = vector.shape_cast %54 : vector<1x384x128xbf16> to vector<384x128xbf16>
    %cst_43 = arith.constant dense<0.000000e+00> : vector<256x128xf32>
    %56 = tpu.matmul %53, %55, %cst_43 {dimension_numbers = #tpu.dot_dimension_numbers<[1], [0], [0], [1], [0, 0, 1, 1], [], []>} : vector<256x384xbf16>, vector<384x128xbf16>, vector<256x128xf32> -> vector<256x128xf32>
    %57 = arith.addf %51, %56 : vector<256x128xf32>
    %58 = vector.extract_strided_slice %44 {offsets = [2, 0, 0], sizes = [16, 16, 384], strides = [1, 1, 1]} : vector<18x16x384xbf16> to vector<16x16x384xbf16>
    %59 = vector.shape_cast %58 : vector<16x16x384xbf16> to vector<256x384xbf16>
    %c2_44 = arith.constant 2 : index
    %c0_45 = arith.constant 0 : index
    %c0_46 = arith.constant 0 : index
    %60 = vector.load %arg4[%c2_44, %c0_45, %c0_46] : memref<3x384x128xbf16, #tpu.memory_space<vmem>>, vector<1x384x128xbf16>
    %61 = vector.shape_cast %60 : vector<1x384x128xbf16> to vector<384x128xbf16>
    %cst_47 = arith.constant dense<0.000000e+00> : vector<256x128xf32>
    %62 = tpu.matmul %59, %61, %cst_47 {dimension_numbers = #tpu.dot_dimension_numbers<[1], [0], [0], [1], [0, 0, 1, 1], [], []>} : vector<256x384xbf16>, vector<384x128xbf16>, vector<256x128xf32> -> vector<256x128xf32>
    %63 = arith.addf %57, %62 : vector<256x128xf32>
    %64 = vector.extract_strided_slice %1 {offsets = [1, 1, 0], sizes = [16, 16, 128], strides = [1, 1, 1]} : vector<18x18x128xf32> to vector<16x16x128xf32>
    %65 = vector.shape_cast %64 : vector<16x16x128xf32> to vector<256x128xf32>
    %c0_48 = arith.constant 0 : index
    %c0_49 = arith.constant 0 : index
    %66 = vector.load %arg5[%c0_48, %c0_49] : memref<1x128xf32, #tpu.memory_space<vmem>>, vector<1x128xf32>
    %67 = vector.broadcast %66 : vector<1x128xf32> to vector<256x128xf32>
    %68 = arith.addf %63, %67 : vector<256x128xf32>
    %69 = arith.addf %68, %65 : vector<256x128xf32>
    %cst_50 = arith.constant 0.000000e+00 : f32
    %70 = vector.broadcast %cst_50 : f32 to vector<256x128xf32>
    %71 = arith.maximumf %69, %70 : vector<256x128xf32>
    %72 = vector.shape_cast %71 : vector<256x128xf32> to vector<1x16x16x128xf32>
    %c0_51 = arith.constant 0 : index
    %c0_52 = arith.constant 0 : index
    %c0_53 = arith.constant 0 : index
    %c0_54 = arith.constant 0 : index
    %73 = vector.load %arg6[%c0_51, %c0_52, %c0_53, %c0_54] : memref<1x16x16x128xf32, #tpu.memory_space<vmem>>, vector<1x16x16x128xf32>
    tpu.vector_store %arg6[%c0_51, %c0_52, %c0_53, %c0_54], %72 {strides = array<i32>} : memref<1x16x16x128xf32, #tpu.memory_space<vmem>>, vector<1x16x16x128xf32>,
    return
  }
  func.func @transform_0(%arg0: i32) -> (i32, i32, i32, i32) {
    %c0_i32 = arith.constant 0 : i32
    %c0_i32_0 = arith.constant 0 : i32
    %c0_i32_1 = arith.constant 0 : i32
    %c0_i32_2 = arith.constant 0 : i32
    return %arg0, %c0_i32, %c0_i32_0, %c0_i32_1 : i32, i32, i32, i32
  }
  func.func @transform_1(%arg0: i32) -> (i32, i32, i32) {
    %c0_i32 = arith.constant 0 : i32
    %c0_i32_0 = arith.constant 0 : i32
    %c0_i32_1 = arith.constant 0 : i32
    %c0_i32_2 = arith.constant 0 : i32
    return %c0_i32, %c0_i32_0, %c0_i32_1 : i32, i32, i32
  }
  func.func @transform_2(%arg0: i32) -> (i32, i32) {
    %c0_i32 = arith.constant 0 : i32
    %c0_i32_0 = arith.constant 0 : i32
    %c0_i32_1 = arith.constant 0 : i32
    return %c0_i32, %c0_i32_0 : i32, i32
  }
  func.func @transform_3(%arg0: i32) -> (i32, i32, i32) {
    %c0_i32 = arith.constant 0 : i32
    %c0_i32_0 = arith.constant 0 : i32
    %c0_i32_1 = arith.constant 0 : i32
    %c0_i32_2 = arith.constant 0 : i32
    return %c0_i32, %c0_i32_0, %c0_i32_1 : i32, i32, i32
  }
  func.func @transform_4(%arg0: i32) -> (i32, i32) {
    %c0_i32 = arith.constant 0 : i32
    %c0_i32_0 = arith.constant 0 : i32
    %c0_i32_1 = arith.constant 0 : i32
    return %c0_i32, %c0_i32_0 : i32, i32
  }
  func.func @transform_5(%arg0: i32) -> (i32, i32, i32, i32) {
    %c0_i32 = arith.constant 0 : i32
    %c0_i32_0 = arith.constant 0 : i32
    %c0_i32_1 = arith.constant 0 : i32
    %c0_i32_2 = arith.constant 0 : i32
    return %arg0, %c0_i32, %c0_i32_0, %c0_i32_1 : i32, i32, i32, i32
  }
}

</mosaic_0001>

<bundles_post_ra>
// kernel: tpu_custom_call.1
= control target key start
LH: loop header
LB: loop body
LE: loop exit
PB: predicated region body
PF: predicated region fallthrough
CT: control target
= control target key end

     0   :  { %10 = vsyncpa [#allocation4], 0  ;;  %s9093_s0 = inlined_call_operand.vmem [shape: f32[2,18,18,128], index: 0, kind: input, shape index: {}]   ;;  %s9094_s1 = inlined_call_operand.vmem [shape: bf16[3,384,128], index: 1, kind: input, shape index: {}]   ;;  %s9095_s2 = inlined_call_operand.vmem [shape: f32[1,128], index: 2, kind: input, shape index: {}]   ;;  %s9096_s3 = inlined_call_operand.vmem [shape: bf16[3,384,128], index: 3, kind: input, shape index: {}]   ;;  %s9097_s4 = inlined_call_operand.vmem [shape: f32[1,128], index: 4, kind: input, shape index: {}]   ;;  %s9098_s5 = inlined_call_operand.hbm [shape: f32[2,16,16,128], index: 5, kind: output, shape index: {}]  }
   0x1   :  { %12 = vsyncpa [#allocation4 + $0x1], 0  ;;  %s6625_s18 = smov 0   ;;  %s6627_s19 = smov 0  }
   0x2   :  { %s6629_s20 = smov 0   ;;  %s6631_s21 = smov 0  }
   0x3 LB: > { %s6646_s22 = sadd.s32 4294967295, %s6589_s21   ;;  %s4564_s23 = sadd.s32 4294967294, %s6589_s21   ;;  %s6589_s21 = sphi %s6631_s21, %s9315_s21   ;;  %s6585_s20 = sphi %s6629_s20, %s9314_s20   ;;  %s6581_s19 = sphi %s6627_s19, %s9313_s19   ;;  %s6577_s18 = sphi %s6625_s18, %s9312_s18  }
   0x4   : > { %s6650_s24 = sadd.s32 1, %s6589_s21   ;;  %s135_s25 = sadd.s32 1, %s6585_s20 }
   0x5   : > { %s132_s26 = ssub.s32 %s6589_s21, %s6650_s24  ;;  %p145_p0 = scmp.ne.s32.totalorder %s6585_s20, %s6581_s19 }
   0x6   : > { %p133_p1 = scmp.eq.s32.totalorder %s132_s26, 0  ;;  %p146_p2 = scmp.eq.s32.totalorder %s6646_s22, 1 }
   0x7   : > { %p151_p3 = scmp.ne.s32.totalorder %s6581_s19, %s6577_s18  ;;  %p152_p4 = scmp.eq.s32.totalorder %s4564_s23, 1 }
   0x8   : > { %s6661_s27 = scalar_select %p133_p1, %s6585_s20, %s135_s25  }
   0x9   : > { %p6663_p5 = por %p146_p2, %p145_p0  ;;  %p6667_p6 = por %p152_p4, %p151_p3 }
   0xa   : > { %p4567_p7 = scmp.ge.s32.totalorder %s6589_s21, 1  ;;  %p190_p8 = scmp.lt.s32.totalorder %s6589_s21, 3 }
   0xc   : > { %p191_p9 = pnand %p4567_p7, %p190_p8 }
   0xe   : > { %194 = sbr.rel (%p191_p9) target bundleno = 1102 (0x44e), region = 40 }
  0x15   : > { %v6381_v0 = vld [vmem:[%s9094_s1 + $0x100] sm:$0xff]   ;;  %v6385_v4 = vld [vmem:[%s9094_s1 + $0x108] sm:$0xff]   ;;  %v6389_v8 = vld [vmem:[%s9094_s1 + $0x110] sm:$0xff]   ;;  %p218_p10 = scmp.lt.s32.totalorder %s6646_s22, 1  ;;  %vm375_vm0 = vcmask 1046528   ;;  %vm502_vm1 = vcmask 1045504  }
  0x16   : > { %v6382_v1 = vld [vmem:[%s9094_s1 + $0xc0] sm:$0xff]   ;;  %4914 = vmatprep.subr.bf16.mxu0 %v6381_v0  ;;  %v6386_v5 = vld [vmem:[%s9094_s1 + $0xc8] sm:$0xff]   ;;  %v6390_v9 = vld [vmem:[%s9094_s1 + $0xd0] sm:$0xff]   ;;  %s215_s25 = sand.u32 1, %s6581_s19   ;;  %s4913_s8 = sshll.u32 %s6646_s22, 12 }
  0x17   : > { %v6383_v2 = vld [vmem:[%s9094_s1 + $0x40] sm:$0xff]   ;;  %4915 = vmatpush3.bf16.msra.mxu0 %v6382_v1  ;;  %v6387_v6 = vld [vmem:[%s9094_s1 + $0x48] sm:$0xff]   ;;  %v6391_v10 = vld [vmem:[%s9094_s1 + $0x50] sm:$0xff]   ;;  %s219_s17 = scalar_select %p218_p10, %s6646_s22, 1 }
  0x18   : > { %v6384_v3 = vld [vmem:[%s9094_s1] sm:$0xff]   ;;  %5050 = vmatprep.subr.bf16.mxu1 %v6383_v2  ;;  %4916 = vmatprep.subr.bf16.mxu0 %v6385_v4  ;;  %v6388_v7 = vld [vmem:[%s9094_s1 + $0x8] sm:$0xff]   ;;  %v6392_v11 = vld [vmem:[%s9094_s1 + $0x10] sm:$0xff]   ;;  %s4568_s6 = sshll.u32 %s215_s25, 8  ;;  %s9043_s12 = scalar_lea.hbm %s9098_s5, %s4913_s8 }
  0x19   : > { %5051 = vmatpush3.bf16.msra.mxu1 %v6384_v3  ;;  %v6393_v12 = vld [vmem:[%s9094_s1 + $0x118] sm:$0xff]   ;;  %v6397_v16 = vld [vmem:[%s9094_s1 + $0x120] sm:$0xff]   ;;  %v6401_v20 = vld [vmem:[%s9094_s1 + $0x128] sm:$0xff]   ;;  %s6338_s10 = smul.u32 432, %s219_s17  ;;  %s8923_s7 = scalar_lea.vmem [#allocation3], %s4568_s6 }
  0x1a   : > { %5052 = vmatprep.subr.bf16.mxu1 %v6387_v6  ;;  %v6394_v13 = vld [vmem:[%s9094_s1 + $0xd8] sm:$0xff]   ;;  %v6398_v17 = vld [vmem:[%s9094_s1 + $0xe0] sm:$0xff]   ;;  %v6402_v21 = vld [vmem:[%s9094_s1 + $0xe8] sm:$0xff]   ;;  %s4502_s9 = sshll.u32 %s8923_s7, 4  ;;  %s9052_s22 = scalar_lea.sflag [#allocation4], %s215_s25  ;;  %s9045_s9 = int_to_ptr.vmem [resolvable:$true] %s4502_s9 }
  0x1b   : > { %4917 = vmatpush3.bf16.msra.mxu0 %v6386_v5  ;;  %v6395_v14 = vld [vmem:[%s9094_s1 + $0x58] sm:$0xff]   ;;  %v6399_v18 = vld [vmem:[%s9094_s1 + $0x60] sm:$0xff]   ;;  %v6403_v22 = vld [vmem:[%s9094_s1 + $0x68] sm:$0xff]   ;;  %s6768_s30 = scalar_lea.vmem %s9093_s0, %s6338_s10  ;;  %s6527_s13 = scalar_lea.vmem %s9045_s9, 4096 }
  0x1c   : > { %4918 = vmatprep.subr.bf16.mxu0 %v6389_v8  ;;  %v6396_v15 = vld [vmem:[%s9094_s1 + $0x18] sm:$0xff]   ;;  %v6400_v19 = vld [vmem:[%s9094_s1 + $0x20] sm:$0xff]   ;;  %v6404_v23 = vld [vmem:[%s9094_s1 + $0x28] sm:$0xff]   ;;  %p6528_p11 = scmp.ne.s32.totalorder %s9045_s9, %s6527_s13  ;;  %s6592_s14 = smov [#allocation3]  }
  0x1d   : > { %5053 = vmatpush3.bf16.msra.mxu1 %v6388_v7  ;;  %v6405_v24 = vld [vmem:[%s9094_s1 + $0x130] sm:$0xff]   ;;  %v6409_v28 = vld [vmem:[%s9094_s1 + $0x138] sm:$0xff]   ;;  %v6780_v33 = vld [vmem:[%s6768_s30 + $0x20] sm:$0xff] }
  0x1e   : > { %5054 = vmatprep.subr.bf16.mxu1 %v6391_v10  ;;  %v6406_v25 = vld [vmem:[%s9094_s1 + $0xf0] sm:$0xff]   ;;  %v6410_v29 = vld [vmem:[%s9094_s1 + $0xf8] sm:$0xff]   ;;  %v6783_v34 = vld [vmem:[%s6768_s30 + $0x28] sm:$0x3]  ;;  %v382_v36 = vrot.slane %v6780_v33, 1  ;;  %p6529_p12 = pnand %p6528_p11, %p6663_p5 }
  0x1f   : > { %4919 = vmatpush3.bf16.msra.mxu0 %v6390_v9  ;;  %v6407_v26 = vld [vmem:[%s9094_s1 + $0x70] sm:$0xff]   ;;  %v6411_v30 = vld [vmem:[%s9094_s1 + $0x78] sm:$0xff]   ;;  %v384_v37 = vrot.slane %v6783_v34, 1  ;;  %v6413_v38 = vld [vmem:[%s9094_s1 + $0x140] sm:$0xff]  }
  0x20   : > { %4920 = vmatprep.subr.bf16.mxu0 %v6393_v12  ;;  %v6408_v27 = vld [vmem:[%s9094_s1 + $0x30] sm:$0xff]   ;;  %v6412_v31 = vld [vmem:[%s9094_s1 + $0x38] sm:$0xff]   ;;  %v6792_v39 = vld [vmem:[%s6768_s30] sm:$0xff]  ;;  %p6530_p13 = pneg %p6529_p12 }
  0x21   : > { %5055 = vmatpush3.bf16.msra.mxu1 %v6392_v11  ;;  %v6777_v32 = vld [vmem:[%s6768_s30 + $0x18] sm:$0xff]  ;;  %v6798_v41 = vsel %vm375_vm0, %v382_v36, %v384_v37  ;;  %v6805_v43 = vld [vmem:[%s6768_s30 + $0x8] sm:$0xff]  ;;  %v6808_v44 = vld [vmem:[%s6768_s30 + $0x10] sm:$0x3]  ;;  %v376_v45 = vrot.slane %v6792_v39, 1 }
  0x22   : > { %5056 = vmatprep.subr.bf16.mxu1 %v6395_v14  ;;  %v381_v35 = vrot.slane %v6777_v32, 1  ;;  %9159 = vst [vmem:[#allocation7_spill] sm:$0xff] %v6798_v41  ;;  %v6802_v42 = vpack.c.bf16 %v6780_v33, %v6777_v32  ;;  %v6812_v46 = vld [vmem:[%s6768_s30 + $0x30] sm:$0xff]  ;;  %v377_v48 = vrot.slane %v6805_v43, 1  ;;  %v379_v49 = vrot.slane %v6808_v44, 1  ;;  %v6819_v50 = vld [vmem:[%s6768_s30 + $0x38] sm:$0xff] }
  0x23   : > { %4921 = vmatpush3.bf16.msra.mxu0 %v6394_v13  ;;  %v6822_v51 = vld [vmem:[%s6768_s30 + $0x40] sm:$0x3]  ;;  %v386_v52 = vrot.slane %v6812_v46, 1  ;;  %v387_v53 = vrot.slane %v6819_v50, 1  ;;  %v6828_v55 = vld [vmem:[%s6768_s30 + $0x48] sm:$0xff]  ;;  %v6831_v56 = vld [vmem:[%s6768_s30 + $0x50] sm:$0xff]  ;;  %v629_v60 = vpack.c.bf16 %v6805_v43, %v6792_v39  ;;  %v6875_v10 = vpack.c.bf16 %v6819_v50, %v6812_v46 }
  0x24   : > { %4922 = vmatprep.subr.bf16.mxu0 %v6397_v16  ;;  %v6795_v40 = vsel %vm375_vm0, %v381_v35, %v382_v36  ;;  %v389_v54 = vrot.slane %v6822_v51, 1  ;;  %v6414_v57 = vld [vmem:[%s9094_s1 + $0x148] sm:$0xff]   ;;  %v378_v58 = vsel %vm375_vm0, %v376_v45, %v377_v48  ;;  %v380_v59 = vsel %vm375_vm0, %v377_v48, %v379_v49  ;;  %v6841_v61 = vld [vmem:[%s6768_s30 + $0x58] sm:$0x3]  ;;  %v6858_v5 = vld [vmem:[%s6768_s30 + $0x60] sm:$0xff] }
  0x25   : > { %5057 = vmatpush3.bf16.msra.mxu1 %v6396_v15  ;;  %9158 = vst [vmem:[#allocation6_spill] sm:$0xff] %v6795_v40  ;;  %v633_v47 = vpack.c.bf16 %v6798_v41, %v6795_v40  ;;  %v630_v62 = vpack.c.bf16 %v380_v59, %v378_v58  ;;  %v6845_v63 = vsel %vm375_vm0, %v386_v52, %v387_v53  ;;  %v391_v2 = vrot.slane %v6828_v55, 1  ;;  %v6861_v6 = vld [vmem:[%s6768_s30 + $0x68] sm:$0xff]  ;;  %v6415_v7 = vld [vmem:[%s9094_s1 + $0x150] sm:$0xff]   ;;  %v6416_v16 = vld [vmem:[%s9094_s1 + $0x158] sm:$0xff]  }
  0x26   : > { %5058 = vmatprep.subr.bf16.mxu1 %v6399_v18  ;;  %9160 = vst [vmem:[#allocation8_spill] sm:$0xff] %v6845_v63  ;;  %v6848_v0 = vsel %vm375_vm0, %v387_v53, %v389_v54  ;;  %v392_v3 = vrot.slane %v6831_v56, 1  ;;  %v394_v4 = vrot.slane %v6841_v61, 1  ;;  %v6871_v9 = vld [vmem:[%s6768_s30 + $0x70] sm:$0x3]  ;;  %v396_v13 = vrot.slane %v6858_v5, 1 }
  0x27   : > { %4923 = vmatpush3.bf16.msra.mxu0 %v6398_v17  ;;  %956 = vmatprep.mubr.bf16.mxu0 %v633_v47  ;;  %9161 = vst [vmem:[#allocation9_spill] sm:$0xff] %v6848_v0  ;;  %v6852_v1 = vpack.c.bf16 %v6848_v0, %v6845_v63  ;;  %v397_v14 = vrot.slane %v6861_v6, 1  ;;  %v399_v15 = vrot.slane %v6871_v9, 1  ;;  %v511_v17 = vrot.slane %v6783_v34, 2  ;;  %v6893_v18 = vld [vmem:[%s6768_s30 + $0x78] sm:$0xff]  ;;  %v6937_v37 = vld [vmem:[%s6768_s30 + $0xa8] sm:$0xff] }
  0x28   : > { %4924 = vmatprep.subr.bf16.mxu0 %v6401_v20  ;;  %1422 = vmatprep.mubr.bf16.mxu1 %v630_v62  ;;  %v6868_v8 = vsel %vm375_vm0, %v391_v2, %v392_v3  ;;  %v6878_v11 = vsel %vm375_vm0, %v392_v3, %v394_v4  ;;  %v6899_v20 = vld [vmem:[%s6768_s30 + $0x88] sm:$0x3]  ;;  %v6932_v35 = vpack.c.bf16 %v6831_v56, %v6828_v55  ;;  %v401_v36 = vrot.slane %v6893_v18, 1  ;;  %v6952_v49 = vld [vmem:[%s6768_s30 + $0xc0] sm:$0xff]  ;;  %v6958_v53 = vld [vmem:[%s6768_s30 + $0xd0] sm:$0x3] }
  0x29   : > { %5059 = vmatpush3.bf16.msra.mxu1 %v6400_v19  ;;  %9162 = vst [vmem:[#allocation10_spill] sm:$0xff] %v6868_v8  ;;  %9163 = vst [vmem:[#allocation11_spill] sm:$0xff] %v6878_v11  ;;  %v6882_v12 = vpack.c.bf16 %v6878_v11, %v6868_v8  ;;  %v6896_v19 = vld [vmem:[%s6768_s30 + $0x80] sm:$0xff]  ;;  %v404_v48 = vrot.slane %v6899_v20, 1  ;;  %v6955_v52 = vld [vmem:[%s6768_s30 + $0xc8] sm:$0xff]  ;;  %v9172_v11 = vrot.slane %v6822_v51, 2 }
  0x2a   : > { %5060 = vmatprep.subr.bf16.mxu1 %v6403_v22  ;;  %v6420_v59 = vld [vmem:[%s9094_s1 + $0x88] sm:$0xff]   ;;  %v6973_v3 = vld [vmem:[%s6768_s30 + $0xd8] sm:$0xff]  ;;  %v7014_v62 = vld [vmem:[%s6768_s30 + $0x100] sm:$0x3]  ;;  %v503_v51 = vrot.slane %v6792_v39, 2 }
  0x2b   : > { %4925 = vmatpush3.bf16.msra.mxu0 %v6402_v21  ;;  %v508_v21 = vrot.slane %v6777_v32, 2  ;;  %v6418_v32 = vld [vmem:[%s9094_s1 + $0x80] sm:$0xff]   ;;  %v7017_v2 = vld [vmem:[%s6768_s30 + $0x108] sm:$0xff]  ;;  %v7053_v34 = vld [vmem:[%s6768_s30 + $0x130] sm:$0x3]  ;;  %v9194_v40 = vrot.slane %v6973_v3, 1 }
  0x2c   : > { %4926 = vmatprep.subr.bf16.mxu0 %v6405_v24  ;;  %v6417_v24 = vld [vmem:[%s9094_s1 + $0x160] sm:$0xff]  }
  0x2d   : > { %5061 = vmatpush3.bf16.msra.mxu1 %v6404_v23  ;;  %v6905_v23 = vld [vmem:[%s6768_s30 + $0x90] sm:$0xff] }
  0x2e   : > { %5062 = vmatprep.subr.bf16.mxu1 %v6407_v26  ;;  %v6912_v26 = vsel %vm375_vm0, %v396_v13, %v397_v14  ;;  %v6997_v13 = vld [vmem:[%s6768_s30 + $0xf8] sm:$0xff]  ;;  %v533_v41 = vrot.slane %v6905_v23, 2 }
  0x2f   : > { %4927 = vmatpush3.bf16.msra.mxu0 %v6406_v25  ;;  %v509_v25 = vrot.slane %v6780_v33, 2  ;;  %9164 = vst [vmem:[#allocation12_spill] sm:$0xff] %v6912_v26  ;;  %v7028_v33 = vld [vmem:[%s6768_s30 + $0x110] sm:$0xff] }
  0x30   : > { %4928 = vmatprep.subr.bf16.mxu0 %v6409_v28  ;;  %v7034_v28 = vld [vmem:[%s6768_s30 + $0x120] sm:$0xff] }
  0x31   : > { %5063 = vmatpush3.bf16.msra.mxu1 %v6408_v27  ;;  %v6915_v27 = vsel %vm375_vm0, %v397_v14, %v399_v15  ;;  %v510_v4 = vsel %vm502_vm1, %v508_v21, %v509_v25  ;;  %v6980_v14 = vld [vmem:[%s6768_s30 + $0xe0] sm:$0xff]  ;;  %v6983_v15 = vld [vmem:[%s6768_s30 + $0xe8] sm:$0x3] }
  0x32   : > { %5064 = vmatprep.subr.bf16.mxu1 %v6411_v30  ;;  %9165 = vst [vmem:[#allocation13_spill] sm:$0xff] %v6915_v27  ;;  %v6921_v30 = vld [vmem:[%s6768_s30 + $0x98] sm:$0xff]  ;;  %v6947_v45 = vpack.c.bf16 %v6915_v27, %v6912_v26  ;;  %v524_v26 = vrot.slane %v6861_v6, 2  ;;  %v9193_v0 = vrot.slane %v6980_v14, 1 }
  0x33   : > { %4929 = vmatpush3.bf16.msra.mxu0 %v6410_v29  ;;  %v514_v29 = vrot.slane %v6819_v50, 2  ;;  %v407_v58 = vrot.slane %v6921_v30, 1  ;;  %v9173_v50 = vrot.slane %v6905_v23, 1 }
  0x34   : > { %5730 = vmatprep.subr.bf16.mxu0 %v6413_v38  ;;  %9166 = vst [vmem:[#allocation14_spill] sm:$0xff] %v6947_v45  ;;  %v7300_v63 = vsel %vm375_vm0, %v9194_v40, %v9193_v0 }
  0x35   : > { %5065 = vmatpush3.bf16.msra.mxu1 %v6412_v31  ;;  %v6924_v31 = vld [vmem:[%s6768_s30 + $0xa0] sm:$0x3]  ;;  %v517_v27 = vsel %vm502_vm1, %v514_v29, %v9172_v11  ;;  %v7076_v11 = vsel %vm375_vm0, %v9173_v50, %v407_v58  ;;  %9195 = vst [vmem:[#allocation29_spill] sm:$0xff] %v7300_v63 }
  0x36   : > { %957 = vmatmul.mubr.bf16.vlgmr.msra.gmra.mrb[0].mxu0 %v6802_v42  ;;  %5778 = vmatprep.subr.bf16.mxu1 %v6418_v32  ;;  %9174 = vst [vmem:[#allocation19_spill] sm:$0xff] %v7076_v11 }
  0x37   : > { %5731 = vmatpush3.bf16.msra.mxu0 %v6413_v38  ;;  %964 = vmatprep.mubr.bf16.mxu0 %v6852_v1  ;;  %v6940_v38 = vld [vmem:[%s6768_s30 + $0xb0] sm:$0xff] }
  0x38   : > { %5732 = vmatprep.subr.bf16.mxu0 %v6414_v57  ;;  %1423 = vmatmul.mubr.bf16.vlgmr.msra.gmra.mrb[0].mxu1 %v629_v60  ;;  %v409_v60 = vrot.slane %v6924_v31, 1 }
  0x39   : > { %1430 = vmatprep.mubr.bf16.mxu1 %v633_v47  ;;  %v402_v47 = vrot.slane %v6896_v19, 1  ;;  %5779 = vmatpush3.bf16.msra.mxu1 %v6418_v32 }
  0x3a   : > { %5780 = vmatprep.subr.bf16.mxu1 %v6420_v59 }
  0x3b   : > { %5733 = vmatpush3.bf16.msra.mxu0 %v6414_v57  ;;  %v6419_v57 = vld [vmem:[%s9094_s1 + $0x168] sm:$0xff]   ;;  %v6989_v32 = vsel %vm375_vm0, %v401_v36, %v402_v47  ;;  %v6992_v21 = vsel %vm375_vm0, %v402_v47, %v404_v48  ;;  %v6422_v47 = vld [vmem:[%s9094_s1 + $0x90] sm:$0xff]   ;;  %v7009_v48 = vpack.c.bf16 %v6861_v6, %v6858_v5  ;;  %v512_v36 = vsel %vm502_vm1, %v509_v25, %v511_v17  ;;  %v7056_v17 = vld [vmem:[%s6768_s30 + $0x138] sm:$0xff] }
  0x3c   : > { %5734 = vmatprep.subr.bf16.mxu0 %v6415_v7  ;;  %9167 = vst [vmem:[#allocation15_spill] sm:$0xff] %v6989_v32  ;;  %9168 = vst [vmem:[#allocation16_spill] sm:$0xff] %v6992_v21  ;;  %v7024_v22 = vpack.c.bf16 %v6992_v21, %v6989_v32  ;;  %v7039_v25 = vld [vmem:[%s6768_s30 + $0x128] sm:$0xff]  ;;  %v7044_v54 = vpack.c.bf16 %v512_v36, %v510_v4  ;;  %v6425_v36 = vld [vmem:[%s9094_s1 + $0xa0] sm:$0xff]   ;;  %v504_v32 = vrot.slane %v6805_v43, 2 }
  0x3d   : > { %9169 = vst [vmem:[#allocation17_spill] sm:$0xff] %v7009_v48  ;;  %5781 = vmatpush3.bf16.msra.mxu1 %v6420_v59  ;;  %v6423_v59 = vld [vmem:[%s9094_s1 + $0x98] sm:$0xff]   ;;  %v6426_v43 = vld [vmem:[%s9094_s1 + $0xa8] sm:$0xff]   ;;  %v7115_v4 = vpack.c.bf16 %v6921_v30, %v6905_v23 }
  0x3e   : > { %965 = vmatmul.mubr.bf16.gmra.mrb[4].mxu0 %v6875_v10  ;;  %9170 = vst [vmem:[#allocation18_spill] sm:$0xff] %v7024_v22  ;;  %5782 = vmatprep.subr.bf16.mxu1 %v6422_v47  ;;  %v7106_v39 = vsel %vm502_vm1, %v503_v51, %v504_v32  ;;  %v9180_v51 = vrot.slane %v6940_v38, 1  ;;  %v6428_v23 = vld [vmem:[%s9094_s1 + $0xb8] sm:$0xff]  }
  0x3f   : > { %972 = vmatprep.mubr.bf16.mxu0 %v6882_v12  ;;  %5735 = vmatpush3.bf16.msra.mxu0 %v6415_v7  ;;  %v7031_v7 = vld [vmem:[%s6768_s30 + $0x118] sm:$0x3]  ;;  %9178 = vst [vmem:[#allocation23_spill] sm:$0xff] %v7115_v4 }
  0x40   : > { %5736 = vmatprep.subr.bf16.mxu0 %v6416_v16  ;;  %1431 = vmatmul.mubr.bf16.gmra.mrb[4].mxu1 %v6802_v42  ;;  %v6943_v42 = vld [vmem:[%s6768_s30 + $0xb8] sm:$0x3] }
  0x41   : > { %1438 = vmatprep.mubr.bf16.mxu1 %v6852_v1  ;;  %5783 = vmatpush3.bf16.msra.mxu1 %v6422_v47 }
  0x42   : > { %5784 = vmatprep.subr.bf16.mxu1 %v6423_v59 }
  0x43   : > { %5737 = vmatpush3.bf16.msra.mxu0 %v6416_v16  ;;  %v6986_v16 = vld [vmem:[%s6768_s30 + $0xf0] sm:$0xff] }
  0x44   : > { %5738 = vmatprep.subr.bf16.mxu0 %v6417_v24 }
  0x45   : > { %5785 = vmatpush3.bf16.msra.mxu1 %v6423_v59  ;;  %v9179_v59 = vrot.slane %v6808_v44, 2 }
  0x46   : > { %973 = vmatmul.mubr.bf16.gmra.mrb[8].mxu0 %v6932_v35  ;;  %5786 = vmatprep.subr.bf16.mxu1 %v6425_v36 }
  0x47   : > { %980 = vmatprep.mubr.bf16.mxu0 %v6947_v45  ;;  %5739 = vmatpush3.bf16.msra.mxu0 %v6417_v24  ;;  %v6421_v24 = vld [vmem:[%s9094_s1 + $0x170] sm:$0xff]  }
  0x48   : > { %5740 = vmatprep.subr.bf16.mxu0 %v6419_v57  ;;  %1439 = vmatmul.mubr.bf16.gmra.mrb[8].mxu1 %v6875_v10 }
  0x49   : > { %1446 = vmatprep.mubr.bf16.mxu1 %v6882_v12  ;;  %5787 = vmatpush3.bf16.msra.mxu1 %v6425_v36  ;;  %v528_v36 = vrot.slane %v6893_v18, 2 }
  0x4a   : > { %5788 = vmatprep.subr.bf16.mxu1 %v6426_v43 }
  0x4b   : > { %5741 = vmatpush3.bf16.msra.mxu0 %v6419_v57  ;;  %v9171_v57 = vrot.slane %v6812_v46, 2  ;;  %v6424_v46 = vld [vmem:[%s9094_s1 + $0x178] sm:$0xff]  }
  0x4c   : > { %5742 = vmatprep.subr.bf16.mxu0 %v6421_v24 }
  0x4d   : > { %v515_v21 = vsel %vm502_vm1, %v9171_v57, %v514_v29  ;;  %v7079_v29 = vsel %vm375_vm0, %v407_v58, %v409_v60  ;;  %v7091_v60 = vld [vmem:[%s6768_s30 + $0x148] sm:$0x3]  ;;  %v518_v58 = vrot.slane %v6828_v55, 2  ;;  %v9181_v57 = vrot.slane %v6937_v37, 1  ;;  %5789 = vmatpush3.bf16.msra.mxu1 %v6426_v43 }
  0x4e   : > { %981 = vmatmul.mubr.bf16.gmra.mrb[12].mxu0 %v7009_v48  ;;  %9175 = vst [vmem:[#allocation20_spill] sm:$0xff] %v7079_v29  ;;  %v7081_v47 = vpack.c.bf16 %v517_v27, %v515_v21  ;;  %v7095_v27 = vpack.c.bf16 %v6896_v19, %v6893_v18  ;;  %v7099_v21 = vld [vmem:[%s6768_s30 + $0x140] sm:$0xff]  ;;  %v7111_v50 = vpack.c.bf16 %v7079_v29, %v7076_v11  ;;  %v9183_v29 = vrot.slane %v6943_v42, 1 }
  0x4f   : > { %988 = vmatprep.mubr.bf16.mxu0 %v7024_v22  ;;  %5743 = vmatpush3.bf16.msra.mxu0 %v6421_v24  ;;  %v7120_v24 = vsel %vm502_vm1, %v504_v32, %v9179_v59  ;;  %v7127_v55 = vsel %vm375_vm0, %v9181_v57, %v9180_v51  ;;  %v9184_v11 = vmov %v9180_v51  ;;  %v6429_v32 = vld [vmem:[%s9094_s1 + $0x1c0] sm:$0xff]   ;;  %v521_v57 = vrot.slane %v6841_v61, 2 }
  0x50   : > { %5744 = vmatprep.subr.bf16.mxu0 %v6424_v46  ;;  %1447 = vmatmul.mubr.bf16.gmra.mrb[12].mxu1 %v6932_v35  ;;  %9176 = vst [vmem:[#allocation21_spill] sm:$0xff] %v7095_v27  ;;  %9177 = vst [vmem:[#allocation22_spill] sm:$0xff] %v7111_v50  ;;  %v7134_v8 = vsel %vm375_vm0, %v9184_v11, %v9183_v29  ;;  %v523_v51 = vrot.slane %v6858_v5, 2  ;;  %v7149_v11 = vpack.c.bf16 %v6940_v38, %v6937_v37  ;;  %v6427_v5 = vld [vmem:[%s9094_s1 + $0xb0] sm:$0xff]  }
  0x51   : > { %1454 = vmatprep.mubr.bf16.mxu1 %v6947_v45  ;;  %9182 = vst [vmem:[#allocation24_spill] sm:$0xff] %v7127_v55  ;;  %9185 = vst [vmem:[#allocation25_spill] sm:$0xff] %v7134_v8  ;;  %v7157_v61 = vpack.c.bf16 %v7134_v8, %v7127_v55  ;;  %v529_v59 = vrot.slane %v6896_v19, 2  ;;  %v531_v8 = vrot.slane %v6899_v20, 2  ;;  %v538_v19 = vrot.slane %v6937_v37, 2  ;;  %5790 = vmatprep.subr.bf16.mxu1 %v6427_v5 }
  0x52   : > { %v525_v29 = vsel %vm502_vm1, %v523_v51, %v524_v26  ;;  %v539_v20 = vrot.slane %v6940_v38, 2  ;;  %v541_v43 = vrot.slane %v6943_v42, 2  ;;  %v543_v37 = vrot.slane %v6952_v49, 2  ;;  %5791 = vmatpush3.bf16.msra.mxu1 %v6427_v5  ;;  %v7212_v5 = vld [vmem:[%s9094_s1 + $0x200] sm:$0xff]  }
  0x53   : > { %5745 = vmatpush3.bf16.msra.mxu0 %v6424_v46  ;;  %v519_v46 = vrot.slane %v6831_v56, 2  ;;  %v526_v56 = vrot.slane %v6871_v9, 2  ;;  %9186 = vst [vmem:[#allocation26_spill] sm:$0xff] %v7157_v61  ;;  %v530_v18 = vsel %vm502_vm1, %v528_v36, %v529_v59  ;;  %v544_v38 = vrot.slane %v6955_v52, 2  ;;  %5792 = vmatprep.subr.bf16.mxu1 %v6428_v23 }
  0x54   : > { %5186 = vmatprep.subr.bf16.mxu0 %v6429_v32  ;;  %v546_v51 = vrot.slane %v6958_v53, 2  ;;  %v553_v36 = vrot.slane %v6986_v16, 2 }
  0x55   : > { %v520_v44 = vsel %vm502_vm1, %v518_v58, %v519_v46  ;;  %v522_v6 = vsel %vm502_vm1, %v519_v46, %v521_v57  ;;  %v527_v9 = vsel %vm502_vm1, %v524_v26, %v526_v56  ;;  %v534_v46 = vrot.slane %v6921_v30, 2 }
  0x56   : > { %989 = vmatmul.mubr.bf16.gmra.mrb[16].mxu0 %v7095_v27  ;;  %v7165_v58 = vpack.c.bf16 %v522_v6, %v520_v44  ;;  %v7171_v55 = vpack.c.bf16 %v527_v9, %v525_v29  ;;  %v536_v57 = vrot.slane %v6924_v31, 2  ;;  %v532_v26 = vsel %vm502_vm1, %v529_v59, %v531_v8  ;;  %5793 = vmatpush3.bf16.msra.mxu1 %v6428_v23 }
  0x57   : > { %996 = vmatprep.mubr.bf16.mxu0 %v7111_v50  ;;  %v7184_v44 = vpack.c.bf16 %v532_v26, %v530_v18  ;;  %v535_v30 = vsel %vm502_vm1, %v533_v41, %v534_v46  ;;  %v540_v8 = vsel %vm502_vm1, %v538_v19, %v539_v20  ;;  %v542_v59 = vsel %vm502_vm1, %v539_v20, %v541_v43 }
  0x58   : > { %1455 = vmatmul.mubr.bf16.gmra.mrb[16].mxu1 %v7009_v48  ;;  %v537_v31 = vsel %vm502_vm1, %v534_v46, %v536_v57  ;;  %v548_v29 = vrot.slane %v6973_v3, 2  ;;  %v549_v41 = vrot.slane %v6980_v14, 2  ;;  %v7199_v42 = vpack.c.bf16 %v542_v59, %v540_v8  ;;  %5826 = vmatprep.subr.bf16.mxu1 %v7212_v5 }
  0x59   : > { %1462 = vmatprep.mubr.bf16.mxu1 %v7024_v22  ;;  %v7189_v32 = vpack.c.bf16 %v537_v31, %v535_v30  ;;  %v545_v56 = vsel %vm502_vm1, %v543_v37, %v544_v38  ;;  %v551_v6 = vrot.slane %v6983_v15, 2  ;;  %v547_v9 = vsel %vm502_vm1, %v544_v38, %v546_v51  ;;  %v7313_v22 = vld [vmem:[%s6768_s30 + $0x190] sm:$0x3] }
  0x5a   : > { %v550_v46 = vsel %vm502_vm1, %v548_v29, %v549_v41  ;;  %v554_v57 = vrot.slane %v6997_v13, 2  ;;  %v556_v18 = vrot.slane %v7014_v62, 2  ;;  %v9187_v26 = vrot.slane %v6955_v52, 1 }
  0x5b   : > { %v9188_v19 = vrot.slane %v6952_v49, 1  ;;  %v9190_v30 = vrot.slane %v6958_v53, 1  ;;  %v7228_v8 = vpack.c.bf16 %v547_v9, %v545_v56  ;;  %v552_v37 = vsel %vm502_vm1, %v549_v41, %v551_v6 }
  0x5c   : > { %v9191_v31 = vmov %v9187_v26  ;;  %v7232_v38 = vpack.c.bf16 %v552_v37, %v550_v46  ;;  %v555_v59 = vsel %vm502_vm1, %v553_v36, %v554_v57  ;;  %v557_v51 = vsel %vm502_vm1, %v554_v57, %v556_v18  ;;  %v7251_v46 = vld [vmem:[%s6768_s30 + $0x150] sm:$0xff]  ;;  %v7254_v57 = vld [vmem:[%s6768_s30 + $0x160] sm:$0x3] }
  0x5d   : > { %v7219_v20 = vsel %vm375_vm0, %v9188_v19, %v9187_v26  ;;  %v7226_v43 = vsel %vm375_vm0, %v9191_v31, %v9190_v30  ;;  %v558_v53 = vrot.slane %v7017_v2, 2  ;;  %v7238_v29 = vpack.c.bf16 %v557_v51, %v555_v59  ;;  %v7260_v30 = vld [vmem:[%s6768_s30 + $0x158] sm:$0xff] }
  0x5e   : > { %997 = vmatmul.mubr.bf16.gmra.mrb[20].mxu0 %v7115_v4  ;;  %9189 = vst [vmem:[#allocation27_spill] sm:$0xff] %v7219_v20  ;;  %9192 = vst [vmem:[#allocation28_spill] sm:$0xff] %v7226_v43  ;;  %v559_v41 = vrot.slane %v7028_v33, 2  ;;  %v561_v56 = vrot.slane %v7031_v7, 2  ;;  %v563_v6 = vrot.slane %v7034_v28, 2  ;;  %v7245_v36 = vpack.c.bf16 %v7226_v43, %v7219_v20  ;;  %v7291_v20 = vld [vmem:[%s6768_s30 + $0x188] sm:$0xff] }
  0x5f   : > { %1004 = vmatprep.mubr.bf16.mxu0 %v7157_v61  ;;  %v564_v9 = vrot.slane %v7039_v25, 2  ;;  %v566_v23 = vrot.slane %v7053_v34, 2  ;;  %v568_v19 = vrot.slane %v7056_v17, 2  ;;  %v569_v51 = vrot.slane %v7099_v21, 2 }
  0x60   : > { %1463 = vmatmul.mubr.bf16.gmra.mrb[20].mxu1 %v7095_v27  ;;  %v560_v18 = vsel %vm502_vm1, %v558_v53, %v559_v41  ;;  %v562_v26 = vsel %vm502_vm1, %v559_v41, %v561_v56  ;;  %v7269_v53 = vld [vmem:[%s6768_s30 + $0x168] sm:$0xff]  ;;  %v7272_v41 = vld [vmem:[%s6768_s30 + $0x170] sm:$0xff]  ;;  %v571_v43 = vrot.slane %v7091_v60, 2  ;;  %v459_v45 = vrot.slane %v7313_v22, 1 }
  0x61   : > { %1470 = vmatprep.mubr.bf16.mxu1 %v7111_v50  ;;  %v7262_v31 = vpack.c.bf16 %v562_v26, %v560_v18  ;;  %v565_v37 = vsel %vm502_vm1, %v563_v6, %v564_v9  ;;  %v567_v59 = vsel %vm502_vm1, %v564_v9, %v566_v23  ;;  %v573_v18 = vrot.slane %v7251_v46, 2  ;;  %v7285_v9 = vld [vmem:[%s6768_s30 + $0x178] sm:$0x3]  ;;  %v7288_v23 = vld [vmem:[%s6768_s30 + $0x180] sm:$0xff] }
  0x62   : > { %v7274_v56 = vpack.c.bf16 %v567_v59, %v565_v37  ;;  %v574_v26 = vrot.slane %v7260_v30, 2  ;;  %v7282_v6 = vpack.c.bf16 %v6955_v52, %v6952_v49  ;;  %v570_v37 = vsel %vm502_vm1, %v568_v19, %v569_v51 }
  0x63   : > { %v576_v59 = vrot.slane %v7254_v57, 2  ;;  %v9196_v49 = vrot.slane %v6983_v15, 1  ;;  %v9197_v52 = vmov %v9193_v0  ;;  %v572_v27 = vsel %vm502_vm1, %v569_v51, %v571_v43 }
  0x64   : > { %v575_v19 = vsel %vm502_vm1, %v573_v18, %v574_v26  ;;  %v7315_v48 = vpack.c.bf16 %v572_v27, %v570_v37  ;;  %v578_v0 = vrot.slane %v7269_v53, 2  ;;  %v579_v15 = vrot.slane %v7272_v41, 2 }
  0x65   : > { %v7307_v50 = vsel %vm375_vm0, %v9197_v52, %v9196_v49  ;;  %v577_v40 = vsel %vm502_vm1, %v574_v26, %v576_v59  ;;  %v581_v43 = vrot.slane %v7285_v9, 2  ;;  %v583_v51 = vrot.slane %v7288_v23, 2 }
  0x66   : > { %1005 = vmatmul.mubr.bf16.gmra.mrb[24].mxu0 %v7149_v11  ;;  %9198 = vst [vmem:[#allocation30_spill] sm:$0xff] %v7307_v50  ;;  %v7321_v49 = vpack.c.bf16 %v577_v40, %v575_v19  ;;  %v584_v18 = vrot.slane %v7291_v20, 2  ;;  %v7328_v27 = vpack.c.bf16 %v7307_v50, %v7300_v63  ;;  %v446_v26 = vrot.slane %v7251_v46, 1 }
  0x67   : > { %1012 = vmatprep.mubr.bf16.mxu0 %v7245_v36  ;;  %v580_v37 = vsel %vm502_vm1, %v578_v0, %v579_v15  ;;  %v586_v59 = vrot.slane %v7313_v22, 2  ;;  %v582_v52 = vsel %vm502_vm1, %v579_v15, %v581_v43  ;;  %v449_v50 = vrot.slane %v7254_v57, 1 }
  0x68   : > { %1471 = vmatmul.mubr.bf16.gmra.mrb[24].mxu1 %v7115_v4  ;;  %v585_v19 = vsel %vm502_vm1, %v583_v51, %v584_v18  ;;  %v7335_v40 = vpack.c.bf16 %v582_v52, %v580_v37  ;;  %v447_v4 = vrot.slane %v7260_v30, 1  ;;  %v451_v0 = vrot.slane %v7269_v53, 1 }
  0x69   : > { %1478 = vmatprep.mubr.bf16.mxu1 %v7157_v61  ;;  %v587_v61 = vsel %vm502_vm1, %v584_v18, %v586_v59  ;;  %v452_v15 = vrot.slane %v7272_v41, 1  ;;  %v9199_v43 = vrot.slane %v6997_v13, 1  ;;  %v9200_v51 = vrot.slane %v6986_v16, 1 }
  0x6a   : > { %v7341_v63 = vpack.c.bf16 %v587_v61, %v585_v19  ;;  %v9202_v37 = vrot.slane %v7014_v62, 1  ;;  %v454_v57 = vrot.slane %v7285_v9, 1  ;;  %v456_v52 = vrot.slane %v7288_v23, 1 }
  0x6b   : > { %v7351_v18 = vsel %vm375_vm0, %v9200_v51, %v9199_v43  ;;  %v9203_v59 = vmov %v9199_v43  ;;  %v457_v19 = vrot.slane %v7291_v20, 1  ;;  %v7367_v43 = vpack.c.bf16 %v6980_v14, %v6973_v3 }
  0x6c   : > { %9201 = vst [vmem:[#allocation31_spill] sm:$0xff] %v7351_v18  ;;  %v7358_v61 = vsel %vm375_vm0, %v9203_v59, %v9202_v37  ;;  %v9205_v9 = vrot.slane %v7028_v33, 1  ;;  %v9206_v51 = vrot.slane %v7017_v2, 1  ;;  %v9208_v3 = vrot.slane %v7031_v7, 1 }
  0x6d   : > { %9204 = vst [vmem:[#allocation32_spill] sm:$0xff] %v7358_v61  ;;  %v7372_v62 = vpack.c.bf16 %v7358_v61, %v7351_v18  ;;  %v7393_v59 = vpack.c.bf16 %v6997_v13, %v6986_v16  ;;  %v9211_v7 = vrot.slane %v7039_v25, 1  ;;  %v9214_v13 = vrot.slane %v7053_v34, 1 }
  0x6e   : > { %1013 = vmatmul.mubr.bf16.gmra.mrb[28].mxu0 %v7282_v6  ;;  %v7381_v22 = vsel %vm375_vm0, %v9206_v51, %v9205_v9  ;;  %v9209_v14 = vmov %v9205_v9  ;;  %v9212_v9 = vrot.slane %v7034_v28, 1  ;;  %v9217_v34 = vrot.slane %v7099_v21, 1 }
  0x6f   : > { %1020 = vmatprep.mubr.bf16.mxu0 %v7328_v27  ;;  %9207 = vst [vmem:[#allocation33_spill] sm:$0xff] %v7381_v22  ;;  %v7388_v37 = vsel %vm375_vm0, %v9209_v14, %v9208_v3  ;;  %v9215_v16 = vmov %v9211_v7  ;;  %v7419_v14 = vpack.c.bf16 %v7028_v33, %v7017_v2  ;;  %v9220_v33 = vrot.slane %v7091_v60, 1 }
  0x70   : > { %1479 = vmatmul.mubr.bf16.gmra.mrb[28].mxu1 %v7149_v11  ;;  %9210 = vst [vmem:[#allocation34_spill] sm:$0xff] %v7388_v37  ;;  %v7398_v61 = vpack.c.bf16 %v7388_v37, %v7381_v22  ;;  %v7407_v51 = vsel %vm375_vm0, %v9212_v9, %v9211_v7  ;;  %v7414_v3 = vsel %vm375_vm0, %v9215_v16, %v9214_v13  ;;  %v9218_v7 = vrot.slane %v7056_v17, 1 }
  0x71   : > { %1486 = vmatprep.mubr.bf16.mxu1 %v7245_v36  ;;  %9213 = vst [vmem:[#allocation35_spill] sm:$0xff] %v7407_v51  ;;  %9216 = vst [vmem:[#allocation36_spill] sm:$0xff] %v7414_v3  ;;  %v7424_v37 = vpack.c.bf16 %v7414_v3, %v7407_v51  ;;  %v9221_v2 = vmov %v9217_v34  ;;  %v7445_v16 = vpack.c.bf16 %v7039_v25, %v7034_v28 }
  0x72   : > { %v7433_v9 = vsel %vm375_vm0, %v9218_v7, %v9217_v34  ;;  %v7440_v13 = vsel %vm375_vm0, %v9221_v2, %v9220_v33  ;;  %v7455_v60 = vsel %vm375_vm0, %v446_v26, %v447_v4  ;;  %v7458_v34 = vsel %vm375_vm0, %v447_v4, %v449_v50  ;;  %v6438_v7 = vld [vmem:[%s9094_s1 + $0x1a0] sm:$0xff]   ;;  %v6441_v33 = vld [vmem:[%s9094_s1 + $0x1e8] sm:$0xff]  }
  0x73   : > { %9219 = vst [vmem:[#allocation37_spill] sm:$0xff] %v7433_v9  ;;  %9222 = vst [vmem:[#allocation38_spill] sm:$0xff] %v7440_v13  ;;  %v7450_v3 = vpack.c.bf16 %v7440_v13, %v7433_v9  ;;  %v7463_v28 = vpack.c.bf16 %v7099_v21, %v7056_v17  ;;  %v7468_v25 = vpack.c.bf16 %v7458_v34, %v7455_v60  ;;  %v6447_v2 = vld [vmem:[%s9094_s1 + $0x220] sm:$0xff]  }
  0x74   : > { %9223 = vst [vmem:[#allocation39_spill] sm:$0xff] %v7455_v60  ;;  %9224 = vst [vmem:[#allocation40_spill] sm:$0xff] %v7458_v34  ;;  %v7473_v26 = vsel %vm375_vm0, %v451_v0, %v452_v15  ;;  %v7476_v4 = vsel %vm375_vm0, %v452_v15, %v454_v57  ;;  %v7481_v17 = vpack.c.bf16 %v7260_v30, %v7251_v46  ;;  %v6434_v15 = vld [vmem:[%s9094_s1 + $0x190] sm:$0xff]   ;;  %v6435_v57 = vld [vmem:[%s9094_s1 + $0x1d8] sm:$0xff]  }
  0x75   : > { %9225 = vst [vmem:[#allocation41_spill] sm:$0xff] %v7473_v26  ;;  %9226 = vst [vmem:[#allocation42_spill] sm:$0xff] %v7476_v4  ;;  %v7486_v50 = vpack.c.bf16 %v7476_v4, %v7473_v26  ;;  %v7491_v21 = vsel %vm375_vm0, %v456_v52, %v457_v19  ;;  %v7494_v0 = vsel %vm375_vm0, %v457_v19, %v459_v45  ;;  %v6443_v52 = vld [vmem:[%s9094_s1 + $0x210] sm:$0xff]   ;;  %v6437_v19 = vld [vmem:[%s9094_s1 + $0x1e0] sm:$0xff]  }
  0x76   : > { %1021 = vmatmul.mubr.bf16.gmra.mrb[32].mxu0 %v7367_v43  ;;  %9227 = vst [vmem:[#allocation43_spill] sm:$0xff] %v7491_v21  ;;  %9228 = vst [vmem:[#allocation44_spill] sm:$0xff] %v7494_v0  ;;  %v7499_v46 = vpack.c.bf16 %v7272_v41, %v7269_v53  ;;  %v7504_v30 = vpack.c.bf16 %v7494_v0, %v7491_v21  ;;  %v7511_v45 = vpack.c.bf16 %v7291_v20, %v7288_v23  ;;  %v6430_v41 = vld [vmem:[%s9094_s1 + $0x180] sm:$0xff]   ;;  %v6431_v20 = vld [vmem:[%s9094_s1 + $0x1c8] sm:$0xff]  }
  0x77   : > { %1028 = vmatprep.mubr.bf16.mxu0 %v7372_v62  ;;  %v9229_v53 = vpack.c.bf16 %v7120_v24, %v7106_v39  ;;  %v6432_v23 = vld [vmem:[%s9094_s1 + $0x188] sm:$0xff]   ;;  %v6433_v24 = vld [vmem:[%s9094_s1 + $0x1d0] sm:$0xff]   ;;  %v6464_v21 = vld [vmem:[%s9096_s3 + $0x120] sm:$0xff]  }
  0x78   : > { %1487 = vmatmul.mubr.bf16.gmra.mrb[32].mxu1 %v7282_v6  ;;  %v6440_v39 = vld [vmem:[%s9094_s1 + $0x208] sm:$0xff]   ;;  %v6463_v26 = vld [vmem:[%s9096_s3 + $0x150] sm:$0xff]  }
  0x79   : > { %1494 = vmatprep.mubr.bf16.mxu1 %v7328_v27 }
  0x7e   : > { %1029 = vmatmul.mubr.bf16.gmra.mrb[36].mxu0 %v7393_v59 }
  0x7f   : > { %1036 = vmatprep.mubr.bf16.mxu0 %v7398_v61 }
  0x80   : > { %1495 = vmatmul.mubr.bf16.gmra.mrb[36].mxu1 %v7367_v43 }
  0x81   : > { %1502 = vmatprep.mubr.bf16.mxu1 %v7372_v62 }
  0x86   : > { %1037 = vmatmul.mubr.bf16.gmra.mrb[40].mxu0 %v7419_v14 }
  0x87   : > { %1044 = vmatprep.mubr.bf16.mxu0 %v7424_v37 }
  0x88   : > { %1503 = vmatmul.mubr.bf16.gmra.mrb[40].mxu1 %v7393_v59 }
  0x89   : > { %1510 = vmatprep.mubr.bf16.mxu1 %v7398_v61 }
  0x8e   : > { %1045 = vmatmul.mubr.bf16.gmra.mrb[44].mxu0 %v7445_v16 }
  0x8f   : > { %1052 = vmatprep.mubr.bf16.mxu0 %v7450_v3 }
  0x90   : > { %1511 = vmatmul.mubr.bf16.gmra.mrb[44].mxu1 %v7419_v14 }
  0x91   : > { %1518 = vmatprep.mubr.bf16.mxu1 %v7424_v37 }
  0x96   : > { %1053 = vmatmul.mubr.bf16.gmra.mrb[48].mxu0 %v7463_v28 }
  0x97   : > { %1060 = vmatprep.mubr.bf16.mxu0 %v7468_v25 }
  0x98   : > { %1519 = vmatmul.mubr.bf16.gmra.mrb[48].mxu1 %v7445_v16 }
  0x99   : > { %1526 = vmatprep.mubr.bf16.mxu1 %v7450_v3 }
  0x9e   : > { %1061 = vmatmul.mubr.bf16.gmra.mrb[52].mxu0 %v7481_v17 }
  0x9f   : > { %1068 = vmatprep.mubr.bf16.mxu0 %v7486_v50 }
  0xa0   : > { %1527 = vmatmul.mubr.bf16.gmra.mrb[52].mxu1 %v7463_v28 }
  0xa1   : > { %1534 = vmatprep.mubr.bf16.mxu1 %v7468_v25 }
  0xa6   : > { %1069 = vmatmul.mubr.bf16.gmra.mrb[56].mxu0 %v7499_v46 }
  0xa7   : > { %1076 = vmatprep.mubr.bf16.mxu0 %v7504_v30 }
  0xa8   : > { %1535 = vmatmul.mubr.bf16.gmra.mrb[56].mxu1 %v7481_v17 }
  0xa9   : > { %1542 = vmatprep.mubr.bf16.mxu1 %v7486_v50 }
  0xae   : > { %1077 = vmatmul.mubr.bf16.gmra.mrb[60].mxu0 %v7511_v45 }
  0xaf   : > { %5746 = vmatprep.mubr.bf16.mxu0 %v7044_v54 }
  0xb0   : > { %1543 = vmatmul.mubr.bf16.gmra.mrb[60].mxu1 %v7499_v46 }
  0xb1   : > { %5794 = vmatprep.mubr.bf16.mxu1 %v9229_v53  ;;  %v6442_v53 = vld [vmem:[%s9094_s1 + $0x1a8] sm:$0xff]  }
  0xb6   : > { %5747 = vmatmul.mubr.bf16.vlgmr.msra.gmra.mrb[64].mxu0 %v7081_v47 }
  0xb7   : > { %5187 = vmatpush3.bf16.msra.mxu0 %v6430_v41  ;;  %5750 = vmatprep.mubr.bf16.mxu0 %v7165_v58  ;;  %v6448_v41 = vld [vmem:[%s9094_s1 + $0x228] sm:$0xff]  }
  0xb8   : > { %5188 = vmatprep.subr.bf16.mxu0 %v6431_v20  ;;  %5795 = vmatmul.mubr.bf16.vlgmr.msra.gmra.mrb[64].mxu1 %v7044_v54  ;;  %v6436_v54 = vld [vmem:[%s9094_s1 + $0x198] sm:$0xff]   ;;  %v6445_v20 = vld [vmem:[%s9094_s1 + $0x1f0] sm:$0xff]  }
  0xb9   : > { %5798 = vmatprep.mubr.bf16.mxu1 %v7081_v47  ;;  %5827 = vmatpush3.bf16.msra.mxu1 %v7212_v5  ;;  %v6444_v5 = vld [vmem:[%s9094_s1 + $0x218] sm:$0xff]  }
  0xba   : > { %5828 = vmatprep.subr.bf16.mxu1 %v6440_v39 }
  0xbb   : > { %5189 = vmatpush3.bf16.msra.mxu0 %v6432_v23  ;;  %v6446_v23 = vld [vmem:[%s9094_s1 + $0x1b0] sm:$0xff]  }
  0xbc   : > { %5190 = vmatprep.subr.bf16.mxu0 %v6433_v24  ;;  %v6451_v24 = vld [vmem:[%s9094_s1 + $0x230] sm:$0xff]  }
  0xbd   : > { %5829 = vmatpush3.bf16.msra.mxu1 %v6440_v39  ;;  %v6449_v39 = vld [vmem:[%s9094_s1 + $0x1f8] sm:$0xff]  }
  0xbe   : > { %5751 = vmatmul.mubr.bf16.gmra.mrb[68].mxu0 %v7171_v55  ;;  %5830 = vmatprep.subr.bf16.mxu1 %v6443_v52 }
  0xbf   : > { %5754 = vmatprep.mubr.bf16.mxu0 %v7184_v44  ;;  %5191 = vmatpush3.bf16.msra.mxu0 %v6434_v15  ;;  %v6450_v15 = vld [vmem:[%s9094_s1 + $0x1b8] sm:$0xff]  }
  0xc0   : > { %5192 = vmatprep.subr.bf16.mxu0 %v6435_v57  ;;  %5799 = vmatmul.mubr.bf16.gmra.mrb[68].mxu1 %v7165_v58  ;;  %v6452_v57 = vld [vmem:[%s9094_s1 + $0x238] sm:$0xff]  }
  0xc1   : > { %5802 = vmatprep.mubr.bf16.mxu1 %v7171_v55  ;;  %5831 = vmatpush3.bf16.msra.mxu1 %v6443_v52  ;;  %v7616_v52 = vld [vmem:[%s6768_s30 + $0x198] sm:$0xff] }
  0xc2   : > { %5832 = vmatprep.subr.bf16.mxu1 %v6444_v5 }
  0xc3   : > { %5193 = vmatpush3.bf16.msra.mxu0 %v6436_v54  ;;  %v7619_v54 = vld [vmem:[%s6768_s30 + $0x1a0] sm:$0xff] }
  0xc4   : > { %5194 = vmatprep.subr.bf16.mxu0 %v6437_v19  ;;  %v9230_v19 = vld [vmem:[#allocation14_spill] sm:$0xff] }
  0xc5   : > { %5833 = vmatpush3.bf16.msra.mxu1 %v6444_v5 }
  0xc6   : > { %5755 = vmatmul.mubr.bf16.gmra.mrb[72].mxu0 %v7189_v32  ;;  %5834 = vmatprep.subr.bf16.mxu1 %v6447_v2 }
  0xc7   : > { %5758 = vmatprep.mubr.bf16.mxu0 %v7199_v42  ;;  %5195 = vmatpush3.bf16.msra.mxu0 %v6438_v7  ;;  %v9232_v7 = vld [vmem:[#allocation18_spill] sm:$0xff] }
  0xc8   : > { %5196 = vmatprep.subr.bf16.mxu0 %v6441_v33  ;;  %5803 = vmatmul.mubr.bf16.gmra.mrb[72].mxu1 %v7184_v44 }
  0xc9   : > { %5806 = vmatprep.mubr.bf16.mxu1 %v7189_v32  ;;  %5835 = vmatpush3.bf16.msra.mxu1 %v6447_v2 }
  0xca   : > { %5836 = vmatprep.subr.bf16.mxu1 %v6448_v41 }
  0xcb   : > { %5197 = vmatpush3.bf16.msra.mxu0 %v6442_v53 }
  0xcc   : > { %5198 = vmatprep.subr.bf16.mxu0 %v6445_v20 }
  0xcd   : > { %5837 = vmatpush3.bf16.msra.mxu1 %v6448_v41  ;;  %v9234_v41 = vld [vmem:[#allocation22_spill] sm:$0xff] }
  0xce   : > { %5759 = vmatmul.mubr.bf16.gmra.mrb[76].mxu0 %v7228_v8  ;;  %5838 = vmatprep.subr.bf16.mxu1 %v6451_v24 }
  0xcf   : > { %5762 = vmatprep.mubr.bf16.mxu0 %v7232_v38  ;;  %5199 = vmatpush3.bf16.msra.mxu0 %v6446_v23 }
  0xd0   : > { %5200 = vmatprep.subr.bf16.mxu0 %v6449_v39  ;;  %5807 = vmatmul.mubr.bf16.gmra.mrb[76].mxu1 %v7199_v42 }
  0xd1   : > { %5810 = vmatprep.mubr.bf16.mxu1 %v7228_v8  ;;  %5839 = vmatpush3.bf16.msra.mxu1 %v6451_v24 }
  0xd2   : > { %5840 = vmatprep.subr.bf16.mxu1 %v6452_v57 }
  0xd3   : > { %5201 = vmatpush3.bf16.msra.mxu0 %v6450_v15 }
  0xd5   : > { %5841 = vmatpush3.bf16.msra.mxu1 %v6452_v57 }
  0xd6   : > { %5763 = vmatmul.mubr.bf16.gmra.mrb[80].mxu0 %v7238_v29 }
  0xd7   : > { %5766 = vmatprep.mubr.bf16.mxu0 %v7262_v31 }
  0xd8   : > { %5811 = vmatmul.mubr.bf16.gmra.mrb[80].mxu1 %v7232_v38 }
  0xd9   : > { %5814 = vmatprep.mubr.bf16.mxu1 %v7238_v29 }
  0xde   : > { %5767 = vmatmul.mubr.bf16.gmra.mrb[84].mxu0 %v7274_v56 }
  0xdf   : > { %5770 = vmatprep.mubr.bf16.mxu0 %v7315_v48 }
  0xe0   : > { %5815 = vmatmul.mubr.bf16.gmra.mrb[84].mxu1 %v7262_v31 }
  0xe1   : > { %5818 = vmatprep.mubr.bf16.mxu1 %v7274_v56 }
  0xe6   : > { %5771 = vmatmul.mubr.bf16.gmra.mrb[88].mxu0 %v7321_v49 }
  0xe7   : > { %5774 = vmatprep.mubr.bf16.mxu0 %v7335_v40 }
  0xe8   : > { %5819 = vmatmul.mubr.bf16.gmra.mrb[88].mxu1 %v7315_v48 }
  0xe9   : > { %5822 = vmatprep.mubr.bf16.mxu1 %v7321_v49 }
  0xee   : > { %5775 = vmatmul.mubr.bf16.gmra.mrb[92].mxu0 %v7341_v63 }
  0xef   : > { %1937 = vmatprep.mubr.bf16.mxu0 %v6852_v1  ;;  %v9231_v1 = vld [vmem:[#allocation17_spill] sm:$0xff] }
  0xf0   : > { %5823 = vmatmul.mubr.bf16.gmra.mrb[92].mxu1 %v7335_v40 }
  0xf1   : > { %5842 = vmatprep.mubr.bf16.mxu1 %v7081_v47 }
  0xf6   : > { %1938 = vmatmul.mubr.bf16.vlgmr.msra.gmra.mrb[96].mxu0 %v6875_v10 }
  0xf7   : > { %1945 = vmatprep.mubr.bf16.mxu0 %v6882_v12 }
  0xf8   : > { %5843 = vmatmul.mubr.bf16.vlgmr.msra.gmra.mrb[64].mxu1 %v7165_v58 }
  0xf9   : > { %5846 = vmatprep.mubr.bf16.mxu1 %v7171_v55 }
  0xfe   : > { %1946 = vmatmul.mubr.bf16.gmra.mrb[100].mxu0 %v6932_v35 }
  0xff   : > { %1953 = vmatprep.mubr.bf16.mxu0 %v9230_v19 }
 0x100   : > { %5847 = vmatmul.mubr.bf16.gmra.mrb[68].mxu1 %v7184_v44  ;;  %v9233_v44 = vld [vmem:[#allocation21_spill] sm:$0xff] }
 0x101   : > { %5850 = vmatprep.mubr.bf16.mxu1 %v7189_v32 }
 0x106   : > { %1954 = vmatmul.mubr.bf16.gmra.mrb[104].mxu0 %v9231_v1 }
 0x107   : > { %1961 = vmatprep.mubr.bf16.mxu0 %v9232_v7  ;;  %v9235_v7 = vld [vmem:[#allocation23_spill] sm:$0xff] }
 0x108   : > { %5851 = vmatmul.mubr.bf16.gmra.mrb[72].mxu1 %v7199_v42 }
 0x109   : > { %v4930_v10 = vpop.f32.mrb[0].mxu0  ;;  %5854 = vmatprep.mubr.bf16.mxu1 %v7228_v8 }
 0x10a   : > { %v4931_v12 = vpop.f32.mrb[1].mxu0 }
 0x10b   : > { %v4933_v47 = vpop.f32.mrb[2].mxu0  ;;  %v7639_v55 = vadd.f32 %v4931_v12, %v4930_v10  ;;  %v5066_v58 = vpop.f32.mrb[0].mxu1 }
 0x10c   : > { %v4934_v35 = vpop.f32.mrb[3].mxu0  ;;  %v5067_v33 = vpop.f32.mrb[1].mxu1 }
 0x10d   : > { %v7641_v2 = vadd.f32 %v4934_v35, %v4933_v47  ;;  %v7644_v32 = vadd.f32 %v5067_v33, %v5066_v58  ;;  %v5069_v53 = vpop.f32.mrb[2].mxu1  ;;  %v9236_v47 = vld [vmem:[#allocation26_spill] sm:$0xff] }
 0x10e   : > { %1962 = vmatmul.mubr.bf16.gmra.mrb[108].mxu0 %v9233_v44  ;;  %v5070_v42 = vpop.f32.mrb[3].mxu1 }
 0x10f   : > { %1969 = vmatprep.mubr.bf16.mxu0 %v9234_v41  ;;  %v7647_v20 = vadd.f32 %v5070_v42, %v5069_v53 }
 0x110   : > { %5855 = vmatmul.mubr.bf16.gmra.mrb[76].mxu1 %v7232_v38 }
 0x111   : > { %v4936_v8 = vpop.f32.mrb[4].mxu0  ;;  %5858 = vmatprep.mubr.bf16.mxu1 %v7238_v29 }
 0x112   : > { %v4937_v23 = vpop.f32.mrb[5].mxu0 }
 0x113   : > { %v4939_v39 = vpop.f32.mrb[6].mxu0  ;;  %v7651_v24 = vadd.f32 %v4937_v23, %v4936_v8  ;;  %v5072_v57 = vpop.f32.mrb[4].mxu1 }
 0x114   : > { %v4940_v15 = vpop.f32.mrb[7].mxu0  ;;  %v5073_v19 = vpop.f32.mrb[5].mxu1 }
 0x115   : > { %v7653_v1 = vadd.f32 %v4940_v15, %v4939_v39  ;;  %v7656_v10 = vadd.f32 %v5073_v19, %v5072_v57  ;;  %v5075_v12 = vpop.f32.mrb[6].mxu1 }
 0x116   : > { %1970 = vmatmul.mubr.bf16.gmra.mrb[112].mxu0 %v9235_v7  ;;  %v5076_v38 = vpop.f32.mrb[7].mxu1  ;;  %v7676_v7 = vld [vmem:[%s6768_s30 + $0x1a8] sm:$0x3]  ;;  %s6531_s30 = sshll.u32 %s6592_s14, 4  ;;  %s6532_s30 = int_to_ptr.vmem [resolvable:$false] %s6531_s30 }
 0x117   : > { %1977 = vmatprep.mubr.bf16.mxu0 %v9236_v47  ;;  %v7659_v35 = vadd.f32 %v5076_v38, %v5075_v12  ;;  %s6533_s15 = scalar_lea.vmem %s6532_s30, 8192  ;;  %p6534_p0 = scmp.lt.s32.totalorder %s9045_s9, %s6532_s30 }
 0x118   : > { %5859 = vmatmul.mubr.bf16.gmra.mrb[80].mxu1 %v7262_v31  ;;  %p6535_p1 = scmp.lt.s32.totalorder %s6533_s15, %s6527_s13 }
 0x119   : > { %v4942_v29 = vpop.f32.mrb[8].mxu0  ;;  %5862 = vmatprep.mubr.bf16.mxu1 %v7274_v56 }
 0x11a   : > { %v4943_v58 = vpop.f32.mrb[9].mxu0  ;;  %p6536_p2 = por %p6535_p1, %p6534_p0 }
 0x11b   : > { %v4945_v33 = vpop.f32.mrb[10].mxu0  ;;  %v7663_v44 = vadd.f32 %v4943_v58, %v4942_v29  ;;  %v5078_v41 = vpop.f32.mrb[8].mxu1  ;;  %v591_v58 = vrot.slane %v7676_v7, 2 }
 0x11c   : > { %v4946_v53 = vpop.f32.mrb[11].mxu0  ;;  %v5079_v42 = vpop.f32.mrb[9].mxu1  ;;  %p6537_p3 = pnand %p6536_p2, %p6530_p13 }
 0x11d   : > { %v7665_v8 = vadd.f32 %v4946_v53, %v4945_v33  ;;  %v7668_v23 = vadd.f32 %v5079_v42, %v5078_v41  ;;  %v5081_v39 = vpop.f32.mrb[10].mxu1 }
 0x11e   : > { %1978 = vmatmul.mubr.bf16.gmra.mrb[116].mxu0 %v7149_v11  ;;  %v5082_v31 = vpop.f32.mrb[11].mxu1 }
 0x11f   : > { %1985 = vmatprep.mubr.bf16.mxu0 %v7245_v36  ;;  %v7671_v15 = vadd.f32 %v5082_v31, %v5081_v39  ;;  %v588_v36 = vrot.slane %v7616_v52, 2 }
 0x120   : > { %5863 = vmatmul.mubr.bf16.gmra.mrb[84].mxu1 %v7315_v48  ;;  %v589_v48 = vrot.slane %v7619_v54, 2 }
 0x121   : > { %v4948_v56 = vpop.f32.mrb[12].mxu0  ;;  %5866 = vmatprep.mubr.bf16.mxu1 %v7321_v49 }
 0x122   : > { %v4949_v57 = vpop.f32.mrb[13].mxu0  ;;  %v592_v31 = vsel %vm502_vm1, %v589_v48, %v591_v58 }
 0x123   : > { %v4951_v19 = vpop.f32.mrb[14].mxu0  ;;  %v7678_v12 = vadd.f32 %v4949_v57, %v4948_v56  ;;  %v5084_v47 = vpop.f32.mrb[12].mxu1 }
 0x124   : > { %v4952_v11 = vpop.f32.mrb[15].mxu0  ;;  %v5085_v38 = vpop.f32.mrb[13].mxu1 }
 0x125   : > { %v7680_v29 = vadd.f32 %v4952_v11, %v4951_v19  ;;  %v7686_v33 = vadd.f32 %v5085_v38, %v5084_v47  ;;  %v5087_v49 = vpop.f32.mrb[14].mxu1 }
 0x126   : > { %1986 = vmatmul.mubr.bf16.gmra.mrb[120].mxu0 %v7282_v6  ;;  %v5088_v53 = vpop.f32.mrb[15].mxu1  ;;  %v590_v6 = vsel %vm502_vm1, %v588_v36, %v589_v48 }
 0x127   : > { %1993 = vmatprep.mubr.bf16.mxu0 %v7328_v27  ;;  %v7689_v41 = vadd.f32 %v5088_v53, %v5087_v49  ;;  %v682_v47 = vpack.c.bf16 %v592_v31, %v590_v6 }
 0x128   : > { %5867 = vmatmul.mubr.bf16.gmra.mrb[88].mxu1 %v7335_v40 }
 0x129   : > { %v4954_v42 = vpop.f32.mrb[16].mxu0  ;;  %5870 = vmatprep.mubr.bf16.mxu1 %v7341_v63 }
 0x12a   : > { %v4955_v39 = vpop.f32.mrb[17].mxu0 }
 0x12b   : > { %v4957_v56 = vpop.f32.mrb[18].mxu0  ;;  %v7695_v57 = vadd.f32 %v4955_v39, %v4954_v42  ;;  %v5090_v11 = vpop.f32.mrb[16].mxu1 }
 0x12c   : > { %v4958_v19 = vpop.f32.mrb[19].mxu0  ;;  %v5091_v27 = vpop.f32.mrb[17].mxu1 }
 0x12d   : > { %v7697_v38 = vadd.f32 %v4958_v19, %v4957_v56  ;;  %v7700_v40 = vadd.f32 %v5091_v27, %v5090_v11  ;;  %v5093_v49 = vpop.f32.mrb[18].mxu1 }
 0x12e   : > { %1994 = vmatmul.mubr.bf16.gmra.mrb[124].mxu0 %v7367_v43  ;;  %v5094_v63 = vpop.f32.mrb[19].mxu1 }
 0x12f   : > { %2001 = vmatprep.mubr.bf16.mxu0 %v7372_v62  ;;  %v7703_v36 = vadd.f32 %v5094_v63, %v5093_v49 }
 0x130   : > { %5871 = vmatmul.mubr.bf16.gmra.mrb[92].mxu1 %v682_v47 }
 0x131   : > { %v4960_v48 = vpop.f32.mrb[20].mxu0 }
 0x132   : > { %v4961_v58 = vpop.f32.mrb[21].mxu0 }
 0x133   : > { %v4963_v53 = vpop.f32.mrb[22].mxu0  ;;  %v7705_v42 = vadd.f32 %v4961_v58, %v4960_v48  ;;  %v5096_v6 = vpop.f32.mrb[20].mxu1 }
 0x134   : > { %v4964_v39 = vpop.f32.mrb[23].mxu0  ;;  %v5097_v31 = vpop.f32.mrb[21].mxu1 }
 0x135   : > { %v7707_v56 = vadd.f32 %v4964_v39, %v4963_v53  ;;  %v7710_v43 = vadd.f32 %v5097_v31, %v5096_v6  ;;  %v5099_v19 = vpop.f32.mrb[22].mxu1 }
 0x136   : > { %2002 = vmatmul.mubr.bf16.gmra.mrb[128].mxu0 %v7393_v59  ;;  %v5100_v62 = vpop.f32.mrb[23].mxu1 }
 0x137   : > { %2009 = vmatprep.mubr.bf16.mxu0 %v7398_v61  ;;  %v7713_v11 = vadd.f32 %v5100_v62, %v5099_v19 }
 0x139   : > { %v4966_v47 = vpop.f32.mrb[24].mxu0 }
 0x13a   : > { %v4967_v27 = vpop.f32.mrb[25].mxu0 }
 0x13b   : > { %v4969_v49 = vpop.f32.mrb[26].mxu0  ;;  %v7715_v63 = vadd.f32 %v4967_v27, %v4966_v47  ;;  %v5102_v58 = vpop.f32.mrb[24].mxu1 }
 0x13c   : > { %v4970_v48 = vpop.f32.mrb[27].mxu0  ;;  %v5103_v5 = vpop.f32.mrb[25].mxu1 }
 0x13d   : > { %v7717_v53 = vadd.f32 %v4970_v48, %v4969_v49  ;;  %v7720_v59 = vadd.f32 %v5103_v5, %v5102_v58  ;;  %v5105_v39 = vpop.f32.mrb[26].mxu1  ;;  %v6454_v58 = vld [vmem:[%s9096_s3 + $0xc0] sm:$0xff]  }
 0x13e   : > { %2010 = vmatmul.mubr.bf16.gmra.mrb[132].mxu0 %v7419_v14  ;;  %v5106_v61 = vpop.f32.mrb[27].mxu1 }
 0x13f   : > { %2017 = vmatprep.mubr.bf16.mxu0 %v7424_v37  ;;  %v7723_v6 = vadd.f32 %v5106_v61, %v5105_v39  ;;  %v6453_v37 = vld [vmem:[%s9096_s3 + $0x100] sm:$0xff]  }
 0x140   : > { %5322 = vmatprep.subr.bf16.mxu0 %v6453_v37  ;;  %v6457_v37 = vld [vmem:[%s9096_s3 + $0x140] sm:$0xff]  }
 0x141   : > { %v4972_v31 = vpop.f32.mrb[28].mxu0  ;;  %5323 = vmatpush3.bf16.msra.mxu0 %v6454_v58  ;;  %5874 = vmatprep.subr.bf16.mxu1 %v6457_v37 }
 0x142   : > { %v4973_v19 = vpop.f32.mrb[29].mxu0  ;;  %5875 = vmatpush3.bf16.msra.mxu1 %v6457_v37 }
 0x143   : > { %v4975_v62 = vpop.f32.mrb[30].mxu0  ;;  %v7725_v47 = vadd.f32 %v4973_v19, %v4972_v31  ;;  %v5108_v4 = vpop.f32.mrb[28].mxu1 }
 0x144   : > { %v4976_v27 = vpop.f32.mrb[31].mxu0  ;;  %v5109_v0 = vpop.f32.mrb[29].mxu1 }
 0x145   : > { %v7727_v49 = vadd.f32 %v4976_v27, %v4975_v62  ;;  %v7730_v14 = vadd.f32 %v5109_v0, %v5108_v4  ;;  %v5111_v5 = vpop.f32.mrb[30].mxu1 }
 0x146   : > { %2018 = vmatmul.mubr.bf16.gmra.mrb[136].mxu0 %v7445_v16  ;;  %v5112_v48 = vpop.f32.mrb[31].mxu1  ;;  %v6455_v16 = vld [vmem:[%s9096_s3 + $0x108] sm:$0xff]  }
 0x147   : > { %2025 = vmatprep.mubr.bf16.mxu0 %v7450_v3  ;;  %v7739_v39 = vadd.f32 %v5112_v48, %v5111_v5  ;;  %5324 = vmatprep.subr.bf16.mxu0 %v6455_v16  ;;  %v6456_v3 = vld [vmem:[%s9096_s3 + $0xc8] sm:$0xff]  }
 0x148   : > { %5325 = vmatpush3.bf16.msra.mxu0 %v6456_v3  ;;  %v6460_v3 = vld [vmem:[%s9096_s3 + $0x148] sm:$0xff]  }
 0x149   : > { %v4978_v61 = vpop.f32.mrb[32].mxu0  ;;  %5876 = vmatprep.subr.bf16.mxu1 %v6460_v3 }
 0x14a   : > { %v4979_v4 = vpop.f32.mrb[33].mxu0  ;;  %5877 = vmatpush3.bf16.msra.mxu1 %v6460_v3 }
 0x14b   : > { %v7744_v0 = vadd.f32 %v4979_v4, %v4978_v61  ;;  %v4981_v31 = vpop.f32.mrb[34].mxu0  ;;  %v5114_v62 = vpop.f32.mrb[32].mxu1  ;;  %v6458_v61 = vld [vmem:[%s9096_s3 + $0x110] sm:$0xff]   ;;  %5878 = vmatprep.subr.bf16.mxu1 %v6463_v26 }
 0x14c   : > { %v4982_v19 = vpop.f32.mrb[35].mxu0  ;;  %v5115_v5 = vpop.f32.mrb[33].mxu1  ;;  %v6459_v4 = vld [vmem:[%s9096_s3 + $0xd0] sm:$0xff]   ;;  %5326 = vmatprep.subr.bf16.mxu0 %v6458_v61 }
 0x14d   : > { %v7749_v27 = vadd.f32 %v4982_v19, %v4981_v31  ;;  %v7755_v48 = vadd.f32 %v5115_v5, %v5114_v62  ;;  %v5117_v58 = vpop.f32.mrb[34].mxu1  ;;  %5327 = vmatpush3.bf16.msra.mxu0 %v6459_v4 }
 0x14e   : > { %2026 = vmatmul.mubr.bf16.gmra.mrb[140].mxu0 %v7463_v28  ;;  %v5118_v16 = vpop.f32.mrb[35].mxu1  ;;  %5879 = vmatpush3.bf16.msra.mxu1 %v6463_v26 }
 0x14f   : > { %2033 = vmatprep.mubr.bf16.mxu0 %v7468_v25  ;;  %v7764_v31 = vadd.f32 %v5118_v16, %v5117_v58  ;;  %v6461_v25 = vld [vmem:[%s9096_s3 + $0x118] sm:$0xff]  }
 0x150   : > { %v6462_v58 = vld [vmem:[%s9096_s3 + $0xd8] sm:$0xff]   ;;  %5328 = vmatprep.subr.bf16.mxu0 %v6461_v25  ;;  %v6465_v25 = vld [vmem:[%s9096_s3 + $0xe0] sm:$0xff]  }
 0x151   : > { %v4984_v28 = vpop.f32.mrb[36].mxu0  ;;  %5329 = vmatpush3.bf16.msra.mxu0 %v6462_v58  ;;  %v6467_v58 = vld [vmem:[%s9096_s3 + $0x128] sm:$0xff]  }
 0x152   : > { %v4985_v19 = vpop.f32.mrb[37].mxu0  ;;  %5330 = vmatprep.subr.bf16.mxu0 %v6464_v21 }
 0x153   : > { %v7772_v62 = vadd.f32 %v4985_v19, %v4984_v28  ;;  %v4987_v5 = vpop.f32.mrb[38].mxu0  ;;  %v5120_v61 = vpop.f32.mrb[36].mxu1 }
 0x154   : > { %v4988_v37 = vpop.f32.mrb[39].mxu0  ;;  %v5121_v4 = vpop.f32.mrb[37].mxu1 }
 0x155   : > { %v7777_v16 = vadd.f32 %v4988_v37, %v4987_v5  ;;  %v7783_v28 = vadd.f32 %v5121_v4, %v5120_v61  ;;  %v5123_v19 = vpop.f32.mrb[38].mxu1  ;;  %5331 = vmatpush3.bf16.msra.mxu0 %v6465_v25  ;;  %v6468_v4 = vld [vmem:[%s9096_s3 + $0xe8] sm:$0xff]   ;;  %v462_v25 = vrot.slane %v7619_v54, 1 }
 0x156   : > { %2034 = vmatmul.mubr.bf16.gmra.mrb[144].mxu0 %v7481_v17  ;;  %v5124_v3 = vpop.f32.mrb[39].mxu1  ;;  %v6591_v17 = vmov 0.0   ;;  %5332 = vmatprep.subr.bf16.mxu0 %v6467_v58  ;;  %v6471_v58 = vld [vmem:[%s9096_s3 + $0xf0] sm:$0xff]  }
 0x157   : > { %2041 = vmatprep.mubr.bf16.mxu0 %v7486_v50  ;;  %v7792_v5 = vadd.f32 %v5124_v3, %v5123_v19  ;;  %286 = vst [vmem:[#allocation2 + $0x18] sm:$0x1] %v6591_v17  ;;  %304 = vst [vmem:[#allocation2 + $0x29] sm:$0x1] %v6591_v17  ;;  %v6466_v50 = vld [vmem:[%s9096_s3 + $0x158] sm:$0xff]   ;;  %v461_v3 = vrot.slane %v7616_v52, 1 }
 0x158   : > { %278 = vst [vmem:[#allocation2] sm:$0xff] %v6591_v17  ;;  %279 = vst [vmem:[#allocation2 + $0x8] sm:$0xff] %v6591_v17  ;;  %5880 = vmatprep.subr.bf16.mxu1 %v6466_v50 }
 0x159   : > { %280 = vst [vmem:[#allocation2 + $0x10] sm:$0x3] %v6591_v17  ;;  %282 = vst [vmem:[#allocation2 + $0x198] sm:$0xff] %v6591_v17  ;;  %v4990_v26 = vpop.f32.mrb[40].mxu0  ;;  %5881 = vmatpush3.bf16.msra.mxu1 %v6466_v50  ;;  %5333 = vmatpush3.bf16.msra.mxu0 %v6468_v4 }
 0x15a   : > { %284 = vst [vmem:[#allocation2 + $0x1a8] sm:$0x3] %v6591_v17  ;;  %287 = vst [vmem:[#allocation2 + $0x30] sm:$0x1] %v6591_v17  ;;  %v4991_v21 = vpop.f32.mrb[41].mxu0 }
 0x15b   : > { %288 = vst [vmem:[#allocation2 + $0x48] sm:$0x1] %v6591_v17  ;;  %289 = vst [vmem:[#allocation2 + $0x60] sm:$0x1] %v6591_v17  ;;  %v7800_v37 = vadd.f32 %v4991_v21, %v4990_v26  ;;  %v4993_v61 = vpop.f32.mrb[42].mxu0  ;;  %v5126_v13 = vpop.f32.mrb[40].mxu1 }
 0x15c   : > { %290 = vst [vmem:[#allocation2 + $0x78] sm:$0x1] %v6591_v17  ;;  %291 = vst [vmem:[#allocation2 + $0x90] sm:$0x1] %v6591_v17  ;;  %v4994_v19 = vpop.f32.mrb[43].mxu0  ;;  %v5127_v26 = vpop.f32.mrb[41].mxu1 }
 0x15d   : > { %292 = vst [vmem:[#allocation2 + $0xa8] sm:$0x1] %v6591_v17  ;;  %293 = vst [vmem:[#allocation2 + $0xc0] sm:$0x1] %v6591_v17  ;;  %v7808_v34 = vadd.f32 %v4994_v19, %v4993_v61  ;;  %v6469_v21 = vld [vmem:[%s9096_s3 + $0x160] sm:$0xff]   ;;  %v7814_v9 = vadd.f32 %v5127_v26, %v5126_v13  ;;  %v5129_v60 = vpop.f32.mrb[42].mxu1  ;;  %v463_v61 = vsel %vm375_vm0, %v461_v3, %v462_v25 }
 0x15e   : > { %294 = vst [vmem:[#allocation2 + $0xd8] sm:$0x1] %v6591_v17  ;;  %295 = vst [vmem:[#allocation2 + $0xf0] sm:$0x1] %v6591_v17  ;;  %2042 = vmatmul.mubr.bf16.gmra.mrb[148].mxu0 %v7499_v46  ;;  %v5130_v50 = vpop.f32.mrb[43].mxu1  ;;  %5882 = vmatprep.subr.bf16.mxu1 %v6469_v21  ;;  %v6473_v26 = vld [vmem:[%s9096_s3 + $0x138] sm:$0xff]  }
 0x15f   : > { %296 = vst [vmem:[#allocation2 + $0x108] sm:$0x1] %v6591_v17  ;;  %297 = vst [vmem:[#allocation2 + $0x120] sm:$0x1] %v6591_v17  ;;  %2049 = vmatprep.mubr.bf16.mxu0 %v7504_v30  ;;  %v7825_v46 = vadd.f32 %v5130_v50, %v5129_v60  ;;  %5883 = vmatpush3.bf16.msra.mxu1 %v6469_v21  ;;  %v6472_v30 = vld [vmem:[%s9096_s3 + $0x168] sm:$0xff]   ;;  %v6474_v60 = vld [vmem:[%s9096_s3 + $0xf8] sm:$0xff]  }
 0x160   : > { %298 = vst [vmem:[#allocation2 + $0x138] sm:$0x1] %v6591_v17  ;;  %299 = vst [vmem:[#allocation2 + $0x150] sm:$0x1] %v6591_v17  ;;  %5884 = vmatprep.subr.bf16.mxu1 %v6472_v30  ;;  %v6475_v50 = vld [vmem:[%s9096_s3 + $0x170] sm:$0xff]  }
 0x161   : > { %300 = vst [vmem:[#allocation2 + $0x168] sm:$0x1] %v6591_v17  ;;  %301 = vst [vmem:[#allocation2 + $0x180] sm:$0x1] %v6591_v17  ;;  %v4996_v13 = vpop.f32.mrb[44].mxu0 }
 0x162   : > { %305 = vst [vmem:[#allocation2 + $0x41] sm:$0x1] %v6591_v17  ;;  %306 = vst [vmem:[#allocation2 + $0x59] sm:$0x1] %v6591_v17  ;;  %v4997_v19 = vpop.f32.mrb[45].mxu0 }
 0x163   : > { %307 = vst [vmem:[#allocation2 + $0x71] sm:$0x1] %v6591_v17  ;;  %308 = vst [vmem:[#allocation2 + $0x89] sm:$0x1] %v6591_v17  ;;  %v7833_v22 = vadd.f32 %v4997_v19, %v4996_v13  ;;  %v4999_v3 = vpop.f32.mrb[46].mxu0  ;;  %5885 = vmatpush3.bf16.msra.mxu1 %v6472_v30  ;;  %v6476_v19 = vld [vmem:[%s9096_s3 + $0x178] sm:$0xff]  }
 0x164   : > { %309 = vst [vmem:[#allocation2 + $0xa1] sm:$0x1] %v6591_v17  ;;  %310 = vst [vmem:[#allocation2 + $0xb9] sm:$0x1] %v6591_v17  ;;  %5886 = vmatprep.subr.bf16.mxu1 %v6475_v50 }
 0x165   : > { %311 = vst [vmem:[#allocation2 + $0xd1] sm:$0x1] %v6591_v17  ;;  %312 = vst [vmem:[#allocation2 + $0xe9] sm:$0x1] %v6591_v17 }
 0x166   : > { %313 = vst [vmem:[#allocation2 + $0x101] sm:$0x1] %v6591_v17  ;;  %314 = vst [vmem:[#allocation2 + $0x119] sm:$0x1] %v6591_v17  ;;  %2050 = vmatmul.mubr.bf16.gmra.mrb[152].mxu0 %v7511_v45 }
 0x167   : > { %315 = vst [vmem:[#allocation2 + $0x131] sm:$0x1] %v6591_v17  ;;  %316 = vst [vmem:[#allocation2 + $0x149] sm:$0x1] %v6591_v17  ;;  %5887 = vmatpush3.bf16.msra.mxu1 %v6475_v50 }
 0x168   : > { %317 = vst [vmem:[#allocation2 + $0x161] sm:$0x1] %v6591_v17  ;;  %318 = vst [vmem:[#allocation2 + $0x179] sm:$0x1] %v6591_v17  ;;  %5888 = vmatprep.subr.bf16.mxu1 %v6476_v19 }
 0x169   : > { %319 = vst [vmem:[#allocation2 + $0x191] sm:$0x1] %v6591_v17  ;;  %285 = vst [vmem:[#allocation2] sm:$0x1] %v6591_v17 }
 0x16a   : > { %302 = vst [vmem:[#allocation2 + $0x198] sm:$0x1] %v6591_v17  ;;  %303 = vst [vmem:[#allocation2 + $0x11] sm:$0x1] %v6591_v17 }
 0x16b   : > { %320 = vst [vmem:[#allocation2 + $0x1a9] sm:$0x1] %v6591_v17  ;;  %v464_v17 = vrot.slane %v7676_v7, 1  ;;  %v6470_v7 = vld [vmem:[%s9096_s3 + $0x130] sm:$0xff]   ;;  %9237 = vst [vmem:[#allocation14_spill] sm:$0xff] %v7825_v46  ;;  %5889 = vmatpush3.bf16.msra.mxu1 %v6476_v19 }
 0x16c   : > { %5334 = vmatprep.subr.bf16.mxu0 %v6470_v7 }
 0x16d   : > { %v465_v4 = vsel %vm375_vm0, %v462_v25, %v464_v17  ;;  %5335 = vmatpush3.bf16.msra.mxu0 %v6471_v58  ;;  %v5000_v25 = vpop.f32.mrb[47].mxu0  ;;  %v5132_v17 = vpop.f32.mrb[44].mxu1 }
 0x16e   : > { %v681_v51 = vpack.c.bf16 %v465_v4, %v463_v61  ;;  %5336 = vmatprep.subr.bf16.mxu0 %v6473_v26  ;;  %v7838_v21 = vadd.f32 %v5000_v25, %v4999_v3  ;;  %v5133_v7 = vpop.f32.mrb[45].mxu1  ;;  %v5002_v30 = vpop.f32.mrb[48].mxu0 }
 0x16f   : > { %v7844_v58 = vadd.f32 %v5133_v7, %v5132_v17  ;;  %v5135_v61 = vpop.f32.mrb[46].mxu1  ;;  %v5003_v26 = vpop.f32.mrb[49].mxu0  ;;  %v9241_v7 = vpack.c.bf16 %v7619_v54, %v7616_v52 }
 0x170   : > { %2057 = vmatprep.mubr.bf16.mxu0 %v681_v51  ;;  %v5136_v4 = vpop.f32.mrb[47].mxu1  ;;  %v7851_v3 = vadd.f32 %v5003_v26, %v5002_v30 }
 0x171   : > { %5337 = vmatpush3.bf16.msra.mxu0 %v6474_v60  ;;  %v7846_v13 = vadd.f32 %v5136_v4, %v5135_v61  ;;  %v5005_v60 = vpop.f32.mrb[50].mxu0  ;;  %v5138_v25 = vpop.f32.mrb[48].mxu1 }
 0x172   : > { %9239 = vst [vmem:[#allocation18_spill] sm:$0xff] %v7851_v3  ;;  %v5006_v45 = vpop.f32.mrb[51].mxu0  ;;  %v5139_v51 = vpop.f32.mrb[49].mxu1  ;;  %2058 = vmatmul.mubr.bf16.gmra.mrb[156].mxu0 %v9241_v7 }
 0x173   : > { %9238 = vst [vmem:[#allocation17_spill] sm:$0xff] %v7846_v13  ;;  %v7853_v17 = vadd.f32 %v5006_v45, %v5005_v60  ;;  %v7858_v50 = vadd.f32 %v5139_v51, %v5138_v25  ;;  %v5141_v61 = vpop.f32.mrb[50].mxu1  ;;  %v5008_v30 = vpop.f32.mrb[52].mxu0 }
 0x174   : > { %v5142_v4 = vpop.f32.mrb[51].mxu1  ;;  %v5009_v26 = vpop.f32.mrb[53].mxu0 }
 0x175   : > { %9240 = vst [vmem:[#allocation21_spill] sm:$0xff] %v7853_v17  ;;  %9242 = vst [vmem:[#allocation22_spill] sm:$0xff] %v7858_v50  ;;  %v7860_v18 = vadd.f32 %v5142_v4, %v5141_v61  ;;  %v7862_v3 = vadd.f32 %v5009_v26, %v5008_v30  ;;  %v5011_v46 = vpop.f32.mrb[54].mxu0  ;;  %v5144_v19 = vpop.f32.mrb[52].mxu1 }
 0x176   : > { %v5012_v13 = vpop.f32.mrb[55].mxu0  ;;  %v5145_v45 = vpop.f32.mrb[53].mxu1 }
 0x177   : > { %9243 = vst [vmem:[#allocation23_spill] sm:$0xff] %v7860_v18  ;;  %9244 = vst [vmem:[#allocation26_spill] sm:$0xff] %v7862_v3  ;;  %v7864_v60 = vadd.f32 %v5012_v13, %v5011_v46  ;;  %v7866_v17 = vadd.f32 %v5145_v45, %v5144_v19  ;;  %v5147_v52 = vpop.f32.mrb[54].mxu1 }
 0x178   : > { %v5148_v54 = vpop.f32.mrb[55].mxu1 }
 0x179   : > { %9245 = vst [vmem:[#allocation45_spill] sm:$0xff] %v7864_v60  ;;  %9246 = vst [vmem:[#allocation46_spill] sm:$0xff] %v7866_v17  ;;  %v7868_v25 = vadd.f32 %v5148_v54, %v5147_v52  ;;  %v5014_v51 = vpop.f32.mrb[56].mxu0 }
 0x17a   : > { %v5015_v7 = vpop.f32.mrb[57].mxu0 }
 0x17b   : > { %9247 = vst [vmem:[#allocation47_spill] sm:$0xff] %v7868_v25  ;;  %v7870_v61 = vadd.f32 %v5015_v7, %v5014_v51  ;;  %v5017_v4 = vpop.f32.mrb[58].mxu0  ;;  %v5150_v30 = vpop.f32.mrb[56].mxu1 }
 0x17c   : > { %v5018_v18 = vpop.f32.mrb[59].mxu0  ;;  %v5151_v50 = vpop.f32.mrb[57].mxu1 }
 0x17d   : > { %9248 = vst [vmem:[#allocation48_spill] sm:$0xff] %v7870_v61  ;;  %v7872_v26 = vadd.f32 %v5018_v18, %v5017_v4  ;;  %v7874_v3 = vadd.f32 %v5151_v50, %v5150_v30  ;;  %v5153_v46 = vpop.f32.mrb[58].mxu1 }
 0x17e   : > { %v5154_v13 = vpop.f32.mrb[59].mxu1 }
 0x17f   : > { %v7876_v19 = vadd.f32 %v5154_v13, %v5153_v46 }
 0x181   : > { %9249 = vst [vmem:[#allocation49_spill] sm:$0xff] %v7876_v19  ;;  %v5020_v45 = vpop.f32.mrb[60].mxu0 }
 0x182   : > { %v5021_v60 = vpop.f32.mrb[61].mxu0 }
 0x183   : > { %v7878_v52 = vadd.f32 %v5021_v60, %v5020_v45  ;;  %v5023_v54 = vpop.f32.mrb[62].mxu0  ;;  %v5156_v51 = vpop.f32.mrb[60].mxu1 }
 0x184   : > { %v5024_v25 = vpop.f32.mrb[63].mxu0  ;;  %v5157_v61 = vpop.f32.mrb[61].mxu1 }
 0x185   : > { %v7880_v7 = vadd.f32 %v5024_v25, %v5023_v54  ;;  %v7882_v17 = vadd.f32 %v5157_v61, %v5156_v51  ;;  %v5159_v18 = vpop.f32.mrb[62].mxu1 }
 0x186   : > { %v5160_v4 = vpop.f32.mrb[63].mxu1 }
 0x187   : > { %v7884_v50 = vadd.f32 %v5160_v4, %v5159_v18 }
 0x189   : > { %v5748_v30 = vpop.f32.mrb[64].mxu0 }
 0x18a   : > { %v1128_v46 = vadd.f32 %v5748_v30, %v7651_v24  ;;  %v1119_v13 = vpop.f32.mrb[65].mxu0 }
 0x18b   : > { %v1120_v19 = vadd.f32 %v7639_v55, %v1119_v13  ;;  %v5749_v60 = vpop.f32.mrb[66].mxu0 }
 0x18c   : > { %v7889_v45 = vadd.f32 %v7656_v10, %v1128_v46  ;;  %v1131_v25 = vadd.f32 %v5749_v60, %v7653_v1  ;;  %v1122_v54 = vpop.f32.mrb[67].mxu0 }
 0x18d   : > { %v7893_v61 = vadd.f32 %v7644_v32, %v1120_v19  ;;  %v1123_v51 = vadd.f32 %v7641_v2, %v1122_v54 }
 0x18e   : > { %v7897_v18 = vadd.f32 %v7659_v35, %v1131_v25 }
 0x18f   : > { %v7900_v24 = vadd.f32 %v7647_v20, %v1123_v51 }
 0x191   : > { %v5752_v4 = vpop.f32.mrb[68].mxu0 }
 0x192   : > { %v1144_v55 = vadd.f32 %v5752_v4, %v7678_v12  ;;  %v1135_v30 = vpop.f32.mrb[69].mxu0 }
 0x193   : > { %v1136_v10 = vadd.f32 %v7663_v44, %v1135_v30  ;;  %v5753_v46 = vpop.f32.mrb[70].mxu0 }
 0x194   : > { %v7905_v1 = vadd.f32 %v7686_v33, %v1144_v55  ;;  %v1147_v32 = vadd.f32 %v5753_v46, %v7680_v29  ;;  %v1138_v19 = vpop.f32.mrb[71].mxu0 }
 0x195   : > { %v7909_v2 = vadd.f32 %v7668_v23, %v1136_v10  ;;  %v1139_v35 = vadd.f32 %v7665_v8, %v1138_v19 }
 0x196   : > { %v7913_v20 = vadd.f32 %v7689_v41, %v1147_v32 }
 0x197   : > { %v7916_v12 = vadd.f32 %v7671_v15, %v1139_v35 }
 0x199   : > { %v5756_v13 = vpop.f32.mrb[72].mxu0 }
 0x19a   : > { %v1160_v44 = vadd.f32 %v5756_v13, %v7705_v42  ;;  %v1151_v60 = vpop.f32.mrb[73].mxu0 }
 0x19b   : > { %v1152_v33 = vadd.f32 %v7695_v57, %v1151_v60  ;;  %v5757_v25 = vpop.f32.mrb[74].mxu0 }
 0x19c   : > { %v7921_v29 = vadd.f32 %v7710_v43, %v1160_v44  ;;  %v1163_v23 = vadd.f32 %v5757_v25, %v7707_v56  ;;  %v1154_v54 = vpop.f32.mrb[75].mxu0 }
 0x19d   : > { %v7925_v8 = vadd.f32 %v7700_v40, %v1152_v33  ;;  %v1155_v41 = vadd.f32 %v7697_v38, %v1154_v54  ;;  %v9250_v33 = vld [vmem:[#allocation17_spill] sm:$0xff] }
 0x19e   : > { %v7929_v15 = vadd.f32 %v7713_v11, %v1163_v23  ;;  %v9251_v23 = vld [vmem:[#allocation14_spill] sm:$0xff] }
 0x19f   : > { %v7932_v42 = vadd.f32 %v7703_v36, %v1155_v41 }
 0x1a1   : > { %v5760_v51 = vpop.f32.mrb[76].mxu0 }
 0x1a2   : > { %v1176_v57 = vadd.f32 %v5760_v51, %v7725_v47  ;;  %v1167_v4 = vpop.f32.mrb[77].mxu0 }
 0x1a3   : > { %v1168_v43 = vadd.f32 %v7715_v63, %v1167_v4  ;;  %v5761_v55 = vpop.f32.mrb[78].mxu0 }
 0x1a4   : > { %v7937_v56 = vadd.f32 %v7730_v14, %v1176_v57  ;;  %v1179_v40 = vadd.f32 %v5761_v55, %v7727_v49  ;;  %v1170_v30 = vpop.f32.mrb[79].mxu0 }
 0x1a5   : > { %v7941_v38 = vadd.f32 %v7720_v59, %v1168_v43  ;;  %v1171_v11 = vadd.f32 %v7717_v53, %v1170_v30 }
 0x1a6   : > { %v7945_v36 = vadd.f32 %v7739_v39, %v1179_v40 }
 0x1a7   : > { %v7948_v47 = vadd.f32 %v7723_v6, %v1171_v11  ;;  %v9257_v11 = vld [vmem:[#allocation21_spill] sm:$0xff] }
 0x1a9   : > { %v5764_v10 = vpop.f32.mrb[80].mxu0 }
 0x1aa   : > { %v1192_v63 = vadd.f32 %v5764_v10, %v7772_v62  ;;  %v1183_v46 = vpop.f32.mrb[81].mxu0 }
 0x1ab   : > { %v1184_v14 = vadd.f32 %v7744_v0, %v1183_v46  ;;  %v5765_v32 = vpop.f32.mrb[82].mxu0  ;;  %v7969_v0 = vld [vmem:[%s9096_s3 + $0x80] sm:$0xff]  }
 0x1ac   : > { %v7953_v49 = vadd.f32 %v7783_v28, %v1192_v63  ;;  %v1195_v59 = vadd.f32 %v5765_v32, %v7777_v16  ;;  %v1186_v19 = vpop.f32.mrb[83].mxu0  ;;  %5922 = vmatprep.subr.bf16.mxu1 %v7969_v0  ;;  %v9258_v63 = vld [vmem:[#allocation47_spill] sm:$0xff] }
 0x1ad   : > { %v7957_v53 = vadd.f32 %v7755_v48, %v1184_v14  ;;  %v1187_v39 = vadd.f32 %v7749_v27, %v1186_v19  ;;  %v9259_v14 = vld [vmem:[#allocation23_spill] sm:$0xff] }
 0x1ae   : > { %v7961_v6 = vadd.f32 %v7792_v5, %v1195_v59 }
 0x1af   : > { %v7964_v62 = vadd.f32 %v7764_v31, %v1187_v39 }
 0x1b1   : > { %v5768_v28 = vpop.f32.mrb[84].mxu0 }
 0x1b2   : > { %v1208_v16 = vadd.f32 %v5768_v28, %v7833_v22  ;;  %v1199_v48 = vpop.f32.mrb[85].mxu0  ;;  %v9260_v28 = vld [vmem:[#allocation48_spill] sm:$0xff] }
 0x1b3   : > { %v1200_v35 = vadd.f32 %v7800_v37, %v1199_v48  ;;  %v5769_v27 = vpop.f32.mrb[86].mxu0  ;;  %v9252_v37 = vld [vmem:[#allocation26_spill] sm:$0xff] }
 0x1b4   : > { %v7975_v5 = vadd.f32 %v7844_v58, %v1208_v16  ;;  %v1211_v31 = vadd.f32 %v5769_v27, %v7838_v21  ;;  %v1202_v13 = vpop.f32.mrb[87].mxu0  ;;  %v9253_v58 = vld [vmem:[#allocation18_spill] sm:$0xff] }
 0x1b5   : > { %v7979_v44 = vadd.f32 %v7814_v9, %v1200_v35  ;;  %v1203_v60 = vadd.f32 %v7808_v34, %v1202_v13  ;;  %v9254_v21 = vld [vmem:[#allocation46_spill] sm:$0xff]  ;;  %v9255_v9 = vld [vmem:[#allocation45_spill] sm:$0xff] }
 0x1b6   : > { %v7983_v25 = vadd.f32 %v9250_v33, %v1211_v31  ;;  %v9256_v34 = vld [vmem:[#allocation22_spill] sm:$0xff] }
 0x1b7   : > { %v7986_v22 = vadd.f32 %v9251_v23, %v1203_v60  ;;  %v9261_v23 = vld [vmem:[#allocation49_spill] sm:$0xff] }
 0x1b9   : > { %v5772_v54 = vpop.f32.mrb[88].mxu0 }
 0x1ba   : > { %v1224_v41 = vadd.f32 %v5772_v54, %v9252_v37  ;;  %v1215_v51 = vpop.f32.mrb[89].mxu0 }
 0x1bb   : > { %v1216_v57 = vadd.f32 %v9253_v58, %v1215_v51  ;;  %v5773_v4 = vpop.f32.mrb[90].mxu0 }
 0x1bc   : > { %v7991_v43 = vadd.f32 %v9254_v21, %v1224_v41  ;;  %v1227_v55 = vadd.f32 %v5773_v4, %v9255_v9  ;;  %v1218_v40 = vpop.f32.mrb[91].mxu0 }
 0x1bd   : > { %v7995_v30 = vadd.f32 %v9256_v34, %v1216_v57  ;;  %v1219_v10 = vadd.f32 %v9257_v11, %v1218_v40 }
 0x1be   : > { %v7999_v46 = vadd.f32 %v9258_v63, %v1227_v55 }
 0x1bf   : > { %v8002_v32 = vadd.f32 %v9259_v14, %v1219_v10 }
 0x1c1   : > { %v5776_v59 = vpop.f32.mrb[92].mxu0 }
 0x1c2   : > { %v1240_v19 = vadd.f32 %v5776_v59, %v7878_v52  ;;  %v1231_v39 = vpop.f32.mrb[93].mxu0  ;;  %v6482_v52 = vld [vmem:[%s9096_s3 + $0x40] sm:$0xff]  }
 0x1c3   : > { %v1232_v16 = vadd.f32 %v9260_v28, %v1231_v39  ;;  %v5777_v48 = vpop.f32.mrb[94].mxu0  ;;  %5458 = vmatprep.subr.bf16.mxu0 %v6482_v52 }
 0x1c4   : > { %v8007_v35 = vadd.f32 %v7882_v17, %v1240_v19  ;;  %v1243_v27 = vadd.f32 %v5777_v48, %v7880_v7  ;;  %v1234_v31 = vpop.f32.mrb[95].mxu0 }
 0x1c5   : > { %v8011_v13 = vadd.f32 %v7874_v3, %v1232_v16  ;;  %v1235_v60 = vadd.f32 %v7872_v26, %v1234_v31 }
 0x1c6   : > { %v8015_v33 = vadd.f32 %v7884_v50, %v1243_v27  ;;  %v8027_v50 = vld [vmem:[%s9095_s2] ss:$0 sm:$0xff] }
 0x1c7   : > { %v8021_v54 = vadd.f32 %v9261_v23, %v1235_v60 }
 0x1c9   : > { %v5202_v17 = vpop.f32.mrb[96].mxu0 }
 0x1ca   : > { %v5203_v37 = vpop.f32.mrb[97].mxu0 }
 0x1cb   : > { %v5204_v7 = vadd.f32 %v5203_v37, %v5202_v17  ;;  %v5205_v41 = vpop.f32.mrb[98].mxu0  ;;  %v5844_v51 = vpop.f32.mrb[64].mxu1 }
 0x1cc   : > { %v5206_v3 = vpop.f32.mrb[99].mxu0  ;;  %v2100_v58 = vpop.f32.mrb[65].mxu1 }
 0x1cd   : > { %v6024_v26 = vadd.f32 %v5204_v7, %v7893_v61  ;;  %v5207_v57 = vadd.f32 %v5206_v3, %v5205_v41  ;;  %v5845_v4 = vpop.f32.mrb[66].mxu1 }
 0x1ce   : > { %v2103_v9 = vpop.f32.mrb[67].mxu1 }
 0x1cf   : > { %v6025_v21 = vadd.f32 %v6024_v26, %v2100_v58  ;;  %v6032_v55 = vadd.f32 %v5207_v57, %v7900_v24 }
 0x1d1   : > { %v2266_v40 = vadd.f32 %v6025_v21, %v8027_v50  ;;  %v6033_v34 = vadd.f32 %v6032_v55, %v2103_v9  ;;  %v5208_v11 = vpop.f32.mrb[100].mxu0 }
 0x1d2   : > { %v5209_v10 = vpop.f32.mrb[101].mxu0 }
 0x1d3   : > { %v2298_v63 = vmax.f32 %v2266_v40, 0.0  ;;  %v2267_v14 = vadd.f32 %v6033_v34, %v8027_v50  ;;  %v5210_v61 = vadd.f32 %v5209_v10, %v5208_v11  ;;  %v5211_v59 = vpop.f32.mrb[102].mxu0  ;;  %v8032_v19 = vpop.f32.mrb[68].mxu1 }
 0x1d4   : > { %v5212_v39 = vpop.f32.mrb[103].mxu0  ;;  %v2116_v48 = vpop.f32.mrb[69].mxu1 }
 0x1d5   : > { %2331 = vst [vmem:[#allocation2 + $0x19] sm:$0xff] %v2298_v63  ;;  %v2299_v28 = vmax.f32 %v2267_v14, 0.0  ;;  %v6020_v16 = vadd.f32 %v5210_v61, %v7889_v45  ;;  %v5213_v27 = vadd.f32 %v5212_v39, %v5211_v59  ;;  %v8035_v24 = vpop.f32.mrb[70].mxu1 }
 0x1d6   : > { %v2119_v52 = vpop.f32.mrb[71].mxu1 }
 0x1d7   : > { %2332 = vst [vmem:[#allocation2 + $0x21] sm:$0xff] %v2299_v28  ;;  %v6021_v31 = vadd.f32 %v6020_v16, %v5844_v51  ;;  %v6028_v60 = vadd.f32 %v5213_v27, %v7897_v18 }
 0x1d9   : > { %v2268_v23 = vadd.f32 %v6021_v31, %v8027_v50  ;;  %v6029_v17 = vadd.f32 %v6028_v60, %v5845_v4  ;;  %v5214_v37 = vpop.f32.mrb[104].mxu0 }
 0x1da   : > { %v5215_v7 = vpop.f32.mrb[105].mxu0 }
 0x1db   : > { %v2300_v41 = vmax.f32 %v2268_v23, 0.0  ;;  %v2269_v3 = vadd.f32 %v6029_v17, %v8027_v50  ;;  %v5216_v58 = vadd.f32 %v5215_v7, %v5214_v37  ;;  %v5217_v26 = vpop.f32.mrb[106].mxu0  ;;  %v8040_v45 = vpop.f32.mrb[72].mxu1 }
 0x1dc   : > { %v5218_v57 = vpop.f32.mrb[107].mxu0  ;;  %v2366_v21 = vld [vmem:[#allocation2 + $0x18] sm:$0xff]  ;;  %v8043_v18 = vpop.f32.mrb[73].mxu1 }
 0x1dd   : > { %2333 = vst [vmem:[#allocation2 + $0x31] sm:$0xff] %v2300_v41  ;;  %v2301_v9 = vmax.f32 %v2269_v3, 0.0  ;;  %v6040_v51 = vadd.f32 %v5216_v58, %v7909_v2  ;;  %v5219_v55 = vadd.f32 %v5218_v57, %v5217_v26  ;;  %v8045_v40 = vpop.f32.mrb[74].mxu1  ;;  %v2476_v11 = vrot.slane %v2366_v21, 1  ;;  %v6483_v41 = vld [vmem:[%s9096_s3] sm:$0xff]  }
 0x1de   : > { %v2367_v4 = vld [vmem:[#allocation2 + $0x20] sm:$0xff]  ;;  %v2368_v34 = vld [vmem:[#allocation2 + $0x28] sm:$0x3]  ;;  %v8048_v14 = vpop.f32.mrb[75].mxu1  ;;  %v2602_v39 = vrot.slane %v2366_v21, 2 }
 0x1df   : > { %2334 = vst [vmem:[#allocation2 + $0x39] sm:$0xff] %v2301_v9  ;;  %v6041_v10 = vadd.f32 %v6040_v51, %v2116_v48  ;;  %v6048_v63 = vadd.f32 %v5219_v55, %v7916_v12  ;;  %v2477_v61 = vrot.slane %v2367_v4, 1  ;;  %v2479_v59 = vrot.slane %v2368_v34, 1  ;;  %v6484_v9 = vld [vmem:[%s9096_s3 + $0x48] sm:$0xff]  }
 0x1e0   : > { %v2603_v28 = vrot.slane %v2367_v4, 2  ;;  %v2605_v16 = vrot.slane %v2368_v34, 2  ;;  %v8057_v7 = vpack.c.bf16 %v2367_v4, %v2366_v21 }
 0x1e1   : > { %v2270_v2 = vadd.f32 %v6041_v10, %v8027_v50  ;;  %v6049_v27 = vadd.f32 %v6048_v63, %v2119_v52  ;;  %v5220_v31 = vpop.f32.mrb[108].mxu0  ;;  %v2478_v60 = vsel %vm375_vm0, %v2476_v11, %v2477_v61  ;;  %v2480_v23 = vsel %vm375_vm0, %v2477_v61, %v2479_v59 }
 0x1e2   : > { %v5221_v17 = vpop.f32.mrb[109].mxu0  ;;  %v8053_v37 = vpack.c.bf16 %v2480_v23, %v2478_v60  ;;  %v2604_v12 = vsel %vm502_vm1, %v2602_v39, %v2603_v28  ;;  %v2606_v48 = vsel %vm502_vm1, %v2603_v28, %v2605_v16  ;;  %v6485_v28 = vld [vmem:[%s9096_s3 + $0x8] sm:$0xff]   ;;  %v6487_v60 = vld [vmem:[%s9096_s3 + $0x50] sm:$0xff]  }
 0x1e3   : > { %v2302_v3 = vmax.f32 %v2270_v2, 0.0  ;;  %v2271_v52 = vadd.f32 %v6049_v27, %v8027_v50  ;;  %v5222_v58 = vadd.f32 %v5221_v17, %v5220_v31  ;;  %v5223_v26 = vpop.f32.mrb[110].mxu0  ;;  %v8063_v57 = vpack.c.bf16 %v2606_v48, %v2604_v12  ;;  %v8068_v51 = vpop.f32.mrb[76].mxu1 }
 0x1e4   : > { %v5224_v55 = vpop.f32.mrb[111].mxu0  ;;  %3050 = vmatprep.mubr.bf16.mxu0 %v8053_v37  ;;  %v2369_v21 = vld [vmem:[#allocation2 + $0x30] sm:$0xff]  ;;  %v8072_v11 = vpop.f32.mrb[77].mxu1 }
 0x1e5   : > { %2335 = vst [vmem:[#allocation2 + $0x49] sm:$0xff] %v2302_v3  ;;  %v2303_v4 = vmax.f32 %v2271_v52, 0.0  ;;  %v6036_v34 = vadd.f32 %v5222_v58, %v7905_v1  ;;  %v5225_v10 = vadd.f32 %v5224_v55, %v5223_v26  ;;  %5890 = vmatprep.mubr.bf16.mxu1 %v8063_v57  ;;  %3051 = vmatmul.mubr.bf16.vlgmr.msra.gmra.mrb[160].mxu0 %v8057_v7  ;;  %v8076_v63 = vpop.f32.mrb[78].mxu1  ;;  %v2481_v39 = vrot.slane %v2369_v21, 1 }
 0x1e6   : > { %v2370_v61 = vld [vmem:[#allocation2 + $0x38] sm:$0xff]  ;;  %v2371_v59 = vld [vmem:[#allocation2 + $0x40] sm:$0x3]  ;;  %5459 = vmatpush3.bf16.msra.mxu0 %v6483_v41  ;;  %v8083_v2 = vpop.f32.mrb[79].mxu1  ;;  %v2607_v23 = vrot.slane %v2369_v21, 2 }
 0x1e7   : > { %2336 = vst [vmem:[#allocation2 + $0x51] sm:$0xff] %v2303_v4  ;;  %v6037_v1 = vadd.f32 %v6036_v34, %v8032_v19  ;;  %v6044_v16 = vadd.f32 %v5225_v10, %v7913_v20  ;;  %v2482_v27 = vrot.slane %v2370_v61, 1  ;;  %v2484_v31 = vrot.slane %v2371_v59, 1  ;;  %5460 = vmatprep.subr.bf16.mxu0 %v6484_v9  ;;  %v6488_v4 = vld [vmem:[%s9096_s3 + $0x10] sm:$0xff]  }
 0x1e8   : > { %v2608_v17 = vrot.slane %v2370_v61, 2  ;;  %v2610_v12 = vrot.slane %v2371_v59, 2  ;;  %v8096_v55 = vpack.c.bf16 %v2370_v61, %v2369_v21  ;;  %v6489_v21 = vld [vmem:[%s9096_s3 + $0x58] sm:$0xff]  }
 0x1e9   : > { %v2272_v48 = vadd.f32 %v6037_v1, %v8027_v50  ;;  %v6045_v41 = vadd.f32 %v6044_v16, %v8035_v24  ;;  %v5226_v3 = vpop.f32.mrb[112].mxu0  ;;  %v2483_v19 = vsel %vm375_vm0, %v2481_v39, %v2482_v27  ;;  %v2485_v20 = vsel %vm375_vm0, %v2482_v27, %v2484_v31  ;;  %v6478_v1 = vld [vmem:[%s9096_s3 + $0x88] sm:$0xff]  }
 0x1ea   : > { %v5227_v52 = vpop.f32.mrb[113].mxu0  ;;  %v8092_v58 = vpack.c.bf16 %v2485_v20, %v2483_v19  ;;  %v2609_v26 = vsel %vm502_vm1, %v2607_v23, %v2608_v17  ;;  %v2611_v9 = vsel %vm502_vm1, %v2608_v17, %v2610_v12  ;;  %9263 = vst [vmem:[#allocation14_spill] sm:$0xff] %v8096_v55  ;;  %5461 = vmatpush3.bf16.msra.mxu0 %v6485_v28 }
 0x1eb   : > { %v2304_v24 = vmax.f32 %v2272_v48, 0.0  ;;  %v2273_v34 = vadd.f32 %v6045_v41, %v8027_v50  ;;  %v5228_v10 = vadd.f32 %v5227_v52, %v5226_v3  ;;  %v5229_v59 = vpop.f32.mrb[114].mxu0  ;;  %v8102_v39 = vpack.c.bf16 %v2611_v9, %v2609_v26  ;;  %5462 = vmatprep.subr.bf16.mxu0 %v6487_v60  ;;  %v8110_v61 = vpop.f32.mrb[80].mxu1  ;;  %v6490_v3 = vld [vmem:[%s9096_s3 + $0x18] sm:$0xff]   ;;  %v6479_v9 = vld [vmem:[%s9096_s3 + $0x90] sm:$0xff]  }
 0x1ec   : > { %9262 = vst [vmem:[#allocation17_spill] sm:$0xff] %v8092_v58  ;;  %v5230_v28 = vpop.f32.mrb[115].mxu0  ;;  %3058 = vmatprep.mubr.bf16.mxu0 %v8092_v58  ;;  %v2372_v16 = vld [vmem:[#allocation2 + $0x48] sm:$0xff]  ;;  %v8114_v23 = vpop.f32.mrb[81].mxu1 }
 0x1ed   : > { %2337 = vst [vmem:[#allocation2 + $0x61] sm:$0xff] %v2304_v24  ;;  %v2305_v27 = vmax.f32 %v2273_v34, 0.0  ;;  %v6056_v31 = vadd.f32 %v5228_v10, %v7925_v8  ;;  %v5231_v17 = vadd.f32 %v5230_v28, %v5229_v59  ;;  %5891 = vmatmul.mubr.bf16.vlgmr.msra.gmra.mrb[96].mxu1 %v8102_v39  ;;  %3059 = vmatmul.mubr.bf16.gmra.mrb[164].mxu0 %v8096_v55  ;;  %v8118_v60 = vpop.f32.mrb[82].mxu1  ;;  %v2486_v41 = vrot.slane %v2372_v16, 1 }
 0x1ee   : > { %v2373_v12 = vld [vmem:[#allocation2 + $0x50] sm:$0xff]  ;;  %v2374_v48 = vld [vmem:[#allocation2 + $0x58] sm:$0x3]  ;;  %5923 = vmatpush3.bf16.msra.mxu1 %v7969_v0  ;;  %5463 = vmatpush3.bf16.msra.mxu0 %v6488_v4  ;;  %v8126_v20 = vpop.f32.mrb[83].mxu1  ;;  %v6492_v0 = vld [vmem:[%s9096_s3 + $0x60] sm:$0xff]   ;;  %v2612_v4 = vrot.slane %v2372_v16, 2 }
 0x1ef   : > { %2338 = vst [vmem:[#allocation2 + $0x69] sm:$0xff] %v2305_v27  ;;  %v6057_v8 = vadd.f32 %v6056_v31, %v8043_v18  ;;  %v6064_v19 = vadd.f32 %v5231_v17, %v7932_v42  ;;  %v2487_v52 = vrot.slane %v2373_v12, 1  ;;  %v2489_v26 = vrot.slane %v2374_v48, 1  ;;  %5924 = vmatprep.subr.bf16.mxu1 %v6478_v1  ;;  %5464 = vmatprep.subr.bf16.mxu0 %v6489_v21 }
 0x1f0   : > { %v2613_v24 = vrot.slane %v2373_v12, 2  ;;  %v2615_v34 = vrot.slane %v2374_v48, 2  ;;  %v8134_v18 = vpack.c.bf16 %v2373_v12, %v2372_v16  ;;  %v6493_v16 = vld [vmem:[%s9096_s3 + $0x20] sm:$0xff]  }
 0x1f1   : > { %v2274_v42 = vadd.f32 %v6057_v8, %v8027_v50  ;;  %v6065_v10 = vadd.f32 %v6064_v19, %v8048_v14  ;;  %v5232_v59 = vpop.f32.mrb[116].mxu0  ;;  %v2488_v28 = vsel %vm375_vm0, %v2486_v41, %v2487_v52  ;;  %v2490_v27 = vsel %vm375_vm0, %v2487_v52, %v2489_v26  ;;  %v6480_v19 = vld [vmem:[%s9096_s3 + $0x98] sm:$0xff]  }
 0x1f2   : > { %9264 = vst [vmem:[#allocation26_spill] sm:$0xff] %v8134_v18  ;;  %v5233_v31 = vpop.f32.mrb[117].mxu0  ;;  %v8140_v21 = vpack.c.bf16 %v2490_v27, %v2488_v28  ;;  %v2614_v17 = vsel %vm502_vm1, %v2612_v4, %v2613_v24  ;;  %v2616_v55 = vsel %vm502_vm1, %v2613_v24, %v2615_v34  ;;  %5925 = vmatpush3.bf16.msra.mxu1 %v6478_v1  ;;  %v6494_v1 = vld [vmem:[%s9096_s3 + $0x68] sm:$0xff]  }
 0x1f3   : > { %5465 = vmatpush3.bf16.msra.mxu0 %v6490_v3  ;;  %v2306_v12 = vmax.f32 %v2274_v42, 0.0  ;;  %v2275_v14 = vadd.f32 %v6065_v10, %v8027_v50  ;;  %v5234_v48 = vadd.f32 %v5233_v31, %v5232_v59  ;;  %v5235_v41 = vpop.f32.mrb[118].mxu0  ;;  %v8148_v8 = vpack.c.bf16 %v2616_v55, %v2614_v17  ;;  %5926 = vmatprep.subr.bf16.mxu1 %v6479_v9  ;;  %v8156_v3 = vpop.f32.mrb[84].mxu1  ;;  %v6495_v28 = vld [vmem:[%s9096_s3 + $0x28] sm:$0xff]  }
 0x1f4   : > { %9265 = vst [vmem:[#allocation18_spill] sm:$0xff] %v8140_v21  ;;  %5466 = vmatprep.subr.bf16.mxu0 %v6492_v0  ;;  %v5236_v52 = vpop.f32.mrb[119].mxu0  ;;  %3066 = vmatprep.mubr.bf16.mxu0 %v8140_v21  ;;  %v2375_v26 = vld [vmem:[#allocation2 + $0x60] sm:$0xff]  ;;  %v8160_v24 = vpop.f32.mrb[85].mxu1 }
 0x1f5   : > { %2339 = vst [vmem:[#allocation2 + $0x79] sm:$0xff] %v2306_v12  ;;  %v2307_v4 = vmax.f32 %v2275_v14, 0.0  ;;  %v6052_v55 = vadd.f32 %v5234_v48, %v7921_v29  ;;  %v5237_v34 = vadd.f32 %v5236_v52, %v5235_v41  ;;  %5894 = vmatprep.mubr.bf16.mxu1 %v8148_v8  ;;  %3067 = vmatmul.mubr.bf16.gmra.mrb[168].mxu0 %v8134_v18  ;;  %v8164_v0 = vpop.f32.mrb[86].mxu1  ;;  %v2491_v59 = vrot.slane %v2375_v26, 1  ;;  %v6481_v14 = vld [vmem:[%s9096_s3 + $0xa0] sm:$0xff]  }
 0x1f6   : > { %v2376_v42 = vld [vmem:[#allocation2 + $0x68] sm:$0xff]  ;;  %v2377_v10 = vld [vmem:[#allocation2 + $0x70] sm:$0x3]  ;;  %5927 = vmatpush3.bf16.msra.mxu1 %v6479_v9  ;;  %v8171_v31 = vpop.f32.mrb[87].mxu1 }
 0x1f7   : > { %5467 = vmatpush3.bf16.msra.mxu0 %v6493_v16  ;;  %2340 = vst [vmem:[#allocation2 + $0x81] sm:$0xff] %v2307_v4  ;;  %v6053_v29 = vadd.f32 %v6052_v55, %v8040_v45  ;;  %v6060_v27 = vadd.f32 %v5237_v34, %v7929_v15  ;;  %v2492_v17 = vrot.slane %v2376_v42, 1  ;;  %v2494_v12 = vrot.slane %v2377_v10, 1  ;;  %5928 = vmatprep.subr.bf16.mxu1 %v6480_v19  ;;  %v6497_v9 = vld [vmem:[%s9096_s3 + $0x70] sm:$0xff]  }
 0x1f8   : > { %5468 = vmatprep.subr.bf16.mxu0 %v6494_v1  ;;  %v2617_v16 = vrot.slane %v2375_v26, 2  ;;  %v2618_v48 = vrot.slane %v2376_v42, 2  ;;  %v2620_v41 = vrot.slane %v2377_v10, 2  ;;  %v8179_v45 = vpack.c.bf16 %v2376_v42, %v2375_v26  ;;  %v6498_v26 = vld [vmem:[%s9096_s3 + $0x30] sm:$0xff]  }
 0x1f9   : > { %v2276_v15 = vadd.f32 %v6053_v29, %v8027_v50  ;;  %v6061_v52 = vadd.f32 %v6060_v27, %v8045_v40  ;;  %v5238_v4 = vpop.f32.mrb[120].mxu0  ;;  %v2493_v55 = vsel %vm375_vm0, %v2491_v59, %v2492_v17  ;;  %v2495_v34 = vsel %vm375_vm0, %v2492_v17, %v2494_v12  ;;  %v6486_v27 = vld [vmem:[%s9096_s3 + $0xa8] sm:$0xff]  }
 0x1fa   : > { %9266 = vst [vmem:[#allocation46_spill] sm:$0xff] %v8179_v45  ;;  %v5239_v18 = vpop.f32.mrb[121].mxu0  ;;  %v8185_v1 = vpack.c.bf16 %v2495_v34, %v2493_v55  ;;  %v2619_v21 = vsel %vm502_vm1, %v2617_v16, %v2618_v48  ;;  %v2621_v58 = vsel %vm502_vm1, %v2618_v48, %v2620_v41  ;;  %5929 = vmatpush3.bf16.msra.mxu1 %v6480_v19  ;;  %v6499_v19 = vld [vmem:[%s9096_s3 + $0x78] sm:$0xff]  }
 0x1fb   : > { %5469 = vmatpush3.bf16.msra.mxu0 %v6495_v28  ;;  %v2308_v42 = vmax.f32 %v2276_v15, 0.0  ;;  %v2277_v40 = vadd.f32 %v6061_v52, %v8027_v50  ;;  %v5240_v10 = vadd.f32 %v5239_v18, %v5238_v4  ;;  %v5241_v59 = vpop.f32.mrb[122].mxu0  ;;  %v8193_v29 = vpack.c.bf16 %v2621_v58, %v2619_v21  ;;  %5930 = vmatprep.subr.bf16.mxu1 %v6481_v14  ;;  %v8201_v28 = vpop.f32.mrb[88].mxu1  ;;  %v6500_v52 = vld [vmem:[%s9096_s3 + $0x38] sm:$0xff]  }
 0x1fc   : > { %9267 = vst [vmem:[#allocation45_spill] sm:$0xff] %v8185_v1  ;;  %5470 = vmatprep.subr.bf16.mxu0 %v6497_v9  ;;  %v5242_v17 = vpop.f32.mrb[123].mxu0  ;;  %3074 = vmatprep.mubr.bf16.mxu0 %v8185_v1  ;;  %v2378_v12 = vld [vmem:[#allocation2 + $0x78] sm:$0xff]  ;;  %v8205_v21 = vpop.f32.mrb[89].mxu1 }
 0x1fd   : > { %2341 = vst [vmem:[#allocation2 + $0x91] sm:$0xff] %v2308_v42  ;;  %v2309_v18 = vmax.f32 %v2277_v40, 0.0  ;;  %v6072_v58 = vadd.f32 %v5240_v10, %v7941_v38  ;;  %v5243_v16 = vadd.f32 %v5242_v17, %v5241_v59  ;;  %5895 = vmatmul.mubr.bf16.gmra.mrb[100].mxu1 %v8193_v29  ;;  %3075 = vmatmul.mubr.bf16.gmra.mrb[172].mxu0 %v8179_v45  ;;  %v8209_v9 = vpop.f32.mrb[90].mxu1  ;;  %v2496_v15 = vrot.slane %v2378_v12, 1  ;;  %v6491_v40 = vld [vmem:[%s9096_s3 + $0xb0] sm:$0xff]  }
 0x1fe   : > { %v2379_v48 = vld [vmem:[#allocation2 + $0x80] sm:$0xff]  ;;  %v2380_v41 = vld [vmem:[#allocation2 + $0x88] sm:$0x3]  ;;  %5931 = vmatpush3.bf16.msra.mxu1 %v6481_v14  ;;  %v8216_v55 = vpop.f32.mrb[91].mxu1  ;;  %v2622_v14 = vrot.slane %v2378_v12, 2 }
 0x1ff   : > { %5471 = vmatpush3.bf16.msra.mxu0 %v6498_v26  ;;  %2342 = vst [vmem:[#allocation2 + $0x99] sm:$0xff] %v2309_v18  ;;  %v6073_v38 = vadd.f32 %v6072_v58, %v8072_v11  ;;  %v6080_v4 = vadd.f32 %v5243_v16, %v7948_v47  ;;  %v2497_v34 = vrot.slane %v2379_v48, 1  ;;  %v2499_v42 = vrot.slane %v2380_v41, 1  ;;  %5932 = vmatprep.subr.bf16.mxu1 %v6486_v27 }
 0x200   : > { %5472 = vmatprep.subr.bf16.mxu0 %v6499_v19  ;;  %v2623_v26 = vrot.slane %v2379_v48, 2  ;;  %v2625_v10 = vrot.slane %v2380_v41, 2  ;;  %v8221_v59 = vpack.c.bf16 %v2379_v48, %v2378_v12 }
 0x201   : > { %v2278_v17 = vadd.f32 %v6073_v38, %v8027_v50  ;;  %v6081_v11 = vadd.f32 %v6080_v4, %v8083_v2  ;;  %v5244_v47 = vpop.f32.mrb[124].mxu0  ;;  %v2498_v18 = vsel %vm375_vm0, %v2496_v15, %v2497_v34  ;;  %v2500_v58 = vsel %vm375_vm0, %v2497_v34, %v2499_v42  ;;  %v6496_v15 = vld [vmem:[%s9096_s3 + $0xb8] sm:$0xff]  }
 0x202   : > { %9268 = vst [vmem:[#allocation22_spill] sm:$0xff] %v8221_v59  ;;  %v5245_v16 = vpop.f32.mrb[125].mxu0  ;;  %v8227_v45 = vpack.c.bf16 %v2500_v58, %v2498_v18  ;;  %v2624_v1 = vsel %vm502_vm1, %v2622_v14, %v2623_v26  ;;  %v2626_v19 = vsel %vm502_vm1, %v2623_v26, %v2625_v10  ;;  %5933 = vmatpush3.bf16.msra.mxu1 %v6486_v27 }
 0x203   : > { %5473 = vmatpush3.bf16.msra.mxu0 %v6500_v52  ;;  %v2310_v12 = vmax.f32 %v2278_v17, 0.0  ;;  %v2279_v48 = vadd.f32 %v6081_v11, %v8027_v50  ;;  %v5246_v41 = vadd.f32 %v5245_v16, %v5244_v47  ;;  %v5247_v38 = vpop.f32.mrb[126].mxu0  ;;  %v8232_v2 = vpack.c.bf16 %v2626_v19, %v2624_v1  ;;  %5934 = vmatprep.subr.bf16.mxu1 %v6491_v40  ;;  %v8237_v4 = vpop.f32.mrb[92].mxu1  ;;  %v6501_v19 = vld [vmem:[%s9096_s3 + $0x1c0] sm:$0xff]  }
 0x204   : > { %9269 = vst [vmem:[#allocation21_spill] sm:$0xff] %v8227_v45  ;;  %v5248_v34 = vpop.f32.mrb[127].mxu0  ;;  %3082 = vmatprep.mubr.bf16.mxu0 %v8227_v45  ;;  %v2381_v42 = vld [vmem:[#allocation2 + $0x90] sm:$0xff]  ;;  %v8241_v14 = vpop.f32.mrb[93].mxu1 }
 0x205   : > { %9270 = vst [vmem:[#allocation47_spill] sm:$0xff] %v8232_v2  ;;  %2343 = vst [vmem:[#allocation2 + $0xa9] sm:$0xff] %v2310_v12  ;;  %v2311_v27 = vmax.f32 %v2279_v48, 0.0  ;;  %v6068_v52 = vadd.f32 %v5246_v41, %v7937_v56  ;;  %v5249_v26 = vadd.f32 %v5248_v34, %v5247_v38  ;;  %5898 = vmatprep.mubr.bf16.mxu1 %v8232_v2  ;;  %3083 = vmatmul.mubr.bf16.gmra.mrb[176].mxu0 %v8221_v59  ;;  %v8245_v1 = vpop.f32.mrb[94].mxu1 }
 0x206   : > { %v2382_v10 = vld [vmem:[#allocation2 + $0x98] sm:$0xff]  ;;  %v2383_v17 = vld [vmem:[#allocation2 + $0xa0] sm:$0x3]  ;;  %v2501_v11 = vrot.slane %v2381_v42, 1  ;;  %5935 = vmatpush3.bf16.msra.mxu1 %v6491_v40  ;;  %v8249_v58 = vpop.f32.mrb[95].mxu1  ;;  %v2627_v12 = vrot.slane %v2381_v42, 2 }
 0x207   : > { %2344 = vst [vmem:[#allocation2 + $0xb1] sm:$0xff] %v2311_v27  ;;  %v6069_v47 = vadd.f32 %v6068_v52, %v8068_v51  ;;  %v6076_v18 = vadd.f32 %v5249_v26, %v7945_v36  ;;  %v2502_v56 = vrot.slane %v2382_v10, 1  ;;  %v2504_v16 = vrot.slane %v2383_v17, 1  ;;  %5936 = vmatprep.subr.bf16.mxu1 %v6496_v15 }
 0x208   : > { %v2628_v48 = vrot.slane %v2382_v10, 2  ;;  %v2630_v41 = vrot.slane %v2383_v17, 2  ;;  %v8262_v45 = vpack.c.bf16 %v2382_v10, %v2381_v42 }
 0x209   : > { %v2280_v38 = vadd.f32 %v6069_v47, %v8027_v50  ;;  %v6077_v40 = vadd.f32 %v6076_v18, %v8076_v63  ;;  %v5250_v34 = vpop.f32.mrb[128].mxu0  ;;  %v2503_v51 = vsel %vm375_vm0, %v2501_v11, %v2502_v56  ;;  %v2505_v36 = vsel %vm375_vm0, %v2502_v56, %v2504_v16 }
 0x20a   : > { %v5251_v27 = vpop.f32.mrb[129].mxu0  ;;  %v8258_v52 = vpack.c.bf16 %v2505_v36, %v2503_v51  ;;  %v2629_v26 = vsel %vm502_vm1, %v2627_v12, %v2628_v48  ;;  %v2631_v59 = vsel %vm502_vm1, %v2628_v48, %v2630_v41  ;;  %5937 = vmatpush3.bf16.msra.mxu1 %v6496_v15 }
 0x20b   : > { %v2312_v17 = vmax.f32 %v2280_v38, 0.0  ;;  %v2281_v47 = vadd.f32 %v6077_v40, %v8027_v50  ;;  %v5252_v2 = vadd.f32 %v5251_v27, %v5250_v34  ;;  %v5253_v63 = vpop.f32.mrb[130].mxu0  ;;  %v8265_v18 = vpack.c.bf16 %v2631_v59, %v2629_v26  ;;  %5594 = vmatprep.subr.bf16.mxu1 %v6501_v19 }
 0x20c   : > { %v5254_v11 = vpop.f32.mrb[131].mxu0  ;;  %3090 = vmatprep.mubr.bf16.mxu0 %v8258_v52  ;;  %v2384_v56 = vld [vmem:[#allocation2 + $0xa8] sm:$0xff] }
 0x20d   : > { %2345 = vst [vmem:[#allocation2 + $0xc1] sm:$0xff] %v2312_v17  ;;  %v2313_v16 = vmax.f32 %v2281_v47, 0.0  ;;  %v6088_v12 = vadd.f32 %v5252_v2, %v7957_v53  ;;  %v5255_v48 = vadd.f32 %v5254_v11, %v5253_v63  ;;  %5899 = vmatmul.mubr.bf16.gmra.mrb[104].mxu1 %v8265_v18  ;;  %3091 = vmatmul.mubr.bf16.gmra.mrb[180].mxu0 %v8262_v45  ;;  %v2506_v10 = vrot.slane %v2384_v56, 1 }
 0x20e   : > { %v2385_v15 = vld [vmem:[#allocation2 + $0xb0] sm:$0xff]  ;;  %v2386_v42 = vld [vmem:[#allocation2 + $0xb8] sm:$0x3]  ;;  %v2632_v40 = vrot.slane %v2384_v56, 2 }
 0x20f   : > { %2346 = vst [vmem:[#allocation2 + $0xc9] sm:$0xff] %v2313_v16  ;;  %v6089_v59 = vadd.f32 %v6088_v12, %v8114_v23  ;;  %v6096_v19 = vadd.f32 %v5255_v48, %v7964_v62  ;;  %v2507_v41 = vrot.slane %v2385_v15, 1  ;;  %v2509_v38 = vrot.slane %v2386_v42, 1 }
 0x210   : > { %v2633_v34 = vrot.slane %v2385_v15, 2  ;;  %v2635_v51 = vrot.slane %v2386_v42, 2  ;;  %v8281_v63 = vpack.c.bf16 %v2385_v15, %v2384_v56 }
 0x211   : > { %v2282_v53 = vadd.f32 %v6089_v59, %v8027_v50  ;;  %v6097_v2 = vadd.f32 %v6096_v19, %v8126_v20  ;;  %v5256_v36 = vpop.f32.mrb[132].mxu0  ;;  %v2508_v27 = vsel %vm375_vm0, %v2506_v10, %v2507_v41  ;;  %v2510_v26 = vsel %vm375_vm0, %v2507_v41, %v2509_v38 }
 0x212   : > { %v5257_v17 = vpop.f32.mrb[133].mxu0  ;;  %v8277_v47 = vpack.c.bf16 %v2510_v26, %v2508_v27  ;;  %v2634_v23 = vsel %vm502_vm1, %v2632_v40, %v2633_v34  ;;  %v2636_v62 = vsel %vm502_vm1, %v2633_v34, %v2635_v51 }
 0x213   : > { %v2314_v11 = vmax.f32 %v2282_v53, 0.0  ;;  %v2283_v16 = vadd.f32 %v6097_v2, %v8027_v50  ;;  %v5258_v12 = vadd.f32 %v5257_v17, %v5256_v36  ;;  %v5259_v48 = vpop.f32.mrb[134].mxu0  ;;  %v8284_v20 = vpack.c.bf16 %v2636_v62, %v2634_v23 }
 0x214   : > { %v5260_v42 = vpop.f32.mrb[135].mxu0  ;;  %3098 = vmatprep.mubr.bf16.mxu0 %v8277_v47  ;;  %v2387_v10 = vld [vmem:[#allocation2 + $0xc0] sm:$0xff] }
 0x215   : > { %2347 = vst [vmem:[#allocation2 + $0xd9] sm:$0xff] %v2314_v11  ;;  %v2315_v59 = vmax.f32 %v2283_v16, 0.0  ;;  %v6084_v19 = vadd.f32 %v5258_v12, %v7953_v49  ;;  %v5261_v41 = vadd.f32 %v5260_v42, %v5259_v48  ;;  %5902 = vmatprep.mubr.bf16.mxu1 %v8284_v20  ;;  %3099 = vmatmul.mubr.bf16.gmra.mrb[184].mxu0 %v8281_v63  ;;  %v2511_v38 = vrot.slane %v2387_v10, 1 }
 0x216   : > { %v2388_v56 = vld [vmem:[#allocation2 + $0xc8] sm:$0xff]  ;;  %v2389_v15 = vld [vmem:[#allocation2 + $0xd0] sm:$0x3]  ;;  %v2637_v2 = vrot.slane %v2387_v10, 2 }
 0x217   : > { %2348 = vst [vmem:[#allocation2 + $0xe1] sm:$0xff] %v2315_v59  ;;  %v6085_v40 = vadd.f32 %v6084_v19, %v8110_v61  ;;  %v6092_v34 = vadd.f32 %v5261_v41, %v7961_v6  ;;  %v2512_v51 = vrot.slane %v2388_v56, 1  ;;  %v2514_v53 = vrot.slane %v2389_v15, 1 }
 0x218   : > { %v2638_v36 = vrot.slane %v2388_v56, 2  ;;  %v2640_v27 = vrot.slane %v2389_v15, 2  ;;  %v8300_v12 = vpack.c.bf16 %v2388_v56, %v2387_v10 }
 0x219   : > { %v2284_v49 = vadd.f32 %v6085_v40, %v8027_v50  ;;  %v6093_v26 = vadd.f32 %v6092_v34, %v8118_v60  ;;  %v5262_v17 = vpop.f32.mrb[136].mxu0  ;;  %v2513_v23 = vsel %vm375_vm0, %v2511_v38, %v2512_v51  ;;  %v2515_v62 = vsel %vm375_vm0, %v2512_v51, %v2514_v53 }
 0x21a   : > { %v5263_v11 = vpop.f32.mrb[137].mxu0  ;;  %v8296_v16 = vpack.c.bf16 %v2515_v62, %v2513_v23  ;;  %v2639_v61 = vsel %vm502_vm1, %v2637_v2, %v2638_v36  ;;  %v2641_v6 = vsel %vm502_vm1, %v2638_v36, %v2640_v27 }
 0x21b   : > { %v2316_v48 = vmax.f32 %v2284_v49, 0.0  ;;  %v2285_v42 = vadd.f32 %v6093_v26, %v8027_v50  ;;  %v5264_v59 = vadd.f32 %v5263_v11, %v5262_v17  ;;  %v5265_v19 = vpop.f32.mrb[138].mxu0  ;;  %v8303_v60 = vpack.c.bf16 %v2641_v6, %v2639_v61 }
 0x21c   : > { %v5266_v41 = vpop.f32.mrb[139].mxu0  ;;  %3106 = vmatprep.mubr.bf16.mxu0 %v8296_v16  ;;  %v2390_v15 = vld [vmem:[#allocation2 + $0xd8] sm:$0xff] }
 0x21d   : > { %2349 = vst [vmem:[#allocation2 + $0xf1] sm:$0xff] %v2316_v48  ;;  %v2317_v38 = vmax.f32 %v2285_v42, 0.0  ;;  %v6104_v40 = vadd.f32 %v5264_v59, %v7979_v44  ;;  %v5267_v34 = vadd.f32 %v5266_v41, %v5265_v19  ;;  %5903 = vmatmul.mubr.bf16.gmra.mrb[108].mxu1 %v8303_v60  ;;  %3107 = vmatmul.mubr.bf16.gmra.mrb[188].mxu0 %v8300_v12  ;;  %v2516_v51 = vrot.slane %v2390_v15, 1 }
 0x21e   : > { %v2391_v10 = vld [vmem:[#allocation2 + $0xe0] sm:$0xff]  ;;  %v2392_v56 = vld [vmem:[#allocation2 + $0xe8] sm:$0x3]  ;;  %v2642_v49 = vrot.slane %v2390_v15, 2 }
 0x21f   : > { %2350 = vst [vmem:[#allocation2 + $0xf9] sm:$0xff] %v2317_v38  ;;  %v6105_v53 = vadd.f32 %v6104_v40, %v8160_v24  ;;  %v6112_v2 = vadd.f32 %v5267_v34, %v7986_v22  ;;  %v2517_v36 = vrot.slane %v2391_v10, 1  ;;  %v2519_v27 = vrot.slane %v2392_v56, 1 }
 0x220   : > { %v2643_v26 = vrot.slane %v2391_v10, 2  ;;  %v2645_v17 = vrot.slane %v2392_v56, 2  ;;  %v8319_v42 = vpack.c.bf16 %v2391_v10, %v2390_v15 }
 0x221   : > { %v2286_v44 = vadd.f32 %v6105_v53, %v8027_v50  ;;  %v6113_v23 = vadd.f32 %v6112_v2, %v8171_v31  ;;  %v5268_v62 = vpop.f32.mrb[140].mxu0  ;;  %v2518_v11 = vsel %vm375_vm0, %v2516_v51, %v2517_v36  ;;  %v2520_v61 = vsel %vm375_vm0, %v2517_v36, %v2519_v27 }
 0x222   : > { %v5269_v6 = vpop.f32.mrb[141].mxu0  ;;  %v8315_v48 = vpack.c.bf16 %v2520_v61, %v2518_v11  ;;  %v2644_v24 = vsel %vm502_vm1, %v2642_v49, %v2643_v26  ;;  %v2646_v22 = vsel %vm502_vm1, %v2643_v26, %v2645_v17 }
 0x223   : > { %v2318_v59 = vmax.f32 %v2286_v44, 0.0  ;;  %v2287_v19 = vadd.f32 %v6113_v23, %v8027_v50  ;;  %v5270_v41 = vadd.f32 %v5269_v6, %v5268_v62  ;;  %v5271_v38 = vpop.f32.mrb[142].mxu0  ;;  %v8322_v31 = vpack.c.bf16 %v2646_v22, %v2644_v24 }
 0x224   : > { %v5272_v40 = vpop.f32.mrb[143].mxu0  ;;  %3114 = vmatprep.mubr.bf16.mxu0 %v8315_v48  ;;  %v2393_v34 = vld [vmem:[#allocation2 + $0xf0] sm:$0xff] }
 0x225   : > { %2351 = vst [vmem:[#allocation2 + $0x109] sm:$0xff] %v2318_v59  ;;  %v2319_v56 = vmax.f32 %v2287_v19, 0.0  ;;  %v6100_v51 = vadd.f32 %v5270_v41, %v7975_v5  ;;  %v5273_v53 = vadd.f32 %v5272_v40, %v5271_v38  ;;  %5906 = vmatprep.mubr.bf16.mxu1 %v8322_v31  ;;  %3115 = vmatmul.mubr.bf16.gmra.mrb[192].mxu0 %v8319_v42  ;;  %v2521_v2 = vrot.slane %v2393_v34, 1 }
 0x226   : > { %v2394_v15 = vld [vmem:[#allocation2 + $0xf8] sm:$0xff]  ;;  %v2395_v10 = vld [vmem:[#allocation2 + $0x100] sm:$0x3]  ;;  %v2647_v17 = vrot.slane %v2393_v34, 2 }
 0x227   : > { %2352 = vst [vmem:[#allocation2 + $0x111] sm:$0xff] %v2319_v56  ;;  %v6101_v36 = vadd.f32 %v6100_v51, %v8156_v3  ;;  %v6108_v27 = vadd.f32 %v5273_v53, %v7983_v25  ;;  %v2522_v49 = vrot.slane %v2394_v15, 1  ;;  %v2524_v26 = vrot.slane %v2395_v10, 1 }
 0x228   : > { %v2648_v44 = vrot.slane %v2394_v15, 2  ;;  %v2650_v23 = vrot.slane %v2395_v10, 2  ;;  %v8338_v59 = vpack.c.bf16 %v2394_v15, %v2393_v34 }
 0x229   : > { %v2288_v5 = vadd.f32 %v6101_v36, %v8027_v50  ;;  %v6109_v62 = vadd.f32 %v6108_v27, %v8164_v0  ;;  %v5274_v11 = vpop.f32.mrb[144].mxu0  ;;  %v2523_v61 = vsel %vm375_vm0, %v2521_v2, %v2522_v49  ;;  %v2525_v6 = vsel %vm375_vm0, %v2522_v49, %v2524_v26 }
 0x22a   : > { %v5275_v24 = vpop.f32.mrb[145].mxu0  ;;  %v8334_v22 = vpack.c.bf16 %v2525_v6, %v2523_v61  ;;  %v2649_v3 = vsel %vm502_vm1, %v2647_v17, %v2648_v44  ;;  %v2651_v25 = vsel %vm502_vm1, %v2648_v44, %v2650_v23 }
 0x22b   : > { %v2320_v19 = vmax.f32 %v2288_v5, 0.0  ;;  %v2289_v41 = vadd.f32 %v6109_v62, %v8027_v50  ;;  %v5276_v38 = vadd.f32 %v5275_v24, %v5274_v11  ;;  %v5277_v40 = vpop.f32.mrb[146].mxu0  ;;  %v8341_v0 = vpack.c.bf16 %v2651_v25, %v2649_v3 }
 0x22c   : > { %v5278_v56 = vpop.f32.mrb[147].mxu0  ;;  %3122 = vmatprep.mubr.bf16.mxu0 %v8334_v22  ;;  %v2396_v51 = vld [vmem:[#allocation2 + $0x108] sm:$0xff] }
 0x22d   : > { %2353 = vst [vmem:[#allocation2 + $0x121] sm:$0xff] %v2320_v19  ;;  %v2321_v53 = vmax.f32 %v2289_v41, 0.0  ;;  %v6120_v10 = vadd.f32 %v5276_v38, %v7995_v30  ;;  %v5279_v2 = vadd.f32 %v5278_v56, %v5277_v40  ;;  %5907 = vmatmul.mubr.bf16.gmra.mrb[112].mxu1 %v8341_v0  ;;  %3123 = vmatmul.mubr.bf16.gmra.mrb[196].mxu0 %v8338_v59  ;;  %v2526_v36 = vrot.slane %v2396_v51, 1 }
 0x22e   : > { %v2397_v34 = vld [vmem:[#allocation2 + $0x110] sm:$0xff]  ;;  %v2398_v15 = vld [vmem:[#allocation2 + $0x118] sm:$0x3]  ;;  %v2652_v44 = vrot.slane %v2396_v51, 2 }
 0x22f   : > { %2354 = vst [vmem:[#allocation2 + $0x129] sm:$0xff] %v2321_v53  ;;  %v6121_v27 = vadd.f32 %v6120_v10, %v8205_v21  ;;  %v6128_v49 = vadd.f32 %v5279_v2, %v8002_v32  ;;  %v2527_v26 = vrot.slane %v2397_v34, 1  ;;  %v2529_v17 = vrot.slane %v2398_v15, 1 }
 0x230   : > { %v2653_v23 = vrot.slane %v2397_v34, 2  ;;  %v2655_v5 = vrot.slane %v2398_v15, 2  ;;  %v8357_v25 = vpack.c.bf16 %v2397_v34, %v2396_v51 }
 0x231   : > { %v2290_v30 = vadd.f32 %v6121_v27, %v8027_v50  ;;  %v6129_v62 = vadd.f32 %v6128_v49, %v8216_v55  ;;  %v5280_v11 = vpop.f32.mrb[148].mxu0  ;;  %v2528_v61 = vsel %vm375_vm0, %v2526_v36, %v2527_v26  ;;  %v2530_v6 = vsel %vm375_vm0, %v2527_v26, %v2529_v17 }
 0x232   : > { %v5281_v24 = vpop.f32.mrb[149].mxu0  ;;  %v8353_v3 = vpack.c.bf16 %v2530_v6, %v2528_v61  ;;  %v2654_v21 = vsel %vm502_vm1, %v2652_v44, %v2653_v23  ;;  %v2656_v32 = vsel %vm502_vm1, %v2653_v23, %v2655_v5 }
 0x233   : > { %v2322_v19 = vmax.f32 %v2290_v30, 0.0  ;;  %v2291_v41 = vadd.f32 %v6129_v62, %v8027_v50  ;;  %v5282_v38 = vadd.f32 %v5281_v24, %v5280_v11  ;;  %v5283_v40 = vpop.f32.mrb[150].mxu0  ;;  %v8360_v55 = vpack.c.bf16 %v2656_v32, %v2654_v21 }
 0x234   : > { %v5284_v56 = vpop.f32.mrb[151].mxu0  ;;  %3130 = vmatprep.mubr.bf16.mxu0 %v8353_v3  ;;  %v2399_v53 = vld [vmem:[#allocation2 + $0x120] sm:$0xff] }
 0x235   : > { %2355 = vst [vmem:[#allocation2 + $0x139] sm:$0xff] %v2322_v19  ;;  %v2323_v10 = vmax.f32 %v2291_v41, 0.0  ;;  %v6116_v2 = vadd.f32 %v5282_v38, %v7991_v43  ;;  %v5285_v15 = vadd.f32 %v5284_v56, %v5283_v40  ;;  %5910 = vmatprep.mubr.bf16.mxu1 %v8360_v55  ;;  %3131 = vmatmul.mubr.bf16.gmra.mrb[200].mxu0 %v8357_v25  ;;  %v2531_v50 = vrot.slane %v2399_v53, 1  ;;  %v8371_v43 = vld [vmem:[%s9095_s2] ss:$0 sm:$0xff] }
 0x236   : > { %v2400_v51 = vld [vmem:[#allocation2 + $0x128] sm:$0xff]  ;;  %v2401_v34 = vld [vmem:[#allocation2 + $0x130] sm:$0x3]  ;;  %v2657_v17 = vrot.slane %v2399_v53, 2 }
 0x237   : > { %2356 = vst [vmem:[#allocation2 + $0x141] sm:$0xff] %v2323_v10  ;;  %v6117_v36 = vadd.f32 %v6116_v2, %v8201_v28  ;;  %v6124_v27 = vadd.f32 %v5285_v15, %v7999_v46  ;;  %v2532_v49 = vrot.slane %v2400_v51, 1  ;;  %v2534_v26 = vrot.slane %v2401_v34, 1 }
 0x238   : > { %v2658_v44 = vrot.slane %v2400_v51, 2  ;;  %v2660_v23 = vrot.slane %v2401_v34, 2  ;;  %v8381_v21 = vpack.c.bf16 %v2400_v51, %v2399_v53 }
 0x239   : > { %v2292_v5 = vadd.f32 %v8371_v43, %v6117_v36  ;;  %v6125_v30 = vadd.f32 %v6124_v27, %v8209_v9  ;;  %v5286_v62 = vpop.f32.mrb[152].mxu0  ;;  %v2533_v11 = vsel %vm375_vm0, %v2531_v50, %v2532_v49  ;;  %v2535_v28 = vsel %vm375_vm0, %v2532_v49, %v2534_v26 }
 0x23a   : > { %v5287_v46 = vpop.f32.mrb[153].mxu0  ;;  %v8377_v61 = vpack.c.bf16 %v2535_v28, %v2533_v11  ;;  %v2659_v6 = vsel %vm502_vm1, %v2657_v17, %v2658_v44  ;;  %v2661_v24 = vsel %vm502_vm1, %v2658_v44, %v2660_v23 }
 0x23b   : > { %v2324_v32 = vmax.f32 %v2292_v5, 0.0  ;;  %v2293_v19 = vadd.f32 %v8371_v43, %v6125_v30  ;;  %v5288_v41 = vadd.f32 %v5287_v46, %v5286_v62  ;;  %v5289_v38 = vpop.f32.mrb[154].mxu0  ;;  %v8384_v9 = vpack.c.bf16 %v2661_v24, %v2659_v6 }
 0x23c   : > { %v5290_v40 = vpop.f32.mrb[155].mxu0  ;;  %3138 = vmatprep.mubr.bf16.mxu0 %v8377_v61  ;;  %v2402_v56 = vld [vmem:[#allocation2 + $0x138] sm:$0xff] }
 0x23d   : > { %2357 = vst [vmem:[#allocation2 + $0x151] sm:$0xff] %v2324_v32  ;;  %v2325_v10 = vmax.f32 %v2293_v19, 0.0  ;;  %v6136_v2 = vadd.f32 %v5288_v41, %v8011_v13  ;;  %v5291_v15 = vadd.f32 %v5290_v40, %v5289_v38  ;;  %5911 = vmatmul.mubr.bf16.gmra.mrb[116].mxu1 %v8384_v9  ;;  %3139 = vmatmul.mubr.bf16.gmra.mrb[204].mxu0 %v8381_v21  ;;  %v2536_v34 = vrot.slane %v2402_v56, 1 }
 0x23e   : > { %v2403_v53 = vld [vmem:[#allocation2 + $0x140] sm:$0xff]  ;;  %v2404_v51 = vld [vmem:[#allocation2 + $0x148] sm:$0x3]  ;;  %v2662_v26 = vrot.slane %v2402_v56, 2 }
 0x23f   : > { %2358 = vst [vmem:[#allocation2 + $0x159] sm:$0xff] %v2325_v10  ;;  %v6137_v50 = vadd.f32 %v6136_v2, %v8241_v14  ;;  %v6144_v36 = vadd.f32 %v5291_v15, %v8021_v54  ;;  %v2537_v27 = vrot.slane %v2403_v53, 1  ;;  %v2539_v49 = vrot.slane %v2404_v51, 1 }
 0x240   : > { %v2663_v17 = vrot.slane %v2403_v53, 2  ;;  %v2665_v44 = vrot.slane %v2404_v51, 2  ;;  %v8400_v46 = vpack.c.bf16 %v2403_v53, %v2402_v56 }
 0x241   : > { %v2294_v13 = vadd.f32 %v8371_v43, %v6137_v50  ;;  %v6145_v23 = vadd.f32 %v6144_v36, %v8249_v58  ;;  %v2538_v30 = vsel %vm375_vm0, %v2536_v34, %v2537_v27  ;;  %v2540_v62 = vsel %vm375_vm0, %v2537_v27, %v2539_v49 }
 0x242   : > { %v8396_v28 = vpack.c.bf16 %v2540_v62, %v2538_v30  ;;  %v2664_v14 = vsel %vm502_vm1, %v2662_v26, %v2663_v17  ;;  %v2666_v54 = vsel %vm502_vm1, %v2663_v17, %v2665_v44 }
 0x243   : > { %v2326_v6 = vmax.f32 %v2294_v13, 0.0  ;;  %v2295_v24 = vadd.f32 %v8371_v43, %v6145_v23  ;;  %v8403_v58 = vpack.c.bf16 %v2666_v54, %v2664_v14  ;;  %v2363_v54 = vld [vmem:[#allocation2] sm:$0xff] }
 0x244   : > { %3146 = vmatprep.mubr.bf16.mxu0 %v8396_v28  ;;  %v2405_v38 = vld [vmem:[#allocation2 + $0x150] sm:$0xff] }
 0x245   : > { %v5292_v5 = vpop.f32.mrb[156].mxu0  ;;  %2359 = vst [vmem:[#allocation2 + $0x169] sm:$0xff] %v2326_v6  ;;  %v2327_v40 = vmax.f32 %v2295_v24, 0.0  ;;  %5914 = vmatprep.mubr.bf16.mxu1 %v8403_v58  ;;  %3147 = vmatmul.mubr.bf16.gmra.mrb[208].mxu0 %v8400_v46  ;;  %v2541_v53 = vrot.slane %v2405_v38, 1  ;;  %v2667_v27 = vrot.slane %v2405_v38, 2 }
 0x246   : > { %v5293_v11 = vpop.f32.mrb[157].mxu0  ;;  %v2406_v56 = vld [vmem:[#allocation2 + $0x158] sm:$0xff]  ;;  %v2407_v15 = vld [vmem:[#allocation2 + $0x160] sm:$0x3]  ;;  %v2365_v6 = vld [vmem:[#allocation2 + $0x10] sm:$0x3] }
 0x247   : > { %v5294_v32 = vadd.f32 %v5293_v11, %v5292_v5  ;;  %v5295_v19 = vpop.f32.mrb[158].mxu0  ;;  %2360 = vst [vmem:[#allocation2 + $0x171] sm:$0xff] %v2327_v40  ;;  %v2542_v50 = vrot.slane %v2406_v56, 1  ;;  %v2544_v36 = vrot.slane %v2407_v15, 1  ;;  %v2668_v49 = vrot.slane %v2406_v56, 2 }
 0x248   : > { %v5296_v41 = vpop.f32.mrb[159].mxu0  ;;  %v2670_v26 = vrot.slane %v2407_v15, 2  ;;  %v8422_v11 = vpack.c.bf16 %v2406_v56, %v2405_v38  ;;  %v8427_v56 = vld [vmem:[#allocation2 + $0x8] sm:$0xff] }
 0x249   : > { %v6132_v10 = vadd.f32 %v5294_v32, %v8007_v35  ;;  %v5297_v2 = vadd.f32 %v5296_v41, %v5295_v19  ;;  %v2543_v44 = vsel %vm375_vm0, %v2541_v53, %v2542_v50  ;;  %v2545_v13 = vsel %vm375_vm0, %v2542_v50, %v2544_v36 }
 0x24a   : > { %v8415_v23 = vpack.c.bf16 %v2545_v13, %v2543_v44  ;;  %v2669_v5 = vsel %vm502_vm1, %v2667_v27, %v2668_v49  ;;  %v8430_v15 = vrot.slane %v8427_v56, 2  ;;  %v2600_v53 = vrot.slane %v2365_v6, 2 }
 0x24b   : > { %v6133_v51 = vadd.f32 %v6132_v10, %v8237_v4  ;;  %v6140_v34 = vadd.f32 %v5297_v2, %v8015_v33  ;;  %v2671_v4 = vsel %vm502_vm1, %v2668_v49, %v2670_v26  ;;  %v2597_v2 = vrot.slane %v2363_v54, 2 }
 0x24c   : > { %v8420_v62 = vpack.c.bf16 %v2671_v4, %v2669_v5  ;;  %3154 = vmatprep.mubr.bf16.mxu0 %v8415_v23  ;;  %v2601_v4 = vsel %vm502_vm1, %v8430_v15, %v2600_v53 }
 0x24d   : > { %v2296_v35 = vadd.f32 %v8371_v43, %v6133_v51  ;;  %v6141_v17 = vadd.f32 %v6140_v34, %v8245_v1  ;;  %v2408_v1 = vld [vmem:[#allocation2 + $0x168] sm:$0xff]  ;;  %3155 = vmatmul.mubr.bf16.gmra.mrb[212].mxu0 %v8422_v11  ;;  %v2471_v51 = vrot.slane %v2363_v54, 1  ;;  %v2599_v5 = vsel %vm502_vm1, %v2597_v2, %v8430_v15 }
 0x24e   : > { %5915 = vmatmul.mubr.bf16.gmra.mrb[120].mxu1 %v8420_v62  ;;  %v2409_v24 = vld [vmem:[#allocation2 + $0x170] sm:$0xff]  ;;  %v2410_v32 = vld [vmem:[#allocation2 + $0x178] sm:$0x3]  ;;  %v2546_v19 = vrot.slane %v2408_v1, 1  ;;  %v2672_v41 = vrot.slane %v2408_v1, 2 }
 0x24f   : > { %v2328_v33 = vmax.f32 %v2296_v35, 0.0  ;;  %v2297_v30 = vadd.f32 %v8371_v43, %v6141_v17  ;;  %v2547_v43 = vrot.slane %v2409_v24, 1  ;;  %v2549_v40 = vrot.slane %v2410_v32, 1 }
 0x250   : > { %v2673_v38 = vrot.slane %v2409_v24, 2  ;;  %v2675_v10 = vrot.slane %v2410_v32, 2  ;;  %v8441_v35 = vrot.slane %v8427_v56, 1  ;;  %v2474_v17 = vrot.slane %v2365_v6, 1 }
 0x251   : > { %2361 = vst [vmem:[#allocation2 + $0x181] sm:$0xff] %v2328_v33  ;;  %v2329_v14 = vmax.f32 %v2297_v30, 0.0  ;;  %v2548_v34 = vsel %vm375_vm0, %v2546_v19, %v2547_v43  ;;  %v2550_v50 = vsel %vm375_vm0, %v2547_v43, %v2549_v40  ;;  %v8443_v44 = vpack.c.bf16 %v2409_v24, %v2408_v1 }
 0x252   : > { %v2674_v36 = vsel %vm502_vm1, %v2672_v41, %v2673_v38  ;;  %v2676_v27 = vsel %vm502_vm1, %v2673_v38, %v2675_v10  ;;  %v8436_v49 = vpack.c.bf16 %v2550_v50, %v2548_v34  ;;  %v2473_v1 = vsel %vm375_vm0, %v2471_v51, %v8441_v35 }
 0x253   : > { %2362 = vst [vmem:[#allocation2 + $0x189] sm:$0xff] %v2329_v14  ;;  %v8438_v26 = vpack.c.bf16 %v2676_v27, %v2674_v36  ;;  %v2475_v6 = vsel %vm375_vm0, %v8441_v35, %v2474_v17  ;;  %v2725_v40 = vpack.c.bf16 %v2601_v4, %v2599_v5  ;;  %v2723_v27 = vpack.c.bf16 %v8427_v56, %v2363_v54  ;;  %v6502_v17 = vld [vmem:[%s9096_s3 + $0x180] sm:$0xff]   ;;  %v6503_v5 = vld [vmem:[%s9096_s3 + $0x1c8] sm:$0xff]   ;;  %v6507_v4 = vld [vmem:[%s9096_s3 + $0x1d8] sm:$0xff]  }
 0x254   : > { %3162 = vmatprep.mubr.bf16.mxu0 %v8436_v49  ;;  %v2724_v51 = vpack.c.bf16 %v2475_v6, %v2473_v1  ;;  %v6504_v54 = vld [vmem:[%s9096_s3 + $0x188] sm:$0xff]   ;;  %v9273_v1 = vld [vmem:[#allocation14_spill] sm:$0xff] }
 0x255   : > { %5918 = vmatprep.mubr.bf16.mxu1 %v8438_v26  ;;  %3163 = vmatmul.mubr.bf16.gmra.mrb[216].mxu0 %v8443_v44  ;;  %v9274_v6 = vld [vmem:[#allocation18_spill] sm:$0xff] }
 0x258   : > { %v2411_v13 = vld [vmem:[#allocation2 + $0x180] sm:$0xff] }
 0x259   : > { %v2551_v14 = vrot.slane %v2411_v13, 1  ;;  %v2677_v32 = vrot.slane %v2411_v13, 2 }
 0x25a   : > { %v2412_v33 = vld [vmem:[#allocation2 + $0x188] sm:$0xff]  ;;  %v2413_v30 = vld [vmem:[#allocation2 + $0x190] sm:$0x3] }
 0x25b   : > { %v2552_v24 = vrot.slane %v2412_v33, 1  ;;  %v2554_v19 = vrot.slane %v2413_v30, 1  ;;  %v2678_v41 = vrot.slane %v2412_v33, 2  ;;  %v2680_v43 = vrot.slane %v2413_v30, 2  ;;  %v6509_v30 = vld [vmem:[%s9096_s3 + $0x1e0] sm:$0xff]  }
 0x25c   : > { %v8464_v36 = vpack.c.bf16 %v2412_v33, %v2411_v13  ;;  %v6505_v13 = vld [vmem:[%s9096_s3 + $0x1d0] sm:$0xff]   ;;  %v6508_v33 = vld [vmem:[%s9096_s3 + $0x198] sm:$0xff]  }
 0x25d   : > { %v2553_v38 = vsel %vm375_vm0, %v2551_v14, %v2552_v24  ;;  %v2555_v10 = vsel %vm375_vm0, %v2552_v24, %v2554_v19  ;;  %v2679_v2 = vsel %vm502_vm1, %v2677_v32, %v2678_v41  ;;  %v2681_v53 = vsel %vm502_vm1, %v2678_v41, %v2680_v43  ;;  %v6510_v14 = vld [vmem:[%s9096_s3 + $0x1a0] sm:$0xff]   ;;  %v9272_v32 = vld [vmem:[#allocation47_spill] sm:$0xff]  ;;  %v6512_v24 = vld [vmem:[%s9096_s3 + $0x1a8] sm:$0xff]  }
 0x25e   : > { %v8460_v34 = vpack.c.bf16 %v2555_v10, %v2553_v38  ;;  %v8462_v50 = vpack.c.bf16 %v2681_v53, %v2679_v2  ;;  %v6513_v19 = vld [vmem:[%s9096_s3 + $0x1f0] sm:$0xff]   ;;  %v6515_v43 = vld [vmem:[%s9096_s3 + $0x1f8] sm:$0xff]   ;;  %v9276_v38 = vld [vmem:[#allocation45_spill] sm:$0xff] }
 0x25f   : > { %v6514_v41 = vld [vmem:[%s9096_s3 + $0x1b0] sm:$0xff]   ;;  %v6516_v10 = vld [vmem:[%s9096_s3 + $0x1b8] sm:$0xff]   ;;  %v6517_v2 = vld [vmem:[%s9096_s3 + $0x200] sm:$0xff]  }
 0x260   : > { %3170 = vmatprep.mubr.bf16.mxu0 %v8460_v34  ;;  %5919 = vmatmul.mubr.bf16.gmra.mrb[124].mxu1 %v8462_v50  ;;  %v9277_v53 = vld [vmem:[#allocation46_spill] sm:$0xff] }
 0x261   : > { %3171 = vmatmul.mubr.bf16.gmra.mrb[220].mxu0 %v8464_v36  ;;  %5938 = vmatprep.mubr.bf16.mxu1 %v2725_v40  ;;  %v9275_v40 = vld [vmem:[#allocation26_spill] sm:$0xff] }
 0x262   : > { %3516 = vmatprep.mubr.bf16.mxu0 %v2724_v51  ;;  %v9278_v51 = vld [vmem:[#allocation21_spill] sm:$0xff] }
 0x268   : > { %5939 = vmatmul.mubr.bf16.vlgmr.msra.gmra.mrb[96].mxu1 %v8063_v57  ;;  %v6506_v57 = vld [vmem:[%s9096_s3 + $0x190] sm:$0xff]  }
 0x269   : > { %3517 = vmatmul.mubr.bf16.vlgmr.msra.gmra.mrb[224].mxu0 %v2723_v27  ;;  %5942 = vmatprep.mubr.bf16.mxu1 %v8102_v39  ;;  %v9279_v27 = vld [vmem:[#allocation22_spill] sm:$0xff] }
 0x26a   : > { %5595 = vmatpush3.bf16.msra.mxu1 %v6502_v17  ;;  %3524 = vmatprep.mubr.bf16.mxu0 %v8053_v37  ;;  %v9271_v37 = vld [vmem:[#allocation17_spill] sm:$0xff] }
 0x26b   : > { %5596 = vmatprep.subr.bf16.mxu1 %v6503_v5  ;;  %v6518_v17 = vld [vmem:[%s9096_s3 + $0x208] sm:$0xff]   ;;  %v6519_v5 = vld [vmem:[%s9096_s3 + $0x210] sm:$0xff]  }
 0x26e   : > { %5597 = vmatpush3.bf16.msra.mxu1 %v6504_v54  ;;  %v6520_v54 = vld [vmem:[%s9096_s3 + $0x218] sm:$0xff]  }
 0x26f   : > { %5598 = vmatprep.subr.bf16.mxu1 %v6505_v13  ;;  %v6521_v13 = vld [vmem:[%s9096_s3 + $0x220] sm:$0xff]  }
 0x270   : > { %5943 = vmatmul.mubr.bf16.gmra.mrb[100].mxu1 %v8148_v8 }
 0x271   : > { %3525 = vmatmul.mubr.bf16.gmra.mrb[228].mxu0 %v8057_v7  ;;  %5946 = vmatprep.mubr.bf16.mxu1 %v8193_v29  ;;  %v6511_v7 = vld [vmem:[%s9096_s3 + $0x1e8] sm:$0xff]  }
 0x272   : > { %3532 = vmatprep.mubr.bf16.mxu0 %v9271_v37  ;;  %5599 = vmatpush3.bf16.msra.mxu1 %v6506_v57  ;;  %v6522_v57 = vld [vmem:[%s9096_s3 + $0x228] sm:$0xff]  }
 0x273   : > { %5600 = vmatprep.subr.bf16.mxu1 %v6507_v4  ;;  %v6523_v4 = vld [vmem:[%s9096_s3 + $0x230] sm:$0xff]  }
 0x276   : > { %5601 = vmatpush3.bf16.msra.mxu1 %v6508_v33 }
 0x277   : > { %5602 = vmatprep.subr.bf16.mxu1 %v6509_v30 }
 0x278   : > { %5947 = vmatmul.mubr.bf16.gmra.mrb[104].mxu1 %v9272_v32 }
 0x279   : > { %3533 = vmatmul.mubr.bf16.gmra.mrb[232].mxu0 %v9273_v1  ;;  %5950 = vmatprep.mubr.bf16.mxu1 %v8265_v18 }
 0x27a   : > { %3540 = vmatprep.mubr.bf16.mxu0 %v9274_v6  ;;  %5603 = vmatpush3.bf16.msra.mxu1 %v6510_v14 }
 0x27b   : > { %5604 = vmatprep.subr.bf16.mxu1 %v6511_v7 }
 0x27e   : > { %5605 = vmatpush3.bf16.msra.mxu1 %v6512_v24 }
 0x27f   : > { %5606 = vmatprep.subr.bf16.mxu1 %v6513_v19 }
 0x280   : > { %5951 = vmatmul.mubr.bf16.gmra.mrb[108].mxu1 %v8284_v20 }
 0x281   : > { %3541 = vmatmul.mubr.bf16.gmra.mrb[236].mxu0 %v9275_v40  ;;  %5954 = vmatprep.mubr.bf16.mxu1 %v8303_v60 }
 0x282   : > { %3548 = vmatprep.mubr.bf16.mxu0 %v9276_v38  ;;  %5607 = vmatpush3.bf16.msra.mxu1 %v6514_v41 }
 0x283   : > { %5608 = vmatprep.subr.bf16.mxu1 %v6515_v43 }
 0x286   : > { %5609 = vmatpush3.bf16.msra.mxu1 %v6516_v10 }
 0x287   : > { %5970 = vmatprep.subr.bf16.mxu1 %v6517_v2 }
 0x288   : > { %5955 = vmatmul.mubr.bf16.gmra.mrb[112].mxu1 %v8322_v31 }
 0x289   : > { %3549 = vmatmul.mubr.bf16.gmra.mrb[240].mxu0 %v9277_v53  ;;  %5958 = vmatprep.mubr.bf16.mxu1 %v8341_v0 }
 0x28a   : > { %3556 = vmatprep.mubr.bf16.mxu0 %v9278_v51 }
 0x290   : > { %5959 = vmatmul.mubr.bf16.gmra.mrb[116].mxu1 %v8360_v55 }
 0x291   : > { %3557 = vmatmul.mubr.bf16.gmra.mrb[244].mxu0 %v9279_v27  ;;  %5962 = vmatprep.mubr.bf16.mxu1 %v8384_v9 }
 0x292   : > { %3564 = vmatprep.mubr.bf16.mxu0 %v8258_v52 }
 0x298   : > { %5963 = vmatmul.mubr.bf16.gmra.mrb[120].mxu1 %v8403_v58 }
 0x299   : > { %3565 = vmatmul.mubr.bf16.gmra.mrb[248].mxu0 %v8262_v45  ;;  %5966 = vmatprep.mubr.bf16.mxu1 %v8420_v62 }
 0x29a   : > { %3572 = vmatprep.mubr.bf16.mxu0 %v8277_v47 }
 0x2a0   : > { %5967 = vmatmul.mubr.bf16.gmra.mrb[124].mxu1 %v8438_v26 }
 0x2a1   : > { %3573 = vmatmul.mubr.bf16.gmra.mrb[252].mxu0 %v8281_v63  ;;  %4031 = vmatprep.mubr.bf16.mxu1 %v9271_v37 }
 0x2a2   : > { %3580 = vmatprep.mubr.bf16.mxu0 %v8296_v16 }
 0x2a8   : > { %4032 = vmatmul.mubr.bf16.vlgmr.msra.gmra.mrb[128].mxu1 %v9273_v1  ;;  %v6524_v1 = vld [vmem:[%s9096_s3 + $0x238] sm:$0xff]  }
 0x2a9   : > { %3581 = vmatmul.mubr.bf16.gmra.mrb[0].mxu0 %v8300_v12  ;;  %4039 = vmatprep.mubr.bf16.mxu1 %v9274_v6 }
 0x2aa   : > { %5971 = vmatpush3.bf16.msra.mxu1 %v6517_v2  ;;  %3588 = vmatprep.mubr.bf16.mxu0 %v8315_v48 }
 0x2ab   : > { %5972 = vmatprep.subr.bf16.mxu1 %v6518_v17 }
 0x2ae   : > { %5973 = vmatpush3.bf16.msra.mxu1 %v6518_v17 }
 0x2af   : > { %5974 = vmatprep.subr.bf16.mxu1 %v6519_v5 }
 0x2b0   : > { %4040 = vmatmul.mubr.bf16.gmra.mrb[132].mxu1 %v9275_v40 }
 0x2b1   : > { %3589 = vmatmul.mubr.bf16.gmra.mrb[4].mxu0 %v8319_v42  ;;  %4047 = vmatprep.mubr.bf16.mxu1 %v9276_v38 }
 0x2b2   : > { %3596 = vmatprep.mubr.bf16.mxu0 %v8334_v22  ;;  %5975 = vmatpush3.bf16.msra.mxu1 %v6519_v5 }
 0x2b3   : > { %5976 = vmatprep.subr.bf16.mxu1 %v6520_v54 }
 0x2b6   : > { %5977 = vmatpush3.bf16.msra.mxu1 %v6520_v54 }
 0x2b7   : > { %5978 = vmatprep.subr.bf16.mxu1 %v6521_v13 }
 0x2b8   : > { %4048 = vmatmul.mubr.bf16.gmra.mrb[136].mxu1 %v9277_v53  ;;  %v5338_v37 = vpop.f32.mrb[160].mxu0 }
 0x2b9   : > { %3597 = vmatmul.mubr.bf16.gmra.mrb[8].mxu0 %v8338_v59  ;;  %4055 = vmatprep.mubr.bf16.mxu1 %v9278_v51  ;;  %v5339_v33 = vpop.f32.mrb[161].mxu0 }
 0x2ba   : > { %3604 = vmatprep.mubr.bf16.mxu0 %v8353_v3  ;;  %5979 = vmatpush3.bf16.msra.mxu1 %v6521_v13  ;;  %v8579_v30 = vadd.f32 %v5339_v33, %v5338_v37  ;;  %v5341_v14 = vpop.f32.mrb[162].mxu0 }
 0x2bb   : > { %5980 = vmatprep.subr.bf16.mxu1 %v6522_v57  ;;  %v5342_v7 = vpop.f32.mrb[163].mxu0 }
 0x2bc   : > { %v8584_v6 = vadd.f32 %v5342_v7, %v5341_v14 }
 0x2be   : > { %5981 = vmatpush3.bf16.msra.mxu1 %v6522_v57 }
 0x2bf   : > { %5982 = vmatprep.subr.bf16.mxu1 %v6523_v4 }
 0x2c0   : > { %4056 = vmatmul.mubr.bf16.gmra.mrb[140].mxu1 %v9279_v27  ;;  %v5344_v24 = vpop.f32.mrb[164].mxu0 }
 0x2c1   : > { %3605 = vmatmul.mubr.bf16.gmra.mrb[12].mxu0 %v8357_v25  ;;  %4063 = vmatprep.mubr.bf16.mxu1 %v8258_v52  ;;  %v5345_v19 = vpop.f32.mrb[165].mxu0 }
 0x2c2   : > { %3612 = vmatprep.mubr.bf16.mxu0 %v8377_v61  ;;  %5983 = vmatpush3.bf16.msra.mxu1 %v6523_v4  ;;  %v8590_v41 = vadd.f32 %v5345_v19, %v5344_v24  ;;  %v5347_v43 = vpop.f32.mrb[166].mxu0 }
 0x2c3   : > { %5984 = vmatprep.subr.bf16.mxu1 %v6524_v1  ;;  %v5348_v40 = vpop.f32.mrb[167].mxu0 }
 0x2c4   : > { %v8592_v38 = vadd.f32 %v5348_v40, %v5347_v43 }
 0x2c6   : > { %5985 = vmatpush3.bf16.msra.mxu1 %v6524_v1 }
 0x2c8   : > { %4064 = vmatmul.mubr.bf16.gmra.mrb[144].mxu1 %v8262_v45  ;;  %v5350_v52 = vpop.f32.mrb[168].mxu0 }
 0x2c9   : > { %3613 = vmatmul.mubr.bf16.gmra.mrb[16].mxu0 %v8381_v21  ;;  %4071 = vmatprep.mubr.bf16.mxu1 %v8277_v47  ;;  %v5351_v10 = vpop.f32.mrb[169].mxu0 }
 0x2ca   : > { %3620 = vmatprep.mubr.bf16.mxu0 %v8396_v28  ;;  %v8598_v2 = vadd.f32 %v5351_v10, %v5350_v52  ;;  %v5353_v53 = vpop.f32.mrb[170].mxu0 }
 0x2cb   : > { %v5354_v51 = vpop.f32.mrb[171].mxu0 }
 0x2cc   : > { %v8600_v27 = vadd.f32 %v5354_v51, %v5353_v53 }
 0x2d0   : > { %4072 = vmatmul.mubr.bf16.gmra.mrb[148].mxu1 %v8281_v63  ;;  %v5356_v45 = vpop.f32.mrb[172].mxu0 }
 0x2d1   : > { %3621 = vmatmul.mubr.bf16.gmra.mrb[20].mxu0 %v8400_v46  ;;  %4079 = vmatprep.mubr.bf16.mxu1 %v8296_v16  ;;  %v5357_v47 = vpop.f32.mrb[173].mxu0 }
 0x2d2   : > { %3628 = vmatprep.mubr.bf16.mxu0 %v8415_v23  ;;  %v8606_v17 = vadd.f32 %v5357_v47, %v5356_v45  ;;  %v5359_v5 = vpop.f32.mrb[174].mxu0 }
 0x2d3   : > { %v5360_v54 = vpop.f32.mrb[175].mxu0 }
 0x2d4   : > { %v8608_v13 = vadd.f32 %v5360_v54, %v5359_v5 }
 0x2d8   : > { %4080 = vmatmul.mubr.bf16.gmra.mrb[152].mxu1 %v8300_v12  ;;  %v5362_v63 = vpop.f32.mrb[176].mxu0 }
 0x2d9   : > { %3629 = vmatmul.mubr.bf16.gmra.mrb[24].mxu0 %v8422_v11  ;;  %4087 = vmatprep.mubr.bf16.mxu1 %v8315_v48  ;;  %v5363_v16 = vpop.f32.mrb[177].mxu0 }
 0x2da   : > { %3636 = vmatprep.mubr.bf16.mxu0 %v8436_v49  ;;  %v8614_v57 = vadd.f32 %v5363_v16, %v5362_v63  ;;  %v5365_v4 = vpop.f32.mrb[178].mxu0 }
 0x2db   : > { %v5366_v37 = vpop.f32.mrb[179].mxu0 }
 0x2dc   : > { %v8616_v33 = vadd.f32 %v5366_v37, %v5365_v4 }
 0x2e0   : > { %4088 = vmatmul.mubr.bf16.gmra.mrb[156].mxu1 %v8319_v42  ;;  %v5368_v12 = vpop.f32.mrb[180].mxu0 }
 0x2e1   : > { %3637 = vmatmul.mubr.bf16.gmra.mrb[28].mxu0 %v8443_v44  ;;  %4095 = vmatprep.mubr.bf16.mxu1 %v8334_v22  ;;  %v5369_v14 = vpop.f32.mrb[181].mxu0 }
 0x2e2   : > { %v8621_v7 = vadd.f32 %v5369_v14, %v5368_v12  ;;  %v5371_v48 = vpop.f32.mrb[182].mxu0 }
 0x2e3   : > { %v5372_v1 = vpop.f32.mrb[183].mxu0 }
 0x2e4   : > { %v8623_v24 = vadd.f32 %v5372_v1, %v5371_v48  ;;  %v8653_v48 = vld [vmem:[#allocation2 + $0x1a8] sm:$0x3] }
 0x2e8   : > { %4096 = vmatmul.mubr.bf16.gmra.mrb[160].mxu1 %v8338_v59  ;;  %v5374_v19 = vpop.f32.mrb[184].mxu0 }
 0x2e9   : > { %4103 = vmatprep.mubr.bf16.mxu1 %v8353_v3  ;;  %v5375_v43 = vpop.f32.mrb[185].mxu0 }
 0x2ea   : > { %v8627_v40 = vadd.f32 %v5375_v43, %v5374_v19  ;;  %v5377_v42 = vpop.f32.mrb[186].mxu0 }
 0x2eb   : > { %v5378_v52 = vpop.f32.mrb[187].mxu0 }
 0x2ec   : > { %v8629_v10 = vadd.f32 %v5378_v52, %v5377_v42  ;;  %v2559_v42 = vrot.slane %v8653_v48, 1 }
 0x2f0   : > { %4104 = vmatmul.mubr.bf16.gmra.mrb[164].mxu1 %v8357_v25  ;;  %v5380_v22 = vpop.f32.mrb[188].mxu0 }
 0x2f1   : > { %4111 = vmatprep.mubr.bf16.mxu1 %v8377_v61  ;;  %v5381_v53 = vpop.f32.mrb[189].mxu0 }
 0x2f2   : > { %v8633_v51 = vadd.f32 %v5381_v53, %v5380_v22  ;;  %v5383_v45 = vpop.f32.mrb[190].mxu0 }
 0x2f3   : > { %v5384_v59 = vpop.f32.mrb[191].mxu0 }
 0x2f4   : > { %v8635_v47 = vadd.f32 %v5384_v59, %v5383_v45 }
 0x2f8   : > { %4112 = vmatmul.mubr.bf16.gmra.mrb[168].mxu1 %v8381_v21  ;;  %v5386_v3 = vpop.f32.mrb[192].mxu0 }
 0x2f9   : > { %4119 = vmatprep.mubr.bf16.mxu1 %v8396_v28  ;;  %v5387_v5 = vpop.f32.mrb[193].mxu0  ;;  %v8651_v28 = vld [vmem:[#allocation2 + $0x198] sm:$0xff] }
 0x2fa   : > { %v8639_v54 = vadd.f32 %v5387_v5, %v5386_v3  ;;  %v5389_v63 = vpop.f32.mrb[194].mxu0  ;;  %v2556_v43 = vrot.slane %v8651_v28, 1 }
 0x2fb   : > { %v5390_v25 = vpop.f32.mrb[195].mxu0 }
 0x2fc   : > { %v8641_v16 = vadd.f32 %v5390_v25, %v5389_v63 }
 0x300   : > { %4120 = vmatmul.mubr.bf16.gmra.mrb[172].mxu1 %v8400_v46  ;;  %v5392_v61 = vpop.f32.mrb[196].mxu0 }
 0x301   : > { %4127 = vmatprep.mubr.bf16.mxu1 %v8415_v23  ;;  %v5393_v4 = vpop.f32.mrb[197].mxu0 }
 0x302   : > { %v8645_v37 = vadd.f32 %v5393_v4, %v5392_v61  ;;  %v5395_v12 = vpop.f32.mrb[198].mxu0 }
 0x303   : > { %v5396_v21 = vpop.f32.mrb[199].mxu0 }
 0x304   : > { %v8647_v14 = vadd.f32 %v5396_v21, %v5395_v12 }
 0x308   : > { %4128 = vmatmul.mubr.bf16.gmra.mrb[176].mxu1 %v8422_v11  ;;  %v5398_v1 = vpop.f32.mrb[200].mxu0  ;;  %v2558_v11 = vsel %vm375_vm0, %v2556_v43, %v8441_v35 }
 0x309   : > { %4135 = vmatprep.mubr.bf16.mxu1 %v8436_v49  ;;  %v5399_v46 = vpop.f32.mrb[201].mxu0  ;;  %v2560_v49 = vsel %vm375_vm0, %v8441_v35, %v2559_v42 }
 0x30a   : > { %v8655_v19 = vadd.f32 %v5399_v46, %v5398_v1  ;;  %v5401_v23 = vpop.f32.mrb[202].mxu0  ;;  %v2775_v59 = vpack.c.bf16 %v2560_v49, %v2558_v11 }
 0x30b   : > { %v5402_v52 = vpop.f32.mrb[203].mxu0 }
 0x30c   : > { %v8659_v22 = vadd.f32 %v5402_v52, %v5401_v23 }
 0x310   : > { %4136 = vmatmul.mubr.bf16.gmra.mrb[180].mxu1 %v8443_v44  ;;  %v5404_v53 = vpop.f32.mrb[204].mxu0 }
 0x311   : > { %4143 = vmatprep.mubr.bf16.mxu1 %v8460_v34  ;;  %v5405_v45 = vpop.f32.mrb[205].mxu0  ;;  %v2774_v34 = vpack.c.bf16 %v8427_v56, %v8651_v28 }
 0x312   : > { %v8667_v3 = vadd.f32 %v5405_v45, %v5404_v53  ;;  %v5407_v5 = vpop.f32.mrb[206].mxu0 }
 0x313   : > { %v5408_v63 = vpop.f32.mrb[207].mxu0 }
 0x314   : > { %v8669_v25 = vadd.f32 %v5408_v63, %v5407_v5 }
 0x318   : > { %4144 = vmatmul.mubr.bf16.gmra.mrb[184].mxu1 %v8464_v36  ;;  %v5410_v44 = vpop.f32.mrb[208].mxu0 }
 0x319   : > { %4151 = vmatprep.mubr.bf16.mxu1 %v2775_v59  ;;  %v5411_v61 = vpop.f32.mrb[209].mxu0 }
 0x31a   : > { %v8674_v4 = vadd.f32 %v5411_v61, %v5410_v44  ;;  %v5413_v35 = vpop.f32.mrb[210].mxu0 }
 0x31b   : > { %v5414_v12 = vpop.f32.mrb[211].mxu0 }
 0x31c   : > { %v8676_v21 = vadd.f32 %v5414_v12, %v5413_v35 }
 0x320   : > { %4152 = vmatmul.mubr.bf16.gmra.mrb[188].mxu1 %v2774_v34  ;;  %v5416_v1 = vpop.f32.mrb[212].mxu0 }
 0x321   : > { %5986 = vmatprep.mubr.bf16.mxu1 %v8102_v39  ;;  %v5417_v46 = vpop.f32.mrb[213].mxu0 }
 0x322   : > { %v8679_v23 = vadd.f32 %v5417_v46, %v5416_v1  ;;  %v5419_v36 = vpop.f32.mrb[214].mxu0 }
 0x323   : > { %v5420_v43 = vpop.f32.mrb[215].mxu0 }
 0x324   : > { %v8681_v42 = vadd.f32 %v5420_v43, %v5419_v36 }
 0x328   : > { %5987 = vmatmul.mubr.bf16.vlgmr.msra.gmra.mrb[96].mxu1 %v8148_v8  ;;  %v5422_v56 = vpop.f32.mrb[216].mxu0 }
 0x329   : > { %5990 = vmatprep.mubr.bf16.mxu1 %v8193_v29  ;;  %v5423_v52 = vpop.f32.mrb[217].mxu0 }
 0x32a   : > { %v8685_v11 = vadd.f32 %v5423_v52, %v5422_v56  ;;  %v5425_v49 = vpop.f32.mrb[218].mxu0 }
 0x32b   : > { %v5426_v53 = vpop.f32.mrb[219].mxu0 }
 0x32c   : > { %v8687_v45 = vadd.f32 %v5426_v53, %v5425_v49 }
 0x330   : > { %5991 = vmatmul.mubr.bf16.gmra.mrb[100].mxu1 %v9272_v32 }
 0x331   : > { %5994 = vmatprep.mubr.bf16.mxu1 %v8265_v18 }
 0x334   : > { %v5428_v39 = vpop.f32.mrb[220].mxu0 }
 0x335   : > { %v5429_v59 = vpop.f32.mrb[221].mxu0 }
 0x336   : > { %v8691_v5 = vadd.f32 %v5429_v59, %v5428_v39  ;;  %v5431_v63 = vpop.f32.mrb[222].mxu0 }
 0x337   : > { %v5432_v8 = vpop.f32.mrb[223].mxu0 }
 0x338   : > { %v8693_v44 = vadd.f32 %v5432_v8, %v5431_v63  ;;  %5995 = vmatmul.mubr.bf16.gmra.mrb[104].mxu1 %v8284_v20  ;;  %v2685_v63 = vrot.slane %v8653_v48, 2 }
 0x339   : > { %5998 = vmatprep.mubr.bf16.mxu1 %v8303_v60 }
 0x33c   : > { %v5474_v29 = vpop.f32.mrb[224].mxu0 }
 0x33d   : > { %v5475_v34 = vpop.f32.mrb[225].mxu0 }
 0x33e   : > { %v5476_v61 = vadd.f32 %v5475_v34, %v5474_v29  ;;  %v5477_v35 = vpop.f32.mrb[226].mxu0 }
 0x33f   : > { %v5478_v12 = vpop.f32.mrb[227].mxu0 }
 0x340   : > { %v8698_v32 = vadd.f32 %v5476_v61, %v8579_v30  ;;  %v5479_v18 = vadd.f32 %v5478_v12, %v5477_v35  ;;  %5999 = vmatmul.mubr.bf16.gmra.mrb[108].mxu1 %v8322_v31 }
 0x341   : > { %6002 = vmatprep.mubr.bf16.mxu1 %v8341_v0 }
 0x342   : > { %v8703_v1 = vadd.f32 %v5479_v18, %v8584_v6 }
 0x344   : > { %v5480_v46 = vpop.f32.mrb[228].mxu0 }
 0x345   : > { %v5481_v20 = vpop.f32.mrb[229].mxu0 }
 0x346   : > { %v5482_v36 = vadd.f32 %v5481_v20, %v5480_v46  ;;  %v5483_v60 = vpop.f32.mrb[230].mxu0 }
 0x347   : > { %v5484_v43 = vpop.f32.mrb[231].mxu0 }
 0x348   : > { %v8706_v56 = vadd.f32 %v5482_v36, %v8590_v41  ;;  %v5485_v52 = vadd.f32 %v5484_v43, %v5483_v60  ;;  %6003 = vmatmul.mubr.bf16.gmra.mrb[112].mxu1 %v8360_v55 }
 0x349   : > { %6006 = vmatprep.mubr.bf16.mxu1 %v8384_v9 }
 0x34a   : > { %v8711_v31 = vadd.f32 %v5485_v52, %v8592_v38  ;;  %v2682_v38 = vrot.slane %v8651_v28, 2 }
 0x34c   : > { %v5486_v0 = vpop.f32.mrb[232].mxu0 }
 0x34d   : > { %v5487_v30 = vpop.f32.mrb[233].mxu0 }
 0x34e   : > { %v5488_v6 = vadd.f32 %v5487_v30, %v5486_v0  ;;  %v5489_v49 = vpop.f32.mrb[234].mxu0 }
 0x34f   : > { %v5490_v53 = vpop.f32.mrb[235].mxu0 }
 0x350   : > { %v8714_v39 = vadd.f32 %v5488_v6, %v8598_v2  ;;  %v5491_v59 = vadd.f32 %v5490_v53, %v5489_v49  ;;  %6007 = vmatmul.mubr.bf16.gmra.mrb[116].mxu1 %v8403_v58  ;;  %v2684_v58 = vsel %vm502_vm1, %v2682_v38, %v8430_v15 }
 0x351   : > { %6010 = vmatprep.mubr.bf16.mxu1 %v8420_v62  ;;  %v2686_v62 = vsel %vm502_vm1, %v8430_v15, %v2685_v63 }
 0x352   : > { %v8719_v55 = vadd.f32 %v5491_v59, %v8600_v27  ;;  %v2776_v48 = vpack.c.bf16 %v2686_v62, %v2684_v58 }
 0x354   : > { %v5492_v9 = vpop.f32.mrb[236].mxu0 }
 0x355   : > { %v5493_v41 = vpop.f32.mrb[237].mxu0 }
 0x356   : > { %v5494_v8 = vadd.f32 %v5493_v41, %v5492_v9  ;;  %v5495_v29 = vpop.f32.mrb[238].mxu0 }
 0x357   : > { %v5496_v34 = vpop.f32.mrb[239].mxu0 }
 0x358   : > { %v8724_v2 = vadd.f32 %v5494_v8, %v8606_v17  ;;  %v5497_v61 = vadd.f32 %v5496_v34, %v5495_v29  ;;  %6011 = vmatmul.mubr.bf16.gmra.mrb[120].mxu1 %v8438_v26 }
 0x359   : > { %6014 = vmatprep.mubr.bf16.mxu1 %v8462_v50 }
 0x35a   : > { %v8733_v27 = vadd.f32 %v5497_v61, %v8608_v13 }
 0x35c   : > { %v5498_v28 = vpop.f32.mrb[240].mxu0 }
 0x35d   : > { %v5499_v35 = vpop.f32.mrb[241].mxu0 }
 0x35e   : > { %v5500_v12 = vadd.f32 %v5499_v35, %v5498_v28  ;;  %v5501_v17 = vpop.f32.mrb[242].mxu0 }
 0x35f   : > { %v5502_v18 = vpop.f32.mrb[243].mxu0 }
 0x360   : > { %v8736_v46 = vadd.f32 %v5500_v12, %v8614_v57  ;;  %v5503_v26 = vadd.f32 %v5502_v18, %v5501_v17  ;;  %6015 = vmatmul.mubr.bf16.gmra.mrb[124].mxu1 %v2776_v48 }
 0x362   : > { %v8739_v50 = vadd.f32 %v5503_v26, %v8616_v33 }
 0x364   : > { %v5504_v20 = vpop.f32.mrb[244].mxu0 }
 0x365   : > { %v5505_v36 = vpop.f32.mrb[245].mxu0 }
 0x366   : > { %v5506_v15 = vadd.f32 %v5505_v36, %v5504_v20  ;;  %v5507_v60 = vpop.f32.mrb[246].mxu0 }
 0x367   : > { %v5508_v13 = vpop.f32.mrb[247].mxu0 }
 0x368   : > { %v8742_v43 = vadd.f32 %v5506_v15, %v8621_v7  ;;  %v5509_v52 = vadd.f32 %v5508_v13, %v5507_v60 }
 0x36a   : > { %v8745_v0 = vadd.f32 %v5509_v52, %v8623_v24 }
 0x36c   : > { %v5510_v30 = vpop.f32.mrb[248].mxu0 }
 0x36d   : > { %v5511_v57 = vpop.f32.mrb[249].mxu0 }
 0x36e   : > { %v5512_v6 = vadd.f32 %v5511_v57, %v5510_v30  ;;  %v5513_v49 = vpop.f32.mrb[250].mxu0 }
 0x36f   : > { %v5514_v53 = vpop.f32.mrb[251].mxu0 }
 0x370   : > { %v8748_v33 = vadd.f32 %v5512_v6, %v8627_v40  ;;  %v5515_v59 = vadd.f32 %v5514_v53, %v5513_v49 }
 0x372   : > { %v8751_v9 = vadd.f32 %v5515_v59, %v8629_v10 }
 0x374   : > { %v5516_v41 = vpop.f32.mrb[252].mxu0 }
 0x375   : > { %v5517_v38 = vpop.f32.mrb[253].mxu0 }
 0x376   : > { %v5518_v7 = vadd.f32 %v5517_v38, %v5516_v41  ;;  %v5519_v63 = vpop.f32.mrb[254].mxu0 }
 0x377   : > { %v5520_v8 = vpop.f32.mrb[255].mxu0 }
 0x378   : > { %v8754_v24 = vadd.f32 %v5518_v7, %v8633_v51  ;;  %v5521_v29 = vadd.f32 %v5520_v8, %v5519_v63 }
 0x37a   : > { %v8757_v34 = vadd.f32 %v5521_v29, %v8635_v47 }
 0x37b   : > { %v5610_v61 = vpop.f32.mrb[128].mxu1 }
 0x37c   : > { %v5522_v58 = vpop.f32.mrb[0].mxu0  ;;  %v5611_v40 = vpop.f32.mrb[129].mxu1 }
 0x37d   : > { %v5612_v62 = vadd.f32 %v5611_v40, %v5610_v61  ;;  %v5523_v28 = vpop.f32.mrb[1].mxu0  ;;  %v5613_v48 = vpop.f32.mrb[130].mxu1 }
 0x37e   : > { %v5524_v10 = vadd.f32 %v5523_v28, %v5522_v58  ;;  %v5525_v35 = vpop.f32.mrb[2].mxu0  ;;  %v5614_v12 = vpop.f32.mrb[131].mxu1 }
 0x37f   : > { %v5615_v17 = vadd.f32 %v5614_v12, %v5613_v48  ;;  %v5526_v18 = vpop.f32.mrb[3].mxu0  ;;  %v8760_v26 = vadd.f32 %v8698_v32, %v5612_v62 }
 0x380   : > { %v8763_v51 = vadd.f32 %v5524_v10, %v8639_v54  ;;  %v5527_v20 = vadd.f32 %v5526_v18, %v5525_v35 }
 0x381   : > { %v8766_v47 = vadd.f32 %v8703_v1, %v5615_v17 }
 0x382   : > { %v8769_v36 = vadd.f32 %v5527_v20, %v8641_v16 }
 0x383   : > { %v5616_v15 = vpop.f32.mrb[132].mxu1 }
 0x384   : > { %v5528_v60 = vpop.f32.mrb[4].mxu0  ;;  %v5617_v13 = vpop.f32.mrb[133].mxu1 }
 0x385   : > { %v5618_v52 = vadd.f32 %v5617_v13, %v5616_v15  ;;  %v5529_v30 = vpop.f32.mrb[5].mxu0  ;;  %v5619_v57 = vpop.f32.mrb[134].mxu1 }
 0x386   : > { %v5530_v6 = vadd.f32 %v5529_v30, %v5528_v60  ;;  %v5531_v49 = vpop.f32.mrb[6].mxu0  ;;  %v5620_v32 = vpop.f32.mrb[135].mxu1 }
 0x387   : > { %v5621_v53 = vadd.f32 %v5620_v32, %v5619_v57  ;;  %v5532_v59 = vpop.f32.mrb[7].mxu0  ;;  %v8772_v54 = vadd.f32 %v8706_v56, %v5618_v52 }
 0x388   : > { %v8775_v1 = vadd.f32 %v5530_v6, %v8645_v37  ;;  %v5533_v41 = vadd.f32 %v5532_v59, %v5531_v49 }
 0x389   : > { %v8778_v16 = vadd.f32 %v8711_v31, %v5621_v53 }
 0x38a   : > { %v8781_v38 = vadd.f32 %v5533_v41, %v8647_v14 }
 0x38b   : > { %v5622_v7 = vpop.f32.mrb[136].mxu1 }
 0x38c   : > { %v5534_v63 = vpop.f32.mrb[8].mxu0  ;;  %v5623_v8 = vpop.f32.mrb[137].mxu1 }
 0x38d   : > { %v5624_v29 = vadd.f32 %v5623_v8, %v5622_v7  ;;  %v5535_v61 = vpop.f32.mrb[9].mxu0  ;;  %v5625_v58 = vpop.f32.mrb[138].mxu1 }
 0x38e   : > { %v5536_v40 = vadd.f32 %v5535_v61, %v5534_v63  ;;  %v5537_v62 = vpop.f32.mrb[10].mxu0  ;;  %v5626_v56 = vpop.f32.mrb[139].mxu1 }
 0x38f   : > { %v5627_v28 = vadd.f32 %v5626_v56, %v5625_v58  ;;  %v5538_v48 = vpop.f32.mrb[11].mxu0  ;;  %v8784_v37 = vadd.f32 %v8714_v39, %v5624_v29 }
 0x390   : > { %v8787_v31 = vadd.f32 %v5536_v40, %v8655_v19  ;;  %v5539_v10 = vadd.f32 %v5538_v48, %v5537_v62 }
 0x391   : > { %v8790_v14 = vadd.f32 %v8719_v55, %v5627_v28 }
 0x392   : > { %v8793_v35 = vadd.f32 %v5539_v10, %v8659_v22 }
 0x393   : > { %v5628_v12 = vpop.f32.mrb[140].mxu1 }
 0x394   : > { %v5540_v17 = vpop.f32.mrb[12].mxu0  ;;  %v5629_v18 = vpop.f32.mrb[141].mxu1 }
 0x395   : > { %v5630_v20 = vadd.f32 %v5629_v18, %v5628_v12  ;;  %v5541_v15 = vpop.f32.mrb[13].mxu0  ;;  %v5631_v60 = vpop.f32.mrb[142].mxu1 }
 0x396   : > { %v5542_v13 = vadd.f32 %v5541_v15, %v5540_v17  ;;  %v5543_v52 = vpop.f32.mrb[14].mxu0  ;;  %v5632_v39 = vpop.f32.mrb[143].mxu1 }
 0x397   : > { %v5633_v30 = vadd.f32 %v5632_v39, %v5631_v60  ;;  %v5544_v57 = vpop.f32.mrb[15].mxu0  ;;  %v8796_v19 = vadd.f32 %v8724_v2, %v5630_v20 }
 0x398   : > { %v8799_v55 = vadd.f32 %v5542_v13, %v8667_v3  ;;  %v5545_v6 = vadd.f32 %v5544_v57, %v5543_v52 }
 0x399   : > { %v8802_v22 = vadd.f32 %v8733_v27, %v5633_v30 }
 0x39a   : > { %v8805_v49 = vadd.f32 %v5545_v6, %v8669_v25 }
 0x39b   : > { %v5634_v32 = vpop.f32.mrb[144].mxu1 }
 0x39c   : > { %v5546_v53 = vpop.f32.mrb[16].mxu0  ;;  %v5635_v59 = vpop.f32.mrb[145].mxu1 }
 0x39d   : > { %v5636_v41 = vadd.f32 %v5635_v59, %v5634_v32  ;;  %v5547_v7 = vpop.f32.mrb[17].mxu0  ;;  %v5637_v63 = vpop.f32.mrb[146].mxu1 }
 0x39e   : > { %v5548_v8 = vadd.f32 %v5547_v7, %v5546_v53  ;;  %v5549_v29 = vpop.f32.mrb[18].mxu0  ;;  %v5638_v2 = vpop.f32.mrb[147].mxu1 }
 0x39f   : > { %v5639_v61 = vadd.f32 %v5638_v2, %v5637_v63  ;;  %v5550_v58 = vpop.f32.mrb[19].mxu0  ;;  %v8808_v3 = vadd.f32 %v8736_v46, %v5636_v41 }
 0x3a0   : > { %v8811_v27 = vadd.f32 %v5548_v8, %v8674_v4  ;;  %v5551_v40 = vadd.f32 %v5550_v58, %v5549_v29 }
 0x3a1   : > { %v8814_v25 = vadd.f32 %v8739_v50, %v5639_v61 }
 0x3a2   : > { %v8817_v62 = vadd.f32 %v5551_v40, %v8676_v21 }
 0x3a3   : > { %v5640_v56 = vpop.f32.mrb[148].mxu1 }
 0x3a4   : > { %v5552_v28 = vpop.f32.mrb[20].mxu0  ;;  %v5641_v48 = vpop.f32.mrb[149].mxu1 }
 0x3a5   : > { %v5642_v10 = vadd.f32 %v5641_v48, %v5640_v56  ;;  %v5553_v12 = vpop.f32.mrb[21].mxu0  ;;  %v5643_v17 = vpop.f32.mrb[150].mxu1 }
 0x3a6   : > { %v5554_v18 = vadd.f32 %v5553_v12, %v5552_v28  ;;  %v5555_v20 = vpop.f32.mrb[22].mxu0  ;;  %v5644_v46 = vpop.f32.mrb[151].mxu1 }
 0x3a7   : > { %v5645_v15 = vadd.f32 %v5644_v46, %v5643_v17  ;;  %v5556_v60 = vpop.f32.mrb[23].mxu0  ;;  %v8820_v4 = vadd.f32 %v8742_v43, %v5642_v10 }
 0x3a8   : > { %v8823_v50 = vadd.f32 %v5554_v18, %v8679_v23  ;;  %v5557_v13 = vadd.f32 %v5556_v60, %v5555_v20 }
 0x3a9   : > { %v8826_v21 = vadd.f32 %v8745_v0, %v5645_v15 }
 0x3aa   : > { %v8829_v52 = vadd.f32 %v5557_v13, %v8681_v42 }
 0x3ab   : > { %v5646_v39 = vpop.f32.mrb[152].mxu1 }
 0x3ac   : > { %v5558_v30 = vpop.f32.mrb[24].mxu0  ;;  %v5647_v57 = vpop.f32.mrb[153].mxu1 }
 0x3ad   : > { %v5648_v6 = vadd.f32 %v5647_v57, %v5646_v39  ;;  %v5559_v32 = vpop.f32.mrb[25].mxu0  ;;  %v5649_v53 = vpop.f32.mrb[154].mxu1 }
 0x3ae   : > { %v5560_v59 = vadd.f32 %v5559_v32, %v5558_v30  ;;  %v5561_v41 = vpop.f32.mrb[26].mxu0  ;;  %v5650_v43 = vpop.f32.mrb[155].mxu1 }
 0x3af   : > { %v5651_v7 = vadd.f32 %v5650_v43, %v5649_v53  ;;  %v5562_v63 = vpop.f32.mrb[27].mxu0  ;;  %v8832_v23 = vadd.f32 %v8748_v33, %v5648_v6 }
 0x3b0   : > { %v8835_v0 = vadd.f32 %v5560_v59, %v8685_v11  ;;  %v5563_v8 = vadd.f32 %v5562_v63, %v5561_v41 }
 0x3b1   : > { %v8838_v42 = vadd.f32 %v8751_v9, %v5651_v7 }
 0x3b2   : > { %v8841_v29 = vadd.f32 %v5563_v8, %v8687_v45 }
 0x3b3   : > { %v5652_v2 = vpop.f32.mrb[156].mxu1 }
 0x3b4   : > { %v5564_v61 = vpop.f32.mrb[28].mxu0  ;;  %v5653_v58 = vpop.f32.mrb[157].mxu1 }
 0x3b5   : > { %v5654_v40 = vadd.f32 %v5653_v58, %v5652_v2  ;;  %v5565_v56 = vpop.f32.mrb[29].mxu0  ;;  %v5655_v28 = vpop.f32.mrb[158].mxu1 }
 0x3b6   : > { %v5566_v48 = vadd.f32 %v5565_v56, %v5564_v61  ;;  %v5567_v10 = vpop.f32.mrb[30].mxu0  ;;  %v5656_v33 = vpop.f32.mrb[159].mxu1 }
 0x3b7   : > { %v5657_v12 = vadd.f32 %v5656_v33, %v5655_v28  ;;  %v5568_v17 = vpop.f32.mrb[31].mxu0  ;;  %v8844_v11 = vadd.f32 %v8754_v24, %v5654_v40 }
 0x3b8   : > { %v8847_v9 = vadd.f32 %v5566_v48, %v8691_v5  ;;  %v5569_v18 = vadd.f32 %v5568_v17, %v5567_v10 }
 0x3b9   : > { %v8850_v45 = vadd.f32 %v8757_v34, %v5657_v12 }
 0x3ba   : > { %v8853_v20 = vadd.f32 %v5569_v18, %v8693_v44 }
 0x3bb   : > { %v5658_v46 = vpop.f32.mrb[160].mxu1 }
 0x3bc   : > { %v5659_v15 = vpop.f32.mrb[161].mxu1 }
 0x3bd   : > { %v5660_v60 = vadd.f32 %v5659_v15, %v5658_v46  ;;  %v5661_v13 = vpop.f32.mrb[162].mxu1 }
 0x3be   : > { %v5662_v39 = vpop.f32.mrb[163].mxu1 }
 0x3bf   : > { %v5663_v30 = vadd.f32 %v5662_v39, %v5661_v13  ;;  %v8856_v57 = vadd.f32 %v8763_v51, %v5660_v60 }
 0x3c1   : > { %v8859_v24 = vadd.f32 %v8769_v36, %v5663_v30 }
 0x3c3   : > { %v5664_v5 = vpop.f32.mrb[164].mxu1 }
 0x3c4   : > { %v5665_v6 = vpop.f32.mrb[165].mxu1 }
 0x3c5   : > { %v5666_v32 = vadd.f32 %v5665_v6, %v5664_v5  ;;  %v5667_v34 = vpop.f32.mrb[166].mxu1 }
 0x3c6   : > { %v5668_v53 = vpop.f32.mrb[167].mxu1 }
 0x3c7   : > { %v5669_v59 = vadd.f32 %v5668_v53, %v5667_v34  ;;  %v8862_v44 = vadd.f32 %v8775_v1, %v5666_v32 }
 0x3c9   : > { %v8865_v41 = vadd.f32 %v8781_v38, %v5669_v59 }
 0x3cb   : > { %v5670_v43 = vpop.f32.mrb[168].mxu1 }
 0x3cc   : > { %v5671_v7 = vpop.f32.mrb[169].mxu1 }
 0x3cd   : > { %v5672_v63 = vadd.f32 %v5671_v7, %v5670_v43  ;;  %v5673_v51 = vpop.f32.mrb[170].mxu1 }
 0x3ce   : > { %v5674_v8 = vpop.f32.mrb[171].mxu1 }
 0x3cf   : > { %v5675_v2 = vadd.f32 %v5674_v8, %v5673_v51  ;;  %v8868_v36 = vadd.f32 %v8787_v31, %v5672_v63 }
 0x3d1   : > { %v8871_v61 = vadd.f32 %v8793_v35, %v5675_v2 }
 0x3d3   : > { %v5676_v58 = vpop.f32.mrb[172].mxu1 }
 0x3d4   : > { %v5677_v40 = vpop.f32.mrb[173].mxu1 }
 0x3d5   : > { %v5678_v56 = vadd.f32 %v5677_v40, %v5676_v58  ;;  %v5679_v1 = vpop.f32.mrb[174].mxu1 }
 0x3d6   : > { %v5680_v28 = vpop.f32.mrb[175].mxu1 }
 0x3d7   : > { %v5681_v48 = vadd.f32 %v5680_v28, %v5679_v1  ;;  %v8874_v38 = vadd.f32 %v8799_v55, %v5678_v56 }
 0x3d9   : > { %v8877_v10 = vadd.f32 %v8805_v49, %v5681_v48 }
 0x3db   : > { %v5682_v33 = vpop.f32.mrb[176].mxu1 }
 0x3dc   : > { %v5683_v12 = vpop.f32.mrb[177].mxu1 }
 0x3dd   : > { %v5684_v17 = vadd.f32 %v5683_v12, %v5682_v33  ;;  %v5685_v31 = vpop.f32.mrb[178].mxu1 }
 0x3de   : > { %v5686_v18 = vpop.f32.mrb[179].mxu1 }
 0x3df   : > { %v5687_v46 = vadd.f32 %v5686_v18, %v5685_v31  ;;  %v8880_v35 = vadd.f32 %v8811_v27, %v5684_v17  ;;  %v9280_v31 = vld [vmem:[#allocation8_spill] sm:$0xff] }
 0x3e1   : > { %v8883_v15 = vadd.f32 %v8817_v62, %v5687_v46 }
 0x3e3   : > { %v5688_v60 = vpop.f32.mrb[180].mxu1 }
 0x3e4   : > { %v5689_v13 = vpop.f32.mrb[181].mxu1 }
 0x3e5   : > { %v5690_v39 = vadd.f32 %v5689_v13, %v5688_v60  ;;  %v5691_v55 = vpop.f32.mrb[182].mxu1 }
 0x3e6   : > { %v5692_v30 = vpop.f32.mrb[183].mxu1 }
 0x3e7   : > { %v5693_v5 = vadd.f32 %v5692_v30, %v5691_v55  ;;  %v8886_v49 = vadd.f32 %v8823_v50, %v5690_v39  ;;  %v9282_v39 = vld [vmem:[#allocation9_spill] sm:$0xff] }
 0x3e9   : > { %v8889_v6 = vadd.f32 %v8829_v52, %v5693_v5  ;;  %v9283_v5 = vld [vmem:[#allocation7_spill] sm:$0xff] }
 0x3eb   : > { %v5694_v32 = vpop.f32.mrb[184].mxu1 }
 0x3ec   : > { %v5695_v34 = vpop.f32.mrb[185].mxu1 }
 0x3ed   : > { %v5696_v27 = vadd.f32 %v5695_v34, %v5694_v32  ;;  %v5697_v53 = vpop.f32.mrb[186].mxu1 }
 0x3ee   : > { %v5698_v59 = vpop.f32.mrb[187].mxu1 }
 0x3ef   : > { %v5699_v62 = vadd.f32 %v5698_v59, %v5697_v53  ;;  %v8892_v43 = vadd.f32 %v8835_v0, %v5696_v27  ;;  %v8907_v0 = vld [vmem:[%s9097_s4] ss:$0 sm:$0xff] }
 0x3f1   : > { %v8895_v7 = vadd.f32 %v8841_v29, %v5699_v62 }
 0x3f3   : > { %v5700_v63 = vpop.f32.mrb[188].mxu1 }
 0x3f4   : > { %v5701_v50 = vpop.f32.mrb[189].mxu1 }
 0x3f5   : > { %v5702_v51 = vadd.f32 %v5701_v50, %v5700_v63  ;;  %v5703_v8 = vpop.f32.mrb[190].mxu1 }
 0x3f6   : > { %v5704_v52 = vpop.f32.mrb[191].mxu1 }
 0x3f7   : > { %v5705_v2 = vadd.f32 %v5704_v52, %v5703_v8  ;;  %v8898_v58 = vadd.f32 %v8847_v9, %v5702_v51 }
 0x3f9   : > { %v8901_v40 = vadd.f32 %v8853_v20, %v5705_v2 }
 0x3fb   : > { %v5988_v56 = vpop.f32.mrb[96].mxu1 }
 0x3fc   : > { %v6148_v29 = vadd.f32 %v8772_v54, %v5988_v56  ;;  %v4194_v1 = vpop.f32.mrb[97].mxu1  ;;  %v9281_v54 = vld [vmem:[#allocation6_spill] sm:$0xff] }
 0x3fd   : > { %v6151_v28 = vadd.f32 %v8760_v26, %v4194_v1  ;;  %v5989_v48 = vpop.f32.mrb[98].mxu1 }
 0x3fe   : > { %v4362_v9 = vadd.f32 %v6148_v29, %v8907_v0  ;;  %v6154_v20 = vadd.f32 %v8778_v16, %v5989_v48  ;;  %v4197_v33 = vpop.f32.mrb[99].mxu1  ;;  %v9285_v29 = vld [vmem:[#allocation10_spill] sm:$0xff]  ;;  %v9286_v48 = vld [vmem:[#allocation13_spill] sm:$0xff] }
 0x3ff   : > { %v4360_v12 = vadd.f32 %v6151_v28, %v8907_v0  ;;  %v6157_v17 = vadd.f32 %v8766_v47, %v4197_v33 }
 0x400   : > { %v4394_v18 = vadd.f32 %v4362_v9, %v9280_v31  ;;  %v4363_v46 = vadd.f32 %v6154_v20, %v8907_v0  ;;  %v9287_v20 = vld [vmem:[#allocation11_spill] sm:$0xff] }
 0x401   : > { %v4392_v60 = vadd.f32 %v4360_v12, %v9281_v54  ;;  %v4361_v26 = vadd.f32 %v6157_v17, %v8907_v0 }
 0x402   : > { %v4426_v13 = vmax.f32 %v4394_v18, 0.0  ;;  %v4395_v55 = vadd.f32 %v4363_v46, %v9282_v39 }
 0x403   : > { %v4424_v30 = vmax.f32 %v4392_v60, 0.0  ;;  %v4393_v32 = vadd.f32 %v4361_v26, %v9283_v5  ;;  %v5992_v16 = vpop.f32.mrb[100].mxu1 }
 0x404   : > { %4458 = vst [vmem:[%s8923_s7 + $0x10] sm:$0xff] %v4426_v13  ;;  %v4427_v47 = vmax.f32 %v4395_v55, 0.0  ;;  %v6160_v34 = vadd.f32 %v8796_v19, %v5992_v16  ;;  %v4210_v27 = vpop.f32.mrb[101].mxu1  ;;  %v9284_v19 = vld [vmem:[#allocation12_spill] sm:$0xff] }
 0x405   : > { %4456 = vst [vmem:[%s8923_s7] sm:$0xff] %v4424_v30  ;;  %v4425_v53 = vmax.f32 %v4393_v32, 0.0  ;;  %v6163_v59 = vadd.f32 %v8784_v37, %v4210_v27  ;;  %v5993_v62 = vpop.f32.mrb[102].mxu1  ;;  %v9289_v32 = vld [vmem:[#allocation15_spill] sm:$0xff] }
 0x406   : > { %4459 = vst [vmem:[%s8923_s7 + $0x18] sm:$0xff] %v4427_v47  ;;  %v4366_v63 = vadd.f32 %v6160_v34, %v8907_v0  ;;  %v6166_v50 = vadd.f32 %v8802_v22, %v5993_v62  ;;  %v4213_v51 = vpop.f32.mrb[103].mxu1  ;;  %v9290_v34 = vld [vmem:[#allocation20_spill] sm:$0xff] }
 0x407   : > { %4457 = vst [vmem:[%s8923_s7 + $0x8] sm:$0xff] %v4425_v53  ;;  %v4364_v8 = vadd.f32 %v6163_v59, %v8907_v0  ;;  %v6169_v52 = vadd.f32 %v8790_v14, %v4213_v51  ;;  %v9291_v53 = vld [vmem:[#allocation16_spill] sm:$0xff] }
 0x408   : > { %v4398_v2 = vadd.f32 %v4366_v63, %v9284_v19  ;;  %v4367_v56 = vadd.f32 %v6166_v50, %v8907_v0 }
 0x409   : > { %v4396_v37 = vadd.f32 %v4364_v8, %v9285_v29  ;;  %v4365_v1 = vadd.f32 %v6169_v52, %v8907_v0 }
 0x40a   : > { %v4430_v28 = vmax.f32 %v4398_v2, 0.0  ;;  %v4399_v9 = vadd.f32 %v4367_v56, %v9286_v48  ;;  %v9293_v48 = vld [vmem:[#allocation24_spill] sm:$0xff] }
 0x40b   : > { %v4428_v22 = vmax.f32 %v4396_v37, 0.0  ;;  %v4397_v33 = vadd.f32 %v4365_v1, %v9287_v20  ;;  %v5996_v12 = vpop.f32.mrb[104].mxu1  ;;  %v9294_v20 = vld [vmem:[#allocation28_spill] sm:$0xff] }
 0x40c   : > { %4462 = vst [vmem:[%s8923_s7 + $0x30] sm:$0xff] %v4430_v28  ;;  %v4431_v17 = vmax.f32 %v4399_v9, 0.0  ;;  %v6172_v14 = vadd.f32 %v8820_v4, %v5996_v12  ;;  %v4226_v31 = vpop.f32.mrb[105].mxu1  ;;  %v9288_v4 = vld [vmem:[#allocation19_spill] sm:$0xff]  ;;  %v9295_v12 = vld [vmem:[#allocation25_spill] sm:$0xff] }
 0x40d   : > { %4460 = vst [vmem:[%s8923_s7 + $0x20] sm:$0xff] %v4428_v22  ;;  %v4429_v18 = vmax.f32 %v4397_v33, 0.0  ;;  %v6175_v46 = vadd.f32 %v8808_v3, %v4226_v31  ;;  %v5997_v54 = vpop.f32.mrb[106].mxu1 }
 0x40e   : > { %4463 = vst [vmem:[%s8923_s7 + $0x38] sm:$0xff] %v4431_v17  ;;  %v4370_v60 = vadd.f32 %v6172_v14, %v8907_v0  ;;  %v6178_v26 = vadd.f32 %v8826_v21, %v5997_v54  ;;  %v4229_v13 = vpop.f32.mrb[107].mxu1 }
 0x40f   : > { %4461 = vst [vmem:[%s8923_s7 + $0x28] sm:$0xff] %v4429_v18  ;;  %v4368_v39 = vadd.f32 %v6175_v46, %v8907_v0  ;;  %v6181_v55 = vadd.f32 %v8814_v25, %v4229_v13 }
 0x410   : > { %v4402_v30 = vadd.f32 %v4370_v60, %v9288_v4  ;;  %v4371_v5 = vadd.f32 %v6178_v26, %v8907_v0 }
 0x411   : > { %v4400_v3 = vadd.f32 %v4368_v39, %v9289_v32  ;;  %v4369_v16 = vadd.f32 %v6181_v55, %v8907_v0  ;;  %v9297_v32 = vld [vmem:[#allocation29_spill] sm:$0xff] }
 0x412   : > { %v4434_v47 = vmax.f32 %v4402_v30, 0.0  ;;  %v4403_v27 = vadd.f32 %v4371_v5, %v9290_v34 }
 0x413   : > { %v4432_v21 = vmax.f32 %v4400_v3, 0.0  ;;  %v4401_v59 = vadd.f32 %v4369_v16, %v9291_v53  ;;  %v6000_v62 = vpop.f32.mrb[108].mxu1 }
 0x414   : > { %4466 = vst [vmem:[%s8923_s7 + $0x50] sm:$0xff] %v4434_v47  ;;  %v4435_v63 = vmax.f32 %v4403_v27, 0.0  ;;  %v6184_v25 = vadd.f32 %v8844_v11, %v6000_v62  ;;  %v4242_v50 = vpop.f32.mrb[109].mxu1  ;;  %v9292_v11 = vld [vmem:[#allocation27_spill] sm:$0xff]  ;;  %v9298_v47 = vld [vmem:[#allocation32_spill] sm:$0xff]  ;;  %v9299_v27 = vld [vmem:[#allocation30_spill] sm:$0xff] }
 0x415   : > { %4464 = vst [vmem:[%s8923_s7 + $0x40] sm:$0xff] %v4432_v21  ;;  %v4433_v51 = vmax.f32 %v4401_v59, 0.0  ;;  %v6187_v8 = vadd.f32 %v8832_v23, %v4242_v50  ;;  %v6001_v52 = vpop.f32.mrb[110].mxu1 }
 0x416   : > { %4467 = vst [vmem:[%s8923_s7 + $0x58] sm:$0xff] %v4435_v63  ;;  %v4374_v19 = vadd.f32 %v6184_v25, %v8907_v0  ;;  %v6190_v2 = vadd.f32 %v8850_v45, %v6001_v52  ;;  %v4245_v56 = vpop.f32.mrb[111].mxu1 }
 0x417   : > { %4465 = vst [vmem:[%s8923_s7 + $0x48] sm:$0xff] %v4433_v51  ;;  %v4372_v29 = vadd.f32 %v6187_v8, %v8907_v0  ;;  %v6193_v37 = vadd.f32 %v8838_v42, %v4245_v56 }
 0x418   : > { %v4406_v1 = vadd.f32 %v4374_v19, %v9292_v11  ;;  %v4375_v28 = vadd.f32 %v6190_v2, %v8907_v0 }
 0x419   : > { %v4404_v23 = vadd.f32 %v4372_v29, %v9293_v48  ;;  %v4373_v9 = vadd.f32 %v6193_v37, %v8907_v0  ;;  %v9301_v37 = vld [vmem:[#allocation33_spill] sm:$0xff] }
 0x41a   : > { %v4438_v22 = vmax.f32 %v4406_v1, 0.0  ;;  %v4407_v33 = vadd.f32 %v4375_v28, %v9294_v20  ;;  %v9302_v28 = vld [vmem:[#allocation36_spill] sm:$0xff] }
 0x41b   : > { %v4436_v45 = vmax.f32 %v4404_v23, 0.0  ;;  %v4405_v17 = vadd.f32 %v4373_v9, %v9295_v12  ;;  %v6004_v14 = vpop.f32.mrb[112].mxu1  ;;  %v9303_v23 = vld [vmem:[#allocation34_spill] sm:$0xff] }
 0x41c   : > { %4470 = vst [vmem:[%s8923_s7 + $0x70] sm:$0xff] %v4438_v22  ;;  %v4439_v31 = vmax.f32 %v4407_v33, 0.0  ;;  %v6196_v42 = vadd.f32 %v8862_v44, %v6004_v14  ;;  %v4258_v18 = vpop.f32.mrb[113].mxu1  ;;  %v9296_v44 = vld [vmem:[#allocation31_spill] sm:$0xff] }
 0x41d   : > { %4468 = vst [vmem:[%s8923_s7 + $0x60] sm:$0xff] %v4436_v45  ;;  %v4437_v46 = vmax.f32 %v4405_v17, 0.0  ;;  %v6199_v54 = vadd.f32 %v8856_v57, %v4258_v18  ;;  %v6005_v60 = vpop.f32.mrb[114].mxu1 }
 0x41e   : > { %4471 = vst [vmem:[%s8923_s7 + $0x78] sm:$0xff] %v4439_v31  ;;  %v4378_v26 = vadd.f32 %v6196_v42, %v8907_v0  ;;  %v6202_v13 = vadd.f32 %v8865_v41, %v6005_v60  ;;  %v4261_v39 = vpop.f32.mrb[115].mxu1 }
 0x41f   : > { %4469 = vst [vmem:[%s8923_s7 + $0x68] sm:$0xff] %v4437_v46  ;;  %v4376_v55 = vadd.f32 %v6199_v54, %v8907_v0  ;;  %v6205_v4 = vadd.f32 %v8859_v24, %v4261_v39 }
 0x420   : > { %v4410_v30 = vadd.f32 %v4378_v26, %v9296_v44  ;;  %v4379_v5 = vadd.f32 %v6202_v13, %v8907_v0  ;;  %v9305_v26 = vld [vmem:[#allocation37_spill] sm:$0xff]  ;;  %v9307_v44 = vld [vmem:[#allocation38_spill] sm:$0xff] }
 0x421   : > { %v4408_v57 = vadd.f32 %v4376_v55, %v9297_v32  ;;  %v4377_v3 = vadd.f32 %v6205_v4, %v8907_v0  ;;  %v9306_v55 = vld [vmem:[#allocation40_spill] sm:$0xff] }
 0x422   : > { %v4442_v16 = vmax.f32 %v4410_v30, 0.0  ;;  %v4411_v34 = vadd.f32 %v4379_v5, %v9298_v47 }
 0x423   : > { %v4440_v41 = vmax.f32 %v4408_v57, 0.0  ;;  %v4409_v21 = vadd.f32 %v4377_v3, %v9299_v27  ;;  %v6008_v53 = vpop.f32.mrb[116].mxu1 }
 0x424   : > { %4474 = vst [vmem:[%s8923_s7 + $0x90] sm:$0xff] %v4442_v16  ;;  %v4443_v59 = vmax.f32 %v4411_v34, 0.0  ;;  %v6208_v24 = vadd.f32 %v8874_v38, %v6008_v53  ;;  %v4274_v62 = vpop.f32.mrb[117].mxu1  ;;  %v9300_v38 = vld [vmem:[#allocation35_spill] sm:$0xff] }
 0x425   : > { %4472 = vst [vmem:[%s8923_s7 + $0x80] sm:$0xff] %v4440_v41  ;;  %v4441_v63 = vmax.f32 %v4409_v21, 0.0  ;;  %v6211_v25 = vadd.f32 %v8868_v36, %v4274_v62  ;;  %v6009_v50 = vpop.f32.mrb[118].mxu1  ;;  %v9308_v53 = vld [vmem:[#allocation43_spill] sm:$0xff] }
 0x426   : > { %4475 = vst [vmem:[%s8923_s7 + $0x98] sm:$0xff] %v4443_v59  ;;  %v4382_v51 = vadd.f32 %v6208_v24, %v8907_v0  ;;  %v6214_v8 = vadd.f32 %v8877_v10, %v6009_v50  ;;  %v4277_v52 = vpop.f32.mrb[119].mxu1 }
 0x427   : > { %4473 = vst [vmem:[%s8923_s7 + $0x88] sm:$0xff] %v4441_v63  ;;  %v4380_v19 = vadd.f32 %v6211_v25, %v8907_v0  ;;  %v6217_v2 = vadd.f32 %v8871_v61, %v4277_v52  ;;  %v9310_v25 = vld [vmem:[#allocation44_spill] sm:$0xff] }
 0x428   : > { %v4414_v56 = vadd.f32 %v4382_v51, %v9300_v38  ;;  %v4383_v29 = vadd.f32 %v6214_v8, %v8907_v0  ;;  %v9311_v8 = vld [vmem:[#allocation42_spill] sm:$0xff] }
 0x429   : > { %v4412_v36 = vadd.f32 %v4380_v19, %v9301_v37  ;;  %v4381_v11 = vadd.f32 %v6217_v2, %v8907_v0 }
 0x42a   : > { %v4446_v1 = vmax.f32 %v4414_v56, 0.0  ;;  %v4415_v48 = vadd.f32 %v4383_v29, %v9302_v28 }
 0x42b   : > { %v4444_v10 = vmax.f32 %v4412_v36, 0.0  ;;  %v4413_v9 = vadd.f32 %v4381_v11, %v9303_v23  ;;  %v6012_v22 = vpop.f32.mrb[120].mxu1 }
 0x42c   : > { %4478 = vst [vmem:[%s8923_s7 + $0xb0] sm:$0xff] %v4446_v1  ;;  %v4447_v20 = vmax.f32 %v4415_v48, 0.0  ;;  %v6220_v61 = vadd.f32 %v8886_v49, %v6012_v22  ;;  %v4290_v33 = vpop.f32.mrb[121].mxu1  ;;  %v9304_v49 = vld [vmem:[#allocation39_spill] sm:$0xff] }
 0x42d   : > { %4476 = vst [vmem:[%s8923_s7 + $0xa0] sm:$0xff] %v4444_v10  ;;  %v4445_v45 = vmax.f32 %v4413_v9, 0.0  ;;  %v6223_v12 = vadd.f32 %v8880_v35, %v4290_v33  ;;  %v6013_v17 = vpop.f32.mrb[122].mxu1 }
 0x42e   : > { %4479 = vst [vmem:[%s8923_s7 + $0xb8] sm:$0xff] %v4447_v20  ;;  %v4386_v14 = vadd.f32 %v6220_v61, %v8907_v0  ;;  %v6226_v31 = vadd.f32 %v8889_v6, %v6013_v17  ;;  %v4293_v42 = vpop.f32.mrb[123].mxu1 }
 0x42f   : > { %4477 = vst [vmem:[%s8923_s7 + $0xa8] sm:$0xff] %v4445_v45  ;;  %v4384_v18 = vadd.f32 %v6223_v12, %v8907_v0  ;;  %v6229_v46 = vadd.f32 %v8883_v15, %v4293_v42 }
 0x430   : > { %v4418_v54 = vadd.f32 %v4386_v14, %v9304_v49  ;;  %v4387_v60 = vadd.f32 %v6226_v31, %v8907_v0 }
 0x431   : > { %v4416_v35 = vadd.f32 %v4384_v18, %v9305_v26  ;;  %v4385_v13 = vadd.f32 %v6229_v46, %v8907_v0 }
 0x432   : > { %v4450_v39 = vmax.f32 %v4418_v54, 0.0  ;;  %v4419_v4 = vadd.f32 %v4387_v60, %v9306_v55 }
 0x433   : > { %v4448_v6 = vmax.f32 %v4416_v35, 0.0  ;;  %v4417_v30 = vadd.f32 %v4385_v13, %v9307_v44  ;;  %v6016_v5 = vpop.f32.mrb[124].mxu1 }
 0x434   : > { %4482 = vst [vmem:[%s8923_s7 + $0xd0] sm:$0xff] %v4450_v39  ;;  %v4451_v32 = vmax.f32 %v4419_v4, 0.0  ;;  %v6232_v15 = vadd.f32 %v8898_v58, %v6016_v5  ;;  %v4306_v57 = vpop.f32.mrb[125].mxu1 }
 0x435   : > { %4480 = vst [vmem:[%s8923_s7 + $0xc0] sm:$0xff] %v4448_v6  ;;  %v4449_v3 = vmax.f32 %v4417_v30, 0.0  ;;  %v6235_v16 = vadd.f32 %v8892_v43, %v4306_v57  ;;  %v6017_v47 = vpop.f32.mrb[126].mxu1  ;;  %v9309_v43 = vld [vmem:[#allocation41_spill] sm:$0xff] }
 0x436   : > { %4483 = vst [vmem:[%s8923_s7 + $0xd8] sm:$0xff] %v4451_v32  ;;  %v4390_v34 = vadd.f32 %v6232_v15, %v8907_v0  ;;  %v6238_v41 = vadd.f32 %v8901_v40, %v6017_v47  ;;  %v4309_v27 = vpop.f32.mrb[127].mxu1 }
 0x437   : > { %4481 = vst [vmem:[%s8923_s7 + $0xc8] sm:$0xff] %v4449_v3  ;;  %v4388_v21 = vadd.f32 %v6235_v16, %v8907_v0  ;;  %v6241_v58 = vadd.f32 %v8895_v7, %v4309_v27 }
 0x438   : > { %v4422_v59 = vadd.f32 %v4390_v34, %v9308_v53  ;;  %v4391_v24 = vadd.f32 %v6238_v41, %v8907_v0 }
 0x439   : > { %v4420_v62 = vadd.f32 %v4388_v21, %v9309_v43  ;;  %v4389_v63 = vadd.f32 %v6241_v58, %v8907_v0 }
 0x43a   : > { %v4454_v40 = vmax.f32 %v4422_v59, 0.0  ;;  %v4423_v50 = vadd.f32 %v4391_v24, %v9310_v25 }
 0x43b   : > { %v4452_v51 = vmax.f32 %v4420_v62, 0.0  ;;  %v4421_v7 = vadd.f32 %v4389_v63, %v9311_v8 }
 0x43c   : > { %4486 = vst [vmem:[%s8923_s7 + $0xf0] sm:$0xff] %v4454_v40  ;;  %v4455_v52 = vmax.f32 %v4423_v50, 0.0 }
 0x43d   : > { %4484 = vst [vmem:[%s8923_s7 + $0xe0] sm:$0xff] %v4452_v51  ;;  %v4453_v0 = vmax.f32 %v4421_v7, 0.0 }
 0x43e   : > { %4487 = vst [vmem:[%s8923_s7 + $0xf8] sm:$0xff] %v4455_v52 }
 0x43f   : > { %4485 = vst [vmem:[%s8923_s7 + $0xe8] sm:$0xff] %v4453_v0 }
 0x440   : > { %6540 = shalt.err (!%p6537_p3)
}
 0x441   : > { %s6541_s16 = scalar_lea.hbm %s9043_s12, 4096  ;;  %s6545_s17 = scalar_lea.hbm %s9098_s5, 8192 }
 0x442   : > { %p6542_p4 = scmp.ne.s32.totalorder %s9043_s12, %s6541_s16  ;;  %p6546_p9 = scmp.lt.u32.totalorder %s9043_s12, %s9098_s5 }
 0x443   : > { %p6547_p10 = scmp.lt.u32.totalorder %s6545_s17, %s6541_s16  ;;  %p6549_p12 = scmp.lt.u32.totalorder %s6541_s16, %s9043_s12 }
 0x444   : > { %p6543_p7 = pnand %p6542_p4, %p6663_p5 }
 0x445   : > { %p6548_p11 = por %p6547_p10, %p6546_p9 }
 0x446   : > { %p6544_p8 = pneg %p6543_p7 }
 0x447   : > { %p6550_p13 = por %p6549_p12, %p6548_p11 }
 0x449   : > { %p6551_p0 = pnand %p6550_p13, %p6544_p8 }
 0x44b   : > { %6554 = shalt.err (!%p6551_p0)
}
 0x44c   : > { %s6593_s7 = smov 128   ;;  %s6594_s8 = smov 8  }
 0x44d   : > { %6339 = dma.vmem_to_hbm [thread:$0]  (%p6663_p5), %s9045_s9, 4096, %s9043_s12, %s9052_s22, %s6593_s7, %s6593_s7, %s6594_s8  }
 0x44e PF: > { %p6345_p1 = scmp.ge.s32.totalorder %s6589_s21, 2  ;;  %s4517_s10 = sand.u32 1, %s6577_s18  }
 0x44f   : > { %s4518_s11 = scalar_lea.sflag [#allocation4], %s4517_s10 }
 0x450   : > { %p6342_p2 = pnand %p6345_p1, %p6667_p6 }
 0x452   : > { %6572 = dma.done.wait (!%p6342_p2), %s4518_s11, 4096  }
 0x453   : > { %6574 = vsyncadd (!%p6342_p2), %s4518_s11, 4294963200  ;;  %p15_p3 = scmp.ge.s32.totalorder %s6650_s24, 4   ;;  %s9312_s18 = smov %s6581_s19 }
 0x454   : > { %s9313_s19 = smov %s6585_s20  ;;  %s9314_s20 = smov %s6661_s27 }
 0x455   : > { %s9315_s21 = smov %s6650_s24  ;;  %17 = sbr.rel (!%p15_p3) target bundleno = 3 (0x3), region = 81 }
 0x45c   :  { %4523 = vsyncpa [#allocation4], 1 }
 0x45d   :  { %4525 = vsyncpa [#allocation4 + $0x1], 1 }

</bundles_post_ra>
